<compile_context>
chip_gen: v6e
topology: v6e:2x2x1
jax: 0.10.0
libtpu: 0.0.40
codegen_flags: <defaults>
</compile_context>

<pallas_src>
import functools

import jax
import jax.numpy as jnp
from jax import lax
from jax.experimental import pallas as pl
from jax.experimental.pallas import tpu as pltpu


HIDDEN = 128  # forced by the PyTorch forward (h0/c0 hardcode 128)


def _make_kernel(t_chunk, t_rem, b_pad, hidden):
    """Builds the kernel closure with static chunk sizes baked in."""
    H = hidden
    unroll_main = True if t_chunk <= 16 else 8
    unroll_tail = True if t_rem <= 16 else 8

    def kernel(xproj_ref,   # (t_chunk, B_pad, 4H) bf16: time-major x@W_ih0 + b0 chunk
               w_hh0_ref,   # (H, 4H)    bf16: layer-0 recurrent weights
               w_cat1_ref,  # (2H, 4H)   bf16: stacked [W_ih1; W_hh1]
               b1_ref,      # (1, 4H)    f32:  b_ih1 + b_hh1
               w_fc_ref,    # (H, O_pad) f32
               b_fc_ref,    # (1, O_pad) f32
               out_ref,     # (B_pad, O_pad) f32
               h0_sc, c0_sc, h1_sc, c1_sc):   # (B_pad, H) f32 state scratch
        pid = pl.program_id(0)
        last = pl.num_programs(0) - 1

        @pl.when(pid == 0)
        def _init():
            z = jnp.zeros_like(h0_sc)
            h0_sc[...] = z
            c0_sc[...] = z
            h1_sc[...] = z
            c1_sc[...] = z

        # Hoist the (1,4H)->(B,4H) bias broadcast out of the per-step path.
        b1 = jnp.broadcast_to(b1_ref[...], (b_pad, 4 * H))

        def gates_to_hc(gates, c):
            i = jax.nn.sigmoid(gates[:, 0 * H:1 * H])
            f = jax.nn.sigmoid(gates[:, 1 * H:2 * H])
            g = jnp.tanh(gates[:, 2 * H:3 * H])
            o = jax.nn.sigmoid(gates[:, 3 * H:4 * H])
            c_new = f * c + i * g
            h_new = o * jnp.tanh(c_new)
            return h_new, c_new

        def step(t, carry):
            h0, c0, h1, c1 = carry
            # Layer 0: input projection precomputed -> only the recurrent matmul.
            # Weights are read from VMEM each step (not hoisted) so they are not
            # kept live in vregs across the whole unrolled loop.
            g0 = (xproj_ref[t].astype(jnp.float32)
                  + jnp.dot(h0.astype(jnp.bfloat16), w_hh0_ref[...],
                            preferred_element_type=jnp.float32))
            h0n, c0n = gates_to_hc(g0, c0)
            # Layer 1: fused (B,2H)@(2H,4H); cast BEFORE the concat so only
            # bf16 bytes are copied on the serial critical path.
            zh = jnp.concatenate([h0n.astype(jnp.bfloat16),
                                  h1.astype(jnp.bfloat16)], axis=-1)
            g1 = jnp.dot(zh, w_cat1_ref[...],
                         preferred_element_type=jnp.float32) + b1
            h1n, c1n = gates_to_hc(g1, c1)
            return (h0n, c0n, h1n, c1n)

        def load_carry():
            return (h0_sc[...], c0_sc[...], h1_sc[...], c1_sc[...])

        @pl.when(pid != last)
        def _body():
            h0, c0, h1, c1 = lax.fori_loop(0, t_chunk, step, load_carry(),
                                           unroll=unroll_main)
            h0_sc[...] = h0
            c0_sc[...] = c0
            h1_sc[...] = h1
            c1_sc[...] = c1

        @pl.when(pid == last)
        def _tail():
            h0, c0, h1, c1 = lax.fori_loop(0, t_rem, step, load_carry(),
                                           unroll=unroll_tail)
            # fc on the last timestep's top-layer hidden state (lane-dense cols).
            out_ref[...] = (jnp.dot(h1, w_fc_ref[...],
                                    preferred_element_type=jnp.float32)
                            + b_fc_ref[...]).astype(out_ref.dtype)

    return kernel


@functools.partial(jax.jit, static_argnames=("max_t_chunk",))
def narnet_forward(x, params, max_t_chunk=None):
    """x: (B, T, input_size) float32. Returns (B, output_size) float32."""
    B, T, D = x.shape
    H = HIDDEN
    G = 4 * H
    O = params["w_fc"].shape[1]
    O_pad = int(pl.cdiv(O, 128)) * 128        # lane-dense output columns
    B_pad = int(pl.cdiv(B, 8)) * 8            # sublane-aligned batch

    if B_pad != B:
        x = jnp.pad(x, ((0, B_pad - B), (0, 0), (0, 0)))

    # Hoisted, non-recurrent input projection for ALL timesteps (one matmul),
    # emitted time-major with b0 = b_ih0 + b_hh0 folded in, stored in bf16
    # (halves the only T*B-scaled HBM/VMEM traffic).
    xproj = (jnp.einsum("btd,dg->tbg", x, params["w_ih0"])
             + params["b0"]).astype(jnp.bfloat16)          # (T, B_pad, 4H)

    # Chunk the time axis so the streamed xproj tile (double-buffered) stays
    # well under the scoped-VMEM limit on every generation (v7x: 64 MiB total).
    bytes_per_step = B_pad * G * 2                           # bf16
    budget = 8 * 1024 * 1024                                 # per xproj buffer
    t_chunk = max(1, min(T, budget // bytes_per_step))
    if max_t_chunk is not None:
        t_chunk = max(1, min(t_chunk, max_t_chunk))
    n_chunks = int(pl.cdiv(T, t_chunk))
    t_rem = T - (n_chunks - 1) * t_chunk                     # static tail length
    T_pad = n_chunks * t_chunk
    if T_pad != T:
        # Padded timesteps are never processed (tail loop runs t_rem steps).
        xproj = jnp.pad(xproj, ((0, T_pad - T), (0, 0), (0, 0)))

    # bf16 recurrent weights; stack layer-1 input+recurrent weights (K=2H fuse).
    w_hh0 = params["w_hh0"].astype(jnp.bfloat16)
    w_cat1 = jnp.concatenate([params["w_ih1"], params["w_hh1"]],
                             axis=0).astype(jnp.bfloat16)    # (2H, 4H)

    # Pad fc to lane-dense 128 columns (unmasked final store / clean MXU shape).
    w_fc = jnp.pad(params["w_fc"], ((0, 0), (0, O_pad - O)))
    b_fc = jnp.pad(params["b_fc"], ((0, 0), (0, O_pad - O)))

    kernel = _make_kernel(t_chunk, t_rem, B_pad, H)

    def full(shape):
        return pl.BlockSpec(shape, lambda t, s=shape: (0,) * len(s))

    out_pad = pl.pallas_call(
        kernel,
        out_shape=jax.ShapeDtypeStruct((B_pad, O_pad), jnp.float32),
        grid=(n_chunks,),
        in_specs=[
            pl.BlockSpec((t_chunk, B_pad, G), lambda t: (t, 0, 0)),  # streamed
            full(w_hh0.shape),
            full(w_cat1.shape),
            full(params["b1"].shape),
            full(w_fc.shape),
            full(b_fc.shape),
        ],
        out_specs=pl.BlockSpec((B_pad, O_pad), lambda t: (0, 0)),
        scratch_shapes=[pltpu.VMEM((B_pad, H), jnp.float32) for _ in range(4)],
        compiler_params=pltpu.CompilerParams(
            dimension_semantics=("arbitrary",),       # recurrence is sequential
            vmem_limit_bytes=32 * 1024 * 1024,
        ),
    )(xproj, w_hh0, w_cat1, params["b1"], w_fc, b_fc)
    return out_pad[:B, :O]


def init_params(key, input_size, hidden_size, output_size):
    """PyTorch-style uniform(-1/sqrt(H), 1/sqrt(H)) init.
    Weights stored transposed (in_features, 4H)/(H, 4H)/(H, O); biases pre-summed."""
    H = hidden_size
    k = 1.0 / jnp.sqrt(jnp.float32(H))
    keys = jax.random.split(key, 10)

    def u(kk, shape):
        return jax.random.uniform(kk, shape, jnp.float32, -k, k)

    return {
        "w_ih0": u(keys[0], (input_size, 4 * H)),
        "w_hh0": u(keys[1], (H, 4 * H)),
        "b0":    u(keys[2], (1, 4 * H)) + u(keys[3], (1, 4 * H)),   # b_ih0 + b_hh0
        "w_ih1": u(keys[4], (H, 4 * H)),
        "w_hh1": u(keys[5], (H, 4 * H)),
        "b1":    u(keys[6], (1, 4 * H)) + u(keys[7], (1, 4 * H)),   # b_ih1 + b_hh1
        "w_fc":  u(keys[8], (H, output_size)),
        "b_fc":  u(keys[9], (1, output_size)),
    }


def narnet_reference(x, params, matmul_dtype=jnp.float32):
    """Pure-JAX reference.  matmul_dtype=bf16 mirrors the kernel's casting of the
    input-projection slab and recurrent-matmul operands (f32 accumulation)."""
    B, T, D = x.shape
    H = HIDDEN
    md = matmul_dtype

    # Input projection precomputed exactly like the kernel wrapper.
    xproj = jnp.einsum("btd,dg->tbg", x, params["w_ih0"]) + params["b0"]
    xproj = xproj.astype(md).astype(jnp.float32)    # no-op for f32; quantizes for bf16

    w_hh0 = params["w_hh0"].astype(md)
    w_ih1 = params["w_ih1"].astype(md)
    w_hh1 = params["w_hh1"].astype(md)

    def gates_to_hc(gates, c):
        i = jax.nn.sigmoid(gates[:, 0 * H:1 * H])
        f = jax.nn.sigmoid(gates[:, 1 * H:2 * H])
        g = jnp.tanh(gates[:, 2 * H:3 * H])
        o = jax.nn.sigmoid(gates[:, 3 * H:4 * H])
        c_new = f * c + i * g
        return o * jnp.tanh(c_new), c_new

    def step(carry, xp_t):
        h0, c0, h1, c1 = carry
        g0 = xp_t + jnp.dot(h0.astype(md), w_hh0, preferred_element_type=jnp.float32)
        h0, c0 = gates_to_hc(g0, c0)
        g1 = (jnp.dot(h0.astype(md), w_ih1, preferred_element_type=jnp.float32)
              + jnp.dot(h1.astype(md), w_hh1, preferred_element_type=jnp.float32)
              + params["b1"])
        h1, c1 = gates_to_hc(g1, c1)
        return (h0, c0, h1, c1), None

    z = jnp.zeros((B, H), jnp.float32)
    (h0, c0, h1, c1), _ = lax.scan(step, (z, z, z, z), xproj)
    return h1 @ params["w_fc"] + params["b_fc"]


if __name__ == "__main__":
    input_size, hidden_size, output_size = 8, HIDDEN, 4
    B, T = 8, 8

    key = jax.random.PRNGKey(0)
    kx, kp = jax.random.split(key)
    x = jax.random.normal(kx, (B, T, input_size), jnp.float32)
    params = init_params(kp, input_size, hidden_size, output_size)

    out = jax.block_until_ready(narnet_forward(x, params))
    assert out.shape == (B, output_size)

    # Exercise the multi-chunk streamed-grid path (T=8 split into chunks of 3)
    # and verify it matches the single-chunk path.
    out_chunked = jax.block_until_ready(narnet_forward(x, params, max_t_chunk=3))
    assert jnp.allclose(out, out_chunked, atol=1e-5, rtol=1e-5), \
        "single-chunk vs multi-chunk mismatch"

    # Tight check vs a precision-matched (bf16 slab + bf16 recurrent matmuls) ref.
    ref_bf16 = jax.block_until_ready(narnet_reference(x, params, jnp.bfloat16))
    assert jnp.allclose(out, ref_bf16, atol=2e-3, rtol=2e-3), "mismatch vs bf16-matched ref"

    # Sanity check vs the exact f32 (PyTorch-semantics) reference; looser tol
    # accounts for the bf16 slab / recurrent-matmul operands in the kernel.
    ref_f32 = jax.block_until_ready(narnet_reference(x, params, jnp.float32))
    assert jnp.allclose(out, ref_f32, atol=5e-2, rtol=5e-2), "mismatch vs f32 ref"

    print("KERNEL_OK")
</pallas_src>

<mosaic_0001>
module attributes {stable_mosaic.version = 11 : i64} {
  func.func @kernel(%arg0: i32, %arg1: memref<8x8x512xbf16, #tpu.memory_space<vmem>>, %arg2: memref<128x512xbf16, #tpu.memory_space<vmem>>, %arg3: memref<256x512xbf16, #tpu.memory_space<vmem>>, %arg4: memref<1x512xf32, #tpu.memory_space<vmem>>, %arg5: memref<128x128xf32, #tpu.memory_space<vmem>>, %arg6: memref<1x128xf32, #tpu.memory_space<vmem>>, %arg7: memref<8x128xf32, #tpu.memory_space<vmem>>, %arg8: memref<8x128xf32, #tpu.memory_space<vmem>>, %arg9: memref<8x128xf32, #tpu.memory_space<vmem>>, %arg10: memref<8x128xf32, #tpu.memory_space<vmem>>, %arg11: memref<8x128xf32, #tpu.memory_space<vmem>>) attributes {dimension_semantics = [#tpu.dimension_semantics<arbitrary>], iteration_bounds = array<i64: 1>, scalar_prefetch = 0 : i64, scratch_operands = 4 : i64, tpu.core_type = #tpu.core_type<tc>, window_params = [{transform_indices = @transform_0, window_bounds = array<i64: 8, 8, 512>}, {pipeline_mode = #tpu.pipeline_mode<synchronous>, transform_indices = @transform_1, window_bounds = array<i64: 128, 512>}, {pipeline_mode = #tpu.pipeline_mode<synchronous>, transform_indices = @transform_2, window_bounds = array<i64: 256, 512>}, {pipeline_mode = #tpu.pipeline_mode<synchronous>, transform_indices = @transform_3, window_bounds = array<i64: 1, 512>}, {pipeline_mode = #tpu.pipeline_mode<synchronous>, transform_indices = @transform_4, window_bounds = array<i64: 128, 128>}, {pipeline_mode = #tpu.pipeline_mode<synchronous>, transform_indices = @transform_5, window_bounds = array<i64: 1, 128>}, {pipeline_mode = #tpu.pipeline_mode<synchronous>, transform_indices = @transform_6, window_bounds = array<i64: 8, 128>}]} {
    %c0_i32 = arith.constant 0 : i32
    %0 = arith.cmpi eq, %arg0, %c0_i32 : i32
    %1 = arith.extui %0 : i1 to i32
    %c0_i32_0 = arith.constant 0 : i32
    %2 = arith.cmpi ne, %1, %c0_i32_0 : i32
    scf.if %2 {
      %cst = arith.constant 0.000000e+00 : f32
      %12 = vector.broadcast %cst : f32 to vector<8x128xf32>
      %c0_6 = arith.constant 0 : index
      %c0_7 = arith.constant 0 : index
      %13 = vector.load %arg8[%c0_6, %c0_7] : memref<8x128xf32, #tpu.memory_space<vmem>>, vector<8x128xf32>
      tpu.vector_store %arg8[%c0_6, %c0_7], %12 {strides = array<i32>} : memref<8x128xf32, #tpu.memory_space<vmem>>, vector<8x128xf32>,
      %c0_8 = arith.constant 0 : index
      %c0_9 = arith.constant 0 : index
      %14 = vector.load %arg9[%c0_8, %c0_9] : memref<8x128xf32, #tpu.memory_space<vmem>>, vector<8x128xf32>
      tpu.vector_store %arg9[%c0_8, %c0_9], %12 {strides = array<i32>} : memref<8x128xf32, #tpu.memory_space<vmem>>, vector<8x128xf32>,
      %c0_10 = arith.constant 0 : index
      %c0_11 = arith.constant 0 : index
      %15 = vector.load %arg10[%c0_10, %c0_11] : memref<8x128xf32, #tpu.memory_space<vmem>>, vector<8x128xf32>
      tpu.vector_store %arg10[%c0_10, %c0_11], %12 {strides = array<i32>} : memref<8x128xf32, #tpu.memory_space<vmem>>, vector<8x128xf32>,
      %c0_12 = arith.constant 0 : index
      %c0_13 = arith.constant 0 : index
      %16 = vector.load %arg11[%c0_12, %c0_13] : memref<8x128xf32, #tpu.memory_space<vmem>>, vector<8x128xf32>
      tpu.vector_store %arg11[%c0_12, %c0_13], %12 {strides = array<i32>} : memref<8x128xf32, #tpu.memory_space<vmem>>, vector<8x128xf32>,
    } else {
    }
    %c0 = arith.constant 0 : index
    %c0_1 = arith.constant 0 : index
    %3 = vector.load %arg4[%c0, %c0_1] : memref<1x512xf32, #tpu.memory_space<vmem>>, vector<1x512xf32>
    %4 = vector.shape_cast %3 : vector<1x512xf32> to vector<1x512xf32>
    %5 = vector.broadcast %4 : vector<1x512xf32> to vector<8x512xf32>
    %c0_i32_2 = arith.constant 0 : i32
    %6 = arith.cmpi ne, %arg0, %c0_i32_2 : i32
    %7 = arith.extui %6 : i1 to i32
    %c0_i32_3 = arith.constant 0 : i32
    %8 = arith.cmpi ne, %7, %c0_i32_3 : i32
    scf.if %8 {
      %c0_6 = arith.constant 0 : index
      %c0_7 = arith.constant 0 : index
      %12 = vector.load %arg8[%c0_6, %c0_7] : memref<8x128xf32, #tpu.memory_space<vmem>>, vector<8x128xf32>
      %c0_8 = arith.constant 0 : index
      %c0_9 = arith.constant 0 : index
      %13 = vector.load %arg9[%c0_8, %c0_9] : memref<8x128xf32, #tpu.memory_space<vmem>>, vector<8x128xf32>
      %c0_10 = arith.constant 0 : index
      %c0_11 = arith.constant 0 : index
      %14 = vector.load %arg10[%c0_10, %c0_11] : memref<8x128xf32, #tpu.memory_space<vmem>>, vector<8x128xf32>
      %c0_12 = arith.constant 0 : index
      %c0_13 = arith.constant 0 : index
      %15 = vector.load %arg11[%c0_12, %c0_13] : memref<8x128xf32, #tpu.memory_space<vmem>>, vector<8x128xf32>
      %c0_i32_14 = arith.constant 0 : i32
      %16 = arith.index_cast %c0_i32_14 : i32 to index
      %c0_15 = arith.constant 0 : index
      %c0_16 = arith.constant 0 : index
      %17 = vector.load %arg1[%16, %c0_15, %c0_16] : memref<8x8x512xbf16, #tpu.memory_space<vmem>>, vector<1x8x512xbf16>
      %18 = vector.shape_cast %17 : vector<1x8x512xbf16> to vector<8x512xbf16>
      %19 = arith.extf %18 : vector<8x512xbf16> to vector<8x512xf32>
      %20 = arith.truncf %12 : vector<8x128xf32> to vector<8x128xbf16>
      %c0_17 = arith.constant 0 : index
      %c0_18 = arith.constant 0 : index
      %21 = vector.load %arg2[%c0_17, %c0_18] : memref<128x512xbf16, #tpu.memory_space<vmem>>, vector<128x512xbf16>
      %cst = arith.constant dense<0.000000e+00> : vector<8x512xf32>
      %22 = tpu.matmul %20, %21, %cst {dimension_numbers = #tpu.dot_dimension_numbers<[1], [0], [0], [1], [0, 0, 1, 1], [], []>} : vector<8x128xbf16>, vector<128x512xbf16>, vector<8x512xf32> -> vector<8x512xf32>
      %23 = arith.addf %19, %22 : vector<8x512xf32>
      %24 = vector.extract_strided_slice %23 {offsets = [0, 0], sizes = [8, 128], strides = [1, 1]} : vector<8x512xf32> to vector<8x128xf32>
      %25 = arith.negf %24 : vector<8x128xf32>
      %26 = math.exp %25 : vector<8x128xf32>
      %cst_19 = arith.constant 1.000000e+00 : f32
      %27 = vector.broadcast %cst_19 : f32 to vector<8x128xf32>
      %28 = arith.addf %27, %26 : vector<8x128xf32>
      %29 = arith.divf %27, %28 : vector<8x128xf32>
      %30 = vector.extract_strided_slice %23 {offsets = [0, 128], sizes = [8, 128], strides = [1, 1]} : vector<8x512xf32> to vector<8x128xf32>
      %31 = arith.negf %30 : vector<8x128xf32>
      %32 = math.exp %31 : vector<8x128xf32>
      %cst_20 = arith.constant 1.000000e+00 : f32
      %33 = vector.broadcast %cst_20 : f32 to vector<8x128xf32>
      %34 = arith.addf %33, %32 : vector<8x128xf32>
      %35 = arith.divf %33, %34 : vector<8x128xf32>
      %36 = vector.extract_strided_slice %23 {offsets = [0, 256], sizes = [8, 128], strides = [1, 1]} : vector<8x512xf32> to vector<8x128xf32>
      %37 = math.tanh %36 : vector<8x128xf32>
      %38 = vector.extract_strided_slice %23 {offsets = [0, 384], sizes = [8, 128], strides = [1, 1]} : vector<8x512xf32> to vector<8x128xf32>
      %39 = arith.negf %38 : vector<8x128xf32>
      %40 = math.exp %39 : vector<8x128xf32>
      %cst_21 = arith.constant 1.000000e+00 : f32
      %41 = vector.broadcast %cst_21 : f32 to vector<8x128xf32>
      %42 = arith.addf %41, %40 : vector<8x128xf32>
      %43 = arith.divf %41, %42 : vector<8x128xf32>
      %44 = arith.mulf %35, %13 : vector<8x128xf32>
      %45 = arith.mulf %29, %37 : vector<8x128xf32>
      %46 = arith.addf %44, %45 : vector<8x128xf32>
      %47 = math.tanh %46 : vector<8x128xf32>
      %48 = arith.mulf %43, %47 : vector<8x128xf32>
      %49 = arith.truncf %48 : vector<8x128xf32> to vector<8x128xbf16>
      %50 = arith.truncf %14 : vector<8x128xf32> to vector<8x128xbf16>
      %51 = tpu.concatenate %49, %50 in 1 : vector<8x128xbf16>, vector<8x128xbf16> -> vector<8x256xbf16>
      %c0_22 = arith.constant 0 : index
      %c0_23 = arith.constant 0 : index
      %52 = vector.load %arg3[%c0_22, %c0_23] : memref<256x512xbf16, #tpu.memory_space<vmem>>, vector<256x512xbf16>
      %cst_24 = arith.constant dense<0.000000e+00> : vector<8x512xf32>
      %53 = tpu.matmul %51, %52, %cst_24 {dimension_numbers = #tpu.dot_dimension_numbers<[1], [0], [0], [1], [0, 0, 1, 1], [], []>} : vector<8x256xbf16>, vector<256x512xbf16>, vector<8x512xf32> -> vector<8x512xf32>
      %54 = arith.addf %53, %5 : vector<8x512xf32>
      %55 = vector.extract_strided_slice %54 {offsets = [0, 0], sizes = [8, 128], strides = [1, 1]} : vector<8x512xf32> to vector<8x128xf32>
      %56 = arith.negf %55 : vector<8x128xf32>
      %57 = math.exp %56 : vector<8x128xf32>
      %cst_25 = arith.constant 1.000000e+00 : f32
      %58 = vector.broadcast %cst_25 : f32 to vector<8x128xf32>
      %59 = arith.addf %58, %57 : vector<8x128xf32>
      %60 = arith.divf %58, %59 : vector<8x128xf32>
      %61 = vector.extract_strided_slice %54 {offsets = [0, 128], sizes = [8, 128], strides = [1, 1]} : vector<8x512xf32> to vector<8x128xf32>
      %62 = arith.negf %61 : vector<8x128xf32>
      %63 = math.exp %62 : vector<8x128xf32>
      %cst_26 = arith.constant 1.000000e+00 : f32
      %64 = vector.broadcast %cst_26 : f32 to vector<8x128xf32>
      %65 = arith.addf %64, %63 : vector<8x128xf32>
      %66 = arith.divf %64, %65 : vector<8x128xf32>
      %67 = vector.extract_strided_slice %54 {offsets = [0, 256], sizes = [8, 128], strides = [1, 1]} : vector<8x512xf32> to vector<8x128xf32>
      %68 = math.tanh %67 : vector<8x128xf32>
      %69 = vector.extract_strided_slice %54 {offsets = [0, 384], sizes = [8, 128], strides = [1, 1]} : vector<8x512xf32> to vector<8x128xf32>
      %70 = arith.negf %69 : vector<8x128xf32>
      %71 = math.exp %70 : vector<8x128xf32>
      %cst_27 = arith.constant 1.000000e+00 : f32
      %72 = vector.broadcast %cst_27 : f32 to vector<8x128xf32>
      %73 = arith.addf %72, %71 : vector<8x128xf32>
      %74 = arith.divf %72, %73 : vector<8x128xf32>
      %75 = arith.mulf %66, %15 : vector<8x128xf32>
      %76 = arith.mulf %60, %68 : vector<8x128xf32>
      %77 = arith.addf %75, %76 : vector<8x128xf32>
      %78 = math.tanh %77 : vector<8x128xf32>
      %79 = arith.mulf %74, %78 : vector<8x128xf32>
      %c1_i32 = arith.constant 1 : i32
      %80 = arith.index_cast %c1_i32 : i32 to index
      %c0_28 = arith.constant 0 : index
      %c0_29 = arith.constant 0 : index
      %81 = vector.load %arg1[%80, %c0_28, %c0_29] : memref<8x8x512xbf16, #tpu.memory_space<vmem>>, vector<1x8x512xbf16>
      %82 = vector.shape_cast %81 : vector<1x8x512xbf16> to vector<8x512xbf16>
      %83 = arith.extf %82 : vector<8x512xbf16> to vector<8x512xf32>
      %84 = arith.truncf %48 : vector<8x128xf32> to vector<8x128xbf16>
      %c0_30 = arith.constant 0 : index
      %c0_31 = arith.constant 0 : index
      %85 = vector.load %arg2[%c0_30, %c0_31] : memref<128x512xbf16, #tpu.memory_space<vmem>>, vector<128x512xbf16>
      %cst_32 = arith.constant dense<0.000000e+00> : vector<8x512xf32>
      %86 = tpu.matmul %84, %85, %cst_32 {dimension_numbers = #tpu.dot_dimension_numbers<[1], [0], [0], [1], [0, 0, 1, 1], [], []>} : vector<8x128xbf16>, vector<128x512xbf16>, vector<8x512xf32> -> vector<8x512xf32>
      %87 = arith.addf %83, %86 : vector<8x512xf32>
      %88 = vector.extract_strided_slice %87 {offsets = [0, 0], sizes = [8, 128], strides = [1, 1]} : vector<8x512xf32> to vector<8x128xf32>
      %89 = arith.negf %88 : vector<8x128xf32>
      %90 = math.exp %89 : vector<8x128xf32>
      %cst_33 = arith.constant 1.000000e+00 : f32
      %91 = vector.broadcast %cst_33 : f32 to vector<8x128xf32>
      %92 = arith.addf %91, %90 : vector<8x128xf32>
      %93 = arith.divf %91, %92 : vector<8x128xf32>
      %94 = vector.extract_strided_slice %87 {offsets = [0, 128], sizes = [8, 128], strides = [1, 1]} : vector<8x512xf32> to vector<8x128xf32>
      %95 = arith.negf %94 : vector<8x128xf32>
      %96 = math.exp %95 : vector<8x128xf32>
      %cst_34 = arith.constant 1.000000e+00 : f32
      %97 = vector.broadcast %cst_34 : f32 to vector<8x128xf32>
      %98 = arith.addf %97, %96 : vector<8x128xf32>
      %99 = arith.divf %97, %98 : vector<8x128xf32>
      %100 = vector.extract_strided_slice %87 {offsets = [0, 256], sizes = [8, 128], strides = [1, 1]} : vector<8x512xf32> to vector<8x128xf32>
      %101 = math.tanh %100 : vector<8x128xf32>
      %102 = vector.extract_strided_slice %87 {offsets = [0, 384], sizes = [8, 128], strides = [1, 1]} : vector<8x512xf32> to vector<8x128xf32>
      %103 = arith.negf %102 : vector<8x128xf32>
      %104 = math.exp %103 : vector<8x128xf32>
      %cst_35 = arith.constant 1.000000e+00 : f32
      %105 = vector.broadcast %cst_35 : f32 to vector<8x128xf32>
      %106 = arith.addf %105, %104 : vector<8x128xf32>
      %107 = arith.divf %105, %106 : vector<8x128xf32>
      %108 = arith.mulf %99, %46 : vector<8x128xf32>
      %109 = arith.mulf %93, %101 : vector<8x128xf32>
      %110 = arith.addf %108, %109 : vector<8x128xf32>
      %111 = math.tanh %110 : vector<8x128xf32>
      %112 = arith.mulf %107, %111 : vector<8x128xf32>
      %113 = arith.truncf %112 : vector<8x128xf32> to vector<8x128xbf16>
      %114 = arith.truncf %79 : vector<8x128xf32> to vector<8x128xbf16>
      %115 = tpu.concatenate %113, %114 in 1 : vector<8x128xbf16>, vector<8x128xbf16> -> vector<8x256xbf16>
      %c0_36 = arith.constant 0 : index
      %c0_37 = arith.constant 0 : index
      %116 = vector.load %arg3[%c0_36, %c0_37] : memref<256x512xbf16, #tpu.memory_space<vmem>>, vector<256x512xbf16>
      %cst_38 = arith.constant dense<0.000000e+00> : vector<8x512xf32>
      %117 = tpu.matmul %115, %116, %cst_38 {dimension_numbers = #tpu.dot_dimension_numbers<[1], [0], [0], [1], [0, 0, 1, 1], [], []>} : vector<8x256xbf16>, vector<256x512xbf16>, vector<8x512xf32> -> vector<8x512xf32>
      %118 = arith.addf %117, %5 : vector<8x512xf32>
      %119 = vector.extract_strided_slice %118 {offsets = [0, 0], sizes = [8, 128], strides = [1, 1]} : vector<8x512xf32> to vector<8x128xf32>
      %120 = arith.negf %119 : vector<8x128xf32>
      %121 = math.exp %120 : vector<8x128xf32>
      %cst_39 = arith.constant 1.000000e+00 : f32
      %122 = vector.broadcast %cst_39 : f32 to vector<8x128xf32>
      %123 = arith.addf %122, %121 : vector<8x128xf32>
      %124 = arith.divf %122, %123 : vector<8x128xf32>
      %125 = vector.extract_strided_slice %118 {offsets = [0, 128], sizes = [8, 128], strides = [1, 1]} : vector<8x512xf32> to vector<8x128xf32>
      %126 = arith.negf %125 : vector<8x128xf32>
      %127 = math.exp %126 : vector<8x128xf32>
      %cst_40 = arith.constant 1.000000e+00 : f32
      %128 = vector.broadcast %cst_40 : f32 to vector<8x128xf32>
      %129 = arith.addf %128, %127 : vector<8x128xf32>
      %130 = arith.divf %128, %129 : vector<8x128xf32>
      %131 = vector.extract_strided_slice %118 {offsets = [0, 256], sizes = [8, 128], strides = [1, 1]} : vector<8x512xf32> to vector<8x128xf32>
      %132 = math.tanh %131 : vector<8x128xf32>
      %133 = vector.extract_strided_slice %118 {offsets = [0, 384], sizes = [8, 128], strides = [1, 1]} : vector<8x512xf32> to vector<8x128xf32>
      %134 = arith.negf %133 : vector<8x128xf32>
      %135 = math.exp %134 : vector<8x128xf32>
      %cst_41 = arith.constant 1.000000e+00 : f32
      %136 = vector.broadcast %cst_41 : f32 to vector<8x128xf32>
      %137 = arith.addf %136, %135 : vector<8x128xf32>
      %138 = arith.divf %136, %137 : vector<8x128xf32>
      %139 = arith.mulf %130, %77 : vector<8x128xf32>
      %140 = arith.mulf %124, %132 : vector<8x128xf32>
      %141 = arith.addf %139, %140 : vector<8x128xf32>
      %142 = math.tanh %141 : vector<8x128xf32>
      %143 = arith.mulf %138, %142 : vector<8x128xf32>
      %c2_i32 = arith.constant 2 : i32
      %144 = arith.index_cast %c2_i32 : i32 to index
      %c0_42 = arith.constant 0 : index
      %c0_43 = arith.constant 0 : index
      %145 = vector.load %arg1[%144, %c0_42, %c0_43] : memref<8x8x512xbf16, #tpu.memory_space<vmem>>, vector<1x8x512xbf16>
      %146 = vector.shape_cast %145 : vector<1x8x512xbf16> to vector<8x512xbf16>
      %147 = arith.extf %146 : vector<8x512xbf16> to vector<8x512xf32>
      %148 = arith.truncf %112 : vector<8x128xf32> to vector<8x128xbf16>
      %c0_44 = arith.constant 0 : index
      %c0_45 = arith.constant 0 : index
      %149 = vector.load %arg2[%c0_44, %c0_45] : memref<128x512xbf16, #tpu.memory_space<vmem>>, vector<128x512xbf16>
      %cst_46 = arith.constant dense<0.000000e+00> : vector<8x512xf32>
      %150 = tpu.matmul %148, %149, %cst_46 {dimension_numbers = #tpu.dot_dimension_numbers<[1], [0], [0], [1], [0, 0, 1, 1], [], []>} : vector<8x128xbf16>, vector<128x512xbf16>, vector<8x512xf32> -> vector<8x512xf32>
      %151 = arith.addf %147, %150 : vector<8x512xf32>
      %152 = vector.extract_strided_slice %151 {offsets = [0, 0], sizes = [8, 128], strides = [1, 1]} : vector<8x512xf32> to vector<8x128xf32>
      %153 = arith.negf %152 : vector<8x128xf32>
      %154 = math.exp %153 : vector<8x128xf32>
      %cst_47 = arith.constant 1.000000e+00 : f32
      %155 = vector.broadcast %cst_47 : f32 to vector<8x128xf32>
      %156 = arith.addf %155, %154 : vector<8x128xf32>
      %157 = arith.divf %155, %156 : vector<8x128xf32>
      %158 = vector.extract_strided_slice %151 {offsets = [0, 128], sizes = [8, 128], strides = [1, 1]} : vector<8x512xf32> to vector<8x128xf32>
      %159 = arith.negf %158 : vector<8x128xf32>
      %160 = math.exp %159 : vector<8x128xf32>
      %cst_48 = arith.constant 1.000000e+00 : f32
      %161 = vector.broadcast %cst_48 : f32 to vector<8x128xf32>
      %162 = arith.addf %161, %160 : vector<8x128xf32>
      %163 = arith.divf %161, %162 : vector<8x128xf32>
      %164 = vector.extract_strided_slice %151 {offsets = [0, 256], sizes = [8, 128], strides = [1, 1]} : vector<8x512xf32> to vector<8x128xf32>
      %165 = math.tanh %164 : vector<8x128xf32>
      %166 = vector.extract_strided_slice %151 {offsets = [0, 384], sizes = [8, 128], strides = [1, 1]} : vector<8x512xf32> to vector<8x128xf32>
      %167 = arith.negf %166 : vector<8x128xf32>
      %168 = math.exp %167 : vector<8x128xf32>
      %cst_49 = arith.constant 1.000000e+00 : f32
      %169 = vector.broadcast %cst_49 : f32 to vector<8x128xf32>
      %170 = arith.addf %169, %168 : vector<8x128xf32>
      %171 = arith.divf %169, %170 : vector<8x128xf32>
      %172 = arith.mulf %163, %110 : vector<8x128xf32>
      %173 = arith.mulf %157, %165 : vector<8x128xf32>
      %174 = arith.addf %172, %173 : vector<8x128xf32>
      %175 = math.tanh %174 : vector<8x128xf32>
      %176 = arith.mulf %171, %175 : vector<8x128xf32>
      %177 = arith.truncf %176 : vector<8x128xf32> to vector<8x128xbf16>
      %178 = arith.truncf %143 : vector<8x128xf32> to vector<8x128xbf16>
      %179 = tpu.concatenate %177, %178 in 1 : vector<8x128xbf16>, vector<8x128xbf16> -> vector<8x256xbf16>
      %c0_50 = arith.constant 0 : index
      %c0_51 = arith.constant 0 : index
      %180 = vector.load %arg3[%c0_50, %c0_51] : memref<256x512xbf16, #tpu.memory_space<vmem>>, vector<256x512xbf16>
      %cst_52 = arith.constant dense<0.000000e+00> : vector<8x512xf32>
      %181 = tpu.matmul %179, %180, %cst_52 {dimension_numbers = #tpu.dot_dimension_numbers<[1], [0], [0], [1], [0, 0, 1, 1], [], []>} : vector<8x256xbf16>, vector<256x512xbf16>, vector<8x512xf32> -> vector<8x512xf32>
      %182 = arith.addf %181, %5 : vector<8x512xf32>
      %183 = vector.extract_strided_slice %182 {offsets = [0, 0], sizes = [8, 128], strides = [1, 1]} : vector<8x512xf32> to vector<8x128xf32>
      %184 = arith.negf %183 : vector<8x128xf32>
      %185 = math.exp %184 : vector<8x128xf32>
      %cst_53 = arith.constant 1.000000e+00 : f32
      %186 = vector.broadcast %cst_53 : f32 to vector<8x128xf32>
      %187 = arith.addf %186, %185 : vector<8x128xf32>
      %188 = arith.divf %186, %187 : vector<8x128xf32>
      %189 = vector.extract_strided_slice %182 {offsets = [0, 128], sizes = [8, 128], strides = [1, 1]} : vector<8x512xf32> to vector<8x128xf32>
      %190 = arith.negf %189 : vector<8x128xf32>
      %191 = math.exp %190 : vector<8x128xf32>
      %cst_54 = arith.constant 1.000000e+00 : f32
      %192 = vector.broadcast %cst_54 : f32 to vector<8x128xf32>
      %193 = arith.addf %192, %191 : vector<8x128xf32>
      %194 = arith.divf %192, %193 : vector<8x128xf32>
      %195 = vector.extract_strided_slice %182 {offsets = [0, 256], sizes = [8, 128], strides = [1, 1]} : vector<8x512xf32> to vector<8x128xf32>
      %196 = math.tanh %195 : vector<8x128xf32>
      %197 = vector.extract_strided_slice %182 {offsets = [0, 384], sizes = [8, 128], strides = [1, 1]} : vector<8x512xf32> to vector<8x128xf32>
      %198 = arith.negf %197 : vector<8x128xf32>
      %199 = math.exp %198 : vector<8x128xf32>
      %cst_55 = arith.constant 1.000000e+00 : f32
      %200 = vector.broadcast %cst_55 : f32 to vector<8x128xf32>
      %201 = arith.addf %200, %199 : vector<8x128xf32>
      %202 = arith.divf %200, %201 : vector<8x128xf32>
      %203 = arith.mulf %194, %141 : vector<8x128xf32>
      %204 = arith.mulf %188, %196 : vector<8x128xf32>
      %205 = arith.addf %203, %204 : vector<8x128xf32>
      %206 = math.tanh %205 : vector<8x128xf32>
      %207 = arith.mulf %202, %206 : vector<8x128xf32>
      %c3_i32 = arith.constant 3 : i32
      %208 = arith.index_cast %c3_i32 : i32 to index
      %c0_56 = arith.constant 0 : index
      %c0_57 = arith.constant 0 : index
      %209 = vector.load %arg1[%208, %c0_56, %c0_57] : memref<8x8x512xbf16, #tpu.memory_space<vmem>>, vector<1x8x512xbf16>
      %210 = vector.shape_cast %209 : vector<1x8x512xbf16> to vector<8x512xbf16>
      %211 = arith.extf %210 : vector<8x512xbf16> to vector<8x512xf32>
      %212 = arith.truncf %176 : vector<8x128xf32> to vector<8x128xbf16>
      %c0_58 = arith.constant 0 : index
      %c0_59 = arith.constant 0 : index
      %213 = vector.load %arg2[%c0_58, %c0_59] : memref<128x512xbf16, #tpu.memory_space<vmem>>, vector<128x512xbf16>
      %cst_60 = arith.constant dense<0.000000e+00> : vector<8x512xf32>
      %214 = tpu.matmul %212, %213, %cst_60 {dimension_numbers = #tpu.dot_dimension_numbers<[1], [0], [0], [1], [0, 0, 1, 1], [], []>} : vector<8x128xbf16>, vector<128x512xbf16>, vector<8x512xf32> -> vector<8x512xf32>
      %215 = arith.addf %211, %214 : vector<8x512xf32>
      %216 = vector.extract_strided_slice %215 {offsets = [0, 0], sizes = [8, 128], strides = [1, 1]} : vector<8x512xf32> to vector<8x128xf32>
      %217 = arith.negf %216 : vector<8x128xf32>
      %218 = math.exp %217 : vector<8x128xf32>
      %cst_61 = arith.constant 1.000000e+00 : f32
      %219 = vector.broadcast %cst_61 : f32 to vector<8x128xf32>
      %220 = arith.addf %219, %218 : vector<8x128xf32>
      %221 = arith.divf %219, %220 : vector<8x128xf32>
      %222 = vector.extract_strided_slice %215 {offsets = [0, 128], sizes = [8, 128], strides = [1, 1]} : vector<8x512xf32> to vector<8x128xf32>
      %223 = arith.negf %222 : vector<8x128xf32>
      %224 = math.exp %223 : vector<8x128xf32>
      %cst_62 = arith.constant 1.000000e+00 : f32
      %225 = vector.broadcast %cst_62 : f32 to vector<8x128xf32>
      %226 = arith.addf %225, %224 : vector<8x128xf32>
      %227 = arith.divf %225, %226 : vector<8x128xf32>
      %228 = vector.extract_strided_slice %215 {offsets = [0, 256], sizes = [8, 128], strides = [1, 1]} : vector<8x512xf32> to vector<8x128xf32>
      %229 = math.tanh %228 : vector<8x128xf32>
      %230 = vector.extract_strided_slice %215 {offsets = [0, 384], sizes = [8, 128], strides = [1, 1]} : vector<8x512xf32> to vector<8x128xf32>
      %231 = arith.negf %230 : vector<8x128xf32>
      %232 = math.exp %231 : vector<8x128xf32>
      %cst_63 = arith.constant 1.000000e+00 : f32
      %233 = vector.broadcast %cst_63 : f32 to vector<8x128xf32>
      %234 = arith.addf %233, %232 : vector<8x128xf32>
      %235 = arith.divf %233, %234 : vector<8x128xf32>
      %236 = arith.mulf %227, %174 : vector<8x128xf32>
      %237 = arith.mulf %221, %229 : vector<8x128xf32>
      %238 = arith.addf %236, %237 : vector<8x128xf32>
      %239 = math.tanh %238 : vector<8x128xf32>
      %240 = arith.mulf %235, %239 : vector<8x128xf32>
      %241 = arith.truncf %240 : vector<8x128xf32> to vector<8x128xbf16>
      %242 = arith.truncf %207 : vector<8x128xf32> to vector<8x128xbf16>
      %243 = tpu.concatenate %241, %242 in 1 : vector<8x128xbf16>, vector<8x128xbf16> -> vector<8x256xbf16>
      %c0_64 = arith.constant 0 : index
      %c0_65 = arith.constant 0 : index
      %244 = vector.load %arg3[%c0_64, %c0_65] : memref<256x512xbf16, #tpu.memory_space<vmem>>, vector<256x512xbf16>
      %cst_66 = arith.constant dense<0.000000e+00> : vector<8x512xf32>
      %245 = tpu.matmul %243, %244, %cst_66 {dimension_numbers = #tpu.dot_dimension_numbers<[1], [0], [0], [1], [0, 0, 1, 1], [], []>} : vector<8x256xbf16>, vector<256x512xbf16>, vector<8x512xf32> -> vector<8x512xf32>
      %246 = arith.addf %245, %5 : vector<8x512xf32>
      %247 = vector.extract_strided_slice %246 {offsets = [0, 0], sizes = [8, 128], strides = [1, 1]} : vector<8x512xf32> to vector<8x128xf32>
      %248 = arith.negf %247 : vector<8x128xf32>
      %249 = math.exp %248 : vector<8x128xf32>
      %cst_67 = arith.constant 1.000000e+00 : f32
      %250 = vector.broadcast %cst_67 : f32 to vector<8x128xf32>
      %251 = arith.addf %250, %249 : vector<8x128xf32>
      %252 = arith.divf %250, %251 : vector<8x128xf32>
      %253 = vector.extract_strided_slice %246 {offsets = [0, 128], sizes = [8, 128], strides = [1, 1]} : vector<8x512xf32> to vector<8x128xf32>
      %254 = arith.negf %253 : vector<8x128xf32>
      %255 = math.exp %254 : vector<8x128xf32>
      %cst_68 = arith.constant 1.000000e+00 : f32
      %256 = vector.broadcast %cst_68 : f32 to vector<8x128xf32>
      %257 = arith.addf %256, %255 : vector<8x128xf32>
      %258 = arith.divf %256, %257 : vector<8x128xf32>
      %259 = vector.extract_strided_slice %246 {offsets = [0, 256], sizes = [8, 128], strides = [1, 1]} : vector<8x512xf32> to vector<8x128xf32>
      %260 = math.tanh %259 : vector<8x128xf32>
      %261 = vector.extract_strided_slice %246 {offsets = [0, 384], sizes = [8, 128], strides = [1, 1]} : vector<8x512xf32> to vector<8x128xf32>
      %262 = arith.negf %261 : vector<8x128xf32>
      %263 = math.exp %262 : vector<8x128xf32>
      %cst_69 = arith.constant 1.000000e+00 : f32
      %264 = vector.broadcast %cst_69 : f32 to vector<8x128xf32>
      %265 = arith.addf %264, %263 : vector<8x128xf32>
      %266 = arith.divf %264, %265 : vector<8x128xf32>
      %267 = arith.mulf %258, %205 : vector<8x128xf32>
      %268 = arith.mulf %252, %260 : vector<8x128xf32>
      %269 = arith.addf %267, %268 : vector<8x128xf32>
      %270 = math.tanh %269 : vector<8x128xf32>
      %271 = arith.mulf %266, %270 : vector<8x128xf32>
      %c4_i32 = arith.constant 4 : i32
      %272 = arith.index_cast %c4_i32 : i32 to index
      %c0_70 = arith.constant 0 : index
      %c0_71 = arith.constant 0 : index
      %273 = vector.load %arg1[%272, %c0_70, %c0_71] : memref<8x8x512xbf16, #tpu.memory_space<vmem>>, vector<1x8x512xbf16>
      %274 = vector.shape_cast %273 : vector<1x8x512xbf16> to vector<8x512xbf16>
      %275 = arith.extf %274 : vector<8x512xbf16> to vector<8x512xf32>
      %276 = arith.truncf %240 : vector<8x128xf32> to vector<8x128xbf16>
      %c0_72 = arith.constant 0 : index
      %c0_73 = arith.constant 0 : index
      %277 = vector.load %arg2[%c0_72, %c0_73] : memref<128x512xbf16, #tpu.memory_space<vmem>>, vector<128x512xbf16>
      %cst_74 = arith.constant dense<0.000000e+00> : vector<8x512xf32>
      %278 = tpu.matmul %276, %277, %cst_74 {dimension_numbers = #tpu.dot_dimension_numbers<[1], [0], [0], [1], [0, 0, 1, 1], [], []>} : vector<8x128xbf16>, vector<128x512xbf16>, vector<8x512xf32> -> vector<8x512xf32>
      %279 = arith.addf %275, %278 : vector<8x512xf32>
      %280 = vector.extract_strided_slice %279 {offsets = [0, 0], sizes = [8, 128], strides = [1, 1]} : vector<8x512xf32> to vector<8x128xf32>
      %281 = arith.negf %280 : vector<8x128xf32>
      %282 = math.exp %281 : vector<8x128xf32>
      %cst_75 = arith.constant 1.000000e+00 : f32
      %283 = vector.broadcast %cst_75 : f32 to vector<8x128xf32>
      %284 = arith.addf %283, %282 : vector<8x128xf32>
      %285 = arith.divf %283, %284 : vector<8x128xf32>
      %286 = vector.extract_strided_slice %279 {offsets = [0, 128], sizes = [8, 128], strides = [1, 1]} : vector<8x512xf32> to vector<8x128xf32>
      %287 = arith.negf %286 : vector<8x128xf32>
      %288 = math.exp %287 : vector<8x128xf32>
      %cst_76 = arith.constant 1.000000e+00 : f32
      %289 = vector.broadcast %cst_76 : f32 to vector<8x128xf32>
      %290 = arith.addf %289, %288 : vector<8x128xf32>
      %291 = arith.divf %289, %290 : vector<8x128xf32>
      %292 = vector.extract_strided_slice %279 {offsets = [0, 256], sizes = [8, 128], strides = [1, 1]} : vector<8x512xf32> to vector<8x128xf32>
      %293 = math.tanh %292 : vector<8x128xf32>
      %294 = vector.extract_strided_slice %279 {offsets = [0, 384], sizes = [8, 128], strides = [1, 1]} : vector<8x512xf32> to vector<8x128xf32>
      %295 = arith.negf %294 : vector<8x128xf32>
      %296 = math.exp %295 : vector<8x128xf32>
      %cst_77 = arith.constant 1.000000e+00 : f32
      %297 = vector.broadcast %cst_77 : f32 to vector<8x128xf32>
      %298 = arith.addf %297, %296 : vector<8x128xf32>
      %299 = arith.divf %297, %298 : vector<8x128xf32>
      %300 = arith.mulf %291, %238 : vector<8x128xf32>
      %301 = arith.mulf %285, %293 : vector<8x128xf32>
      %302 = arith.addf %300, %301 : vector<8x128xf32>
      %303 = math.tanh %302 : vector<8x128xf32>
      %304 = arith.mulf %299, %303 : vector<8x128xf32>
      %305 = arith.truncf %304 : vector<8x128xf32> to vector<8x128xbf16>
      %306 = arith.truncf %271 : vector<8x128xf32> to vector<8x128xbf16>
      %307 = tpu.concatenate %305, %306 in 1 : vector<8x128xbf16>, vector<8x128xbf16> -> vector<8x256xbf16>
      %c0_78 = arith.constant 0 : index
      %c0_79 = arith.constant 0 : index
      %308 = vector.load %arg3[%c0_78, %c0_79] : memref<256x512xbf16, #tpu.memory_space<vmem>>, vector<256x512xbf16>
      %cst_80 = arith.constant dense<0.000000e+00> : vector<8x512xf32>
      %309 = tpu.matmul %307, %308, %cst_80 {dimension_numbers = #tpu.dot_dimension_numbers<[1], [0], [0], [1], [0, 0, 1, 1], [], []>} : vector<8x256xbf16>, vector<256x512xbf16>, vector<8x512xf32> -> vector<8x512xf32>
      %310 = arith.addf %309, %5 : vector<8x512xf32>
      %311 = vector.extract_strided_slice %310 {offsets = [0, 0], sizes = [8, 128], strides = [1, 1]} : vector<8x512xf32> to vector<8x128xf32>
      %312 = arith.negf %311 : vector<8x128xf32>
      %313 = math.exp %312 : vector<8x128xf32>
      %cst_81 = arith.constant 1.000000e+00 : f32
      %314 = vector.broadcast %cst_81 : f32 to vector<8x128xf32>
      %315 = arith.addf %314, %313 : vector<8x128xf32>
      %316 = arith.divf %314, %315 : vector<8x128xf32>
      %317 = vector.extract_strided_slice %310 {offsets = [0, 128], sizes = [8, 128], strides = [1, 1]} : vector<8x512xf32> to vector<8x128xf32>
      %318 = arith.negf %317 : vector<8x128xf32>
      %319 = math.exp %318 : vector<8x128xf32>
      %cst_82 = arith.constant 1.000000e+00 : f32
      %320 = vector.broadcast %cst_82 : f32 to vector<8x128xf32>
      %321 = arith.addf %320, %319 : vector<8x128xf32>
      %322 = arith.divf %320, %321 : vector<8x128xf32>
      %323 = vector.extract_strided_slice %310 {offsets = [0, 256], sizes = [8, 128], strides = [1, 1]} : vector<8x512xf32> to vector<8x128xf32>
      %324 = math.tanh %323 : vector<8x128xf32>
      %325 = vector.extract_strided_slice %310 {offsets = [0, 384], sizes = [8, 128], strides = [1, 1]} : vector<8x512xf32> to vector<8x128xf32>
      %326 = arith.negf %325 : vector<8x128xf32>
      %327 = math.exp %326 : vector<8x128xf32>
      %cst_83 = arith.constant 1.000000e+00 : f32
      %328 = vector.broadcast %cst_83 : f32 to vector<8x128xf32>
      %329 = arith.addf %328, %327 : vector<8x128xf32>
      %330 = arith.divf %328, %329 : vector<8x128xf32>
      %331 = arith.mulf %322, %269 : vector<8x128xf32>
      %332 = arith.mulf %316, %324 : vector<8x128xf32>
      %333 = arith.addf %331, %332 : vector<8x128xf32>
      %334 = math.tanh %333 : vector<8x128xf32>
      %335 = arith.mulf %330, %334 : vector<8x128xf32>
      %c5_i32 = arith.constant 5 : i32
      %336 = arith.index_cast %c5_i32 : i32 to index
      %c0_84 = arith.constant 0 : index
      %c0_85 = arith.constant 0 : index
      %337 = vector.load %arg1[%336, %c0_84, %c0_85] : memref<8x8x512xbf16, #tpu.memory_space<vmem>>, vector<1x8x512xbf16>
      %338 = vector.shape_cast %337 : vector<1x8x512xbf16> to vector<8x512xbf16>
      %339 = arith.extf %338 : vector<8x512xbf16> to vector<8x512xf32>
      %340 = arith.truncf %304 : vector<8x128xf32> to vector<8x128xbf16>
      %c0_86 = arith.constant 0 : index
      %c0_87 = arith.constant 0 : index
      %341 = vector.load %arg2[%c0_86, %c0_87] : memref<128x512xbf16, #tpu.memory_space<vmem>>, vector<128x512xbf16>
      %cst_88 = arith.constant dense<0.000000e+00> : vector<8x512xf32>
      %342 = tpu.matmul %340, %341, %cst_88 {dimension_numbers = #tpu.dot_dimension_numbers<[1], [0], [0], [1], [0, 0, 1, 1], [], []>} : vector<8x128xbf16>, vector<128x512xbf16>, vector<8x512xf32> -> vector<8x512xf32>
      %343 = arith.addf %339, %342 : vector<8x512xf32>
      %344 = vector.extract_strided_slice %343 {offsets = [0, 0], sizes = [8, 128], strides = [1, 1]} : vector<8x512xf32> to vector<8x128xf32>
      %345 = arith.negf %344 : vector<8x128xf32>
      %346 = math.exp %345 : vector<8x128xf32>
      %cst_89 = arith.constant 1.000000e+00 : f32
      %347 = vector.broadcast %cst_89 : f32 to vector<8x128xf32>
      %348 = arith.addf %347, %346 : vector<8x128xf32>
      %349 = arith.divf %347, %348 : vector<8x128xf32>
      %350 = vector.extract_strided_slice %343 {offsets = [0, 128], sizes = [8, 128], strides = [1, 1]} : vector<8x512xf32> to vector<8x128xf32>
      %351 = arith.negf %350 : vector<8x128xf32>
      %352 = math.exp %351 : vector<8x128xf32>
      %cst_90 = arith.constant 1.000000e+00 : f32
      %353 = vector.broadcast %cst_90 : f32 to vector<8x128xf32>
      %354 = arith.addf %353, %352 : vector<8x128xf32>
      %355 = arith.divf %353, %354 : vector<8x128xf32>
      %356 = vector.extract_strided_slice %343 {offsets = [0, 256], sizes = [8, 128], strides = [1, 1]} : vector<8x512xf32> to vector<8x128xf32>
      %357 = math.tanh %356 : vector<8x128xf32>
      %358 = vector.extract_strided_slice %343 {offsets = [0, 384], sizes = [8, 128], strides = [1, 1]} : vector<8x512xf32> to vector<8x128xf32>
      %359 = arith.negf %358 : vector<8x128xf32>
      %360 = math.exp %359 : vector<8x128xf32>
      %cst_91 = arith.constant 1.000000e+00 : f32
      %361 = vector.broadcast %cst_91 : f32 to vector<8x128xf32>
      %362 = arith.addf %361, %360 : vector<8x128xf32>
      %363 = arith.divf %361, %362 : vector<8x128xf32>
      %364 = arith.mulf %355, %302 : vector<8x128xf32>
      %365 = arith.mulf %349, %357 : vector<8x128xf32>
      %366 = arith.addf %364, %365 : vector<8x128xf32>
      %367 = math.tanh %366 : vector<8x128xf32>
      %368 = arith.mulf %363, %367 : vector<8x128xf32>
      %369 = arith.truncf %368 : vector<8x128xf32> to vector<8x128xbf16>
      %370 = arith.truncf %335 : vector<8x128xf32> to vector<8x128xbf16>
      %371 = tpu.concatenate %369, %370 in 1 : vector<8x128xbf16>, vector<8x128xbf16> -> vector<8x256xbf16>
      %c0_92 = arith.constant 0 : index
      %c0_93 = arith.constant 0 : index
      %372 = vector.load %arg3[%c0_92, %c0_93] : memref<256x512xbf16, #tpu.memory_space<vmem>>, vector<256x512xbf16>
      %cst_94 = arith.constant dense<0.000000e+00> : vector<8x512xf32>
      %373 = tpu.matmul %371, %372, %cst_94 {dimension_numbers = #tpu.dot_dimension_numbers<[1], [0], [0], [1], [0, 0, 1, 1], [], []>} : vector<8x256xbf16>, vector<256x512xbf16>, vector<8x512xf32> -> vector<8x512xf32>
      %374 = arith.addf %373, %5 : vector<8x512xf32>
      %375 = vector.extract_strided_slice %374 {offsets = [0, 0], sizes = [8, 128], strides = [1, 1]} : vector<8x512xf32> to vector<8x128xf32>
      %376 = arith.negf %375 : vector<8x128xf32>
      %377 = math.exp %376 : vector<8x128xf32>
      %cst_95 = arith.constant 1.000000e+00 : f32
      %378 = vector.broadcast %cst_95 : f32 to vector<8x128xf32>
      %379 = arith.addf %378, %377 : vector<8x128xf32>
      %380 = arith.divf %378, %379 : vector<8x128xf32>
      %381 = vector.extract_strided_slice %374 {offsets = [0, 128], sizes = [8, 128], strides = [1, 1]} : vector<8x512xf32> to vector<8x128xf32>
      %382 = arith.negf %381 : vector<8x128xf32>
      %383 = math.exp %382 : vector<8x128xf32>
      %cst_96 = arith.constant 1.000000e+00 : f32
      %384 = vector.broadcast %cst_96 : f32 to vector<8x128xf32>
      %385 = arith.addf %384, %383 : vector<8x128xf32>
      %386 = arith.divf %384, %385 : vector<8x128xf32>
      %387 = vector.extract_strided_slice %374 {offsets = [0, 256], sizes = [8, 128], strides = [1, 1]} : vector<8x512xf32> to vector<8x128xf32>
      %388 = math.tanh %387 : vector<8x128xf32>
      %389 = vector.extract_strided_slice %374 {offsets = [0, 384], sizes = [8, 128], strides = [1, 1]} : vector<8x512xf32> to vector<8x128xf32>
      %390 = arith.negf %389 : vector<8x128xf32>
      %391 = math.exp %390 : vector<8x128xf32>
      %cst_97 = arith.constant 1.000000e+00 : f32
      %392 = vector.broadcast %cst_97 : f32 to vector<8x128xf32>
      %393 = arith.addf %392, %391 : vector<8x128xf32>
      %394 = arith.divf %392, %393 : vector<8x128xf32>
      %395 = arith.mulf %386, %333 : vector<8x128xf32>
      %396 = arith.mulf %380, %388 : vector<8x128xf32>
      %397 = arith.addf %395, %396 : vector<8x128xf32>
      %398 = math.tanh %397 : vector<8x128xf32>
      %399 = arith.mulf %394, %398 : vector<8x128xf32>
      %c6_i32 = arith.constant 6 : i32
      %400 = arith.index_cast %c6_i32 : i32 to index
      %c0_98 = arith.constant 0 : index
      %c0_99 = arith.constant 0 : index
      %401 = vector.load %arg1[%400, %c0_98, %c0_99] : memref<8x8x512xbf16, #tpu.memory_space<vmem>>, vector<1x8x512xbf16>
      %402 = vector.shape_cast %401 : vector<1x8x512xbf16> to vector<8x512xbf16>
      %403 = arith.extf %402 : vector<8x512xbf16> to vector<8x512xf32>
      %404 = arith.truncf %368 : vector<8x128xf32> to vector<8x128xbf16>
      %c0_100 = arith.constant 0 : index
      %c0_101 = arith.constant 0 : index
      %405 = vector.load %arg2[%c0_100, %c0_101] : memref<128x512xbf16, #tpu.memory_space<vmem>>, vector<128x512xbf16>
      %cst_102 = arith.constant dense<0.000000e+00> : vector<8x512xf32>
      %406 = tpu.matmul %404, %405, %cst_102 {dimension_numbers = #tpu.dot_dimension_numbers<[1], [0], [0], [1], [0, 0, 1, 1], [], []>} : vector<8x128xbf16>, vector<128x512xbf16>, vector<8x512xf32> -> vector<8x512xf32>
      %407 = arith.addf %403, %406 : vector<8x512xf32>
      %408 = vector.extract_strided_slice %407 {offsets = [0, 0], sizes = [8, 128], strides = [1, 1]} : vector<8x512xf32> to vector<8x128xf32>
      %409 = arith.negf %408 : vector<8x128xf32>
      %410 = math.exp %409 : vector<8x128xf32>
      %cst_103 = arith.constant 1.000000e+00 : f32
      %411 = vector.broadcast %cst_103 : f32 to vector<8x128xf32>
      %412 = arith.addf %411, %410 : vector<8x128xf32>
      %413 = arith.divf %411, %412 : vector<8x128xf32>
      %414 = vector.extract_strided_slice %407 {offsets = [0, 128], sizes = [8, 128], strides = [1, 1]} : vector<8x512xf32> to vector<8x128xf32>
      %415 = arith.negf %414 : vector<8x128xf32>
      %416 = math.exp %415 : vector<8x128xf32>
      %cst_104 = arith.constant 1.000000e+00 : f32
      %417 = vector.broadcast %cst_104 : f32 to vector<8x128xf32>
      %418 = arith.addf %417, %416 : vector<8x128xf32>
      %419 = arith.divf %417, %418 : vector<8x128xf32>
      %420 = vector.extract_strided_slice %407 {offsets = [0, 256], sizes = [8, 128], strides = [1, 1]} : vector<8x512xf32> to vector<8x128xf32>
      %421 = math.tanh %420 : vector<8x128xf32>
      %422 = vector.extract_strided_slice %407 {offsets = [0, 384], sizes = [8, 128], strides = [1, 1]} : vector<8x512xf32> to vector<8x128xf32>
      %423 = arith.negf %422 : vector<8x128xf32>
      %424 = math.exp %423 : vector<8x128xf32>
      %cst_105 = arith.constant 1.000000e+00 : f32
      %425 = vector.broadcast %cst_105 : f32 to vector<8x128xf32>
      %426 = arith.addf %425, %424 : vector<8x128xf32>
      %427 = arith.divf %425, %426 : vector<8x128xf32>
      %428 = arith.mulf %419, %366 : vector<8x128xf32>
      %429 = arith.mulf %413, %421 : vector<8x128xf32>
      %430 = arith.addf %428, %429 : vector<8x128xf32>
      %431 = math.tanh %430 : vector<8x128xf32>
      %432 = arith.mulf %427, %431 : vector<8x128xf32>
      %433 = arith.truncf %432 : vector<8x128xf32> to vector<8x128xbf16>
      %434 = arith.truncf %399 : vector<8x128xf32> to vector<8x128xbf16>
      %435 = tpu.concatenate %433, %434 in 1 : vector<8x128xbf16>, vector<8x128xbf16> -> vector<8x256xbf16>
      %c0_106 = arith.constant 0 : index
      %c0_107 = arith.constant 0 : index
      %436 = vector.load %arg3[%c0_106, %c0_107] : memref<256x512xbf16, #tpu.memory_space<vmem>>, vector<256x512xbf16>
      %cst_108 = arith.constant dense<0.000000e+00> : vector<8x512xf32>
      %437 = tpu.matmul %435, %436, %cst_108 {dimension_numbers = #tpu.dot_dimension_numbers<[1], [0], [0], [1], [0, 0, 1, 1], [], []>} : vector<8x256xbf16>, vector<256x512xbf16>, vector<8x512xf32> -> vector<8x512xf32>
      %438 = arith.addf %437, %5 : vector<8x512xf32>
      %439 = vector.extract_strided_slice %438 {offsets = [0, 0], sizes = [8, 128], strides = [1, 1]} : vector<8x512xf32> to vector<8x128xf32>
      %440 = arith.negf %439 : vector<8x128xf32>
      %441 = math.exp %440 : vector<8x128xf32>
      %cst_109 = arith.constant 1.000000e+00 : f32
      %442 = vector.broadcast %cst_109 : f32 to vector<8x128xf32>
      %443 = arith.addf %442, %441 : vector<8x128xf32>
      %444 = arith.divf %442, %443 : vector<8x128xf32>
      %445 = vector.extract_strided_slice %438 {offsets = [0, 128], sizes = [8, 128], strides = [1, 1]} : vector<8x512xf32> to vector<8x128xf32>
      %446 = arith.negf %445 : vector<8x128xf32>
      %447 = math.exp %446 : vector<8x128xf32>
      %cst_110 = arith.constant 1.000000e+00 : f32
      %448 = vector.broadcast %cst_110 : f32 to vector<8x128xf32>
      %449 = arith.addf %448, %447 : vector<8x128xf32>
      %450 = arith.divf %448, %449 : vector<8x128xf32>
      %451 = vector.extract_strided_slice %438 {offsets = [0, 256], sizes = [8, 128], strides = [1, 1]} : vector<8x512xf32> to vector<8x128xf32>
      %452 = math.tanh %451 : vector<8x128xf32>
      %453 = vector.extract_strided_slice %438 {offsets = [0, 384], sizes = [8, 128], strides = [1, 1]} : vector<8x512xf32> to vector<8x128xf32>
      %454 = arith.negf %453 : vector<8x128xf32>
      %455 = math.exp %454 : vector<8x128xf32>
      %cst_111 = arith.constant 1.000000e+00 : f32
      %456 = vector.broadcast %cst_111 : f32 to vector<8x128xf32>
      %457 = arith.addf %456, %455 : vector<8x128xf32>
      %458 = arith.divf %456, %457 : vector<8x128xf32>
      %459 = arith.mulf %450, %397 : vector<8x128xf32>
      %460 = arith.mulf %444, %452 : vector<8x128xf32>
      %461 = arith.addf %459, %460 : vector<8x128xf32>
      %462 = math.tanh %461 : vector<8x128xf32>
      %463 = arith.mulf %458, %462 : vector<8x128xf32>
      %c7_i32 = arith.constant 7 : i32
      %464 = arith.index_cast %c7_i32 : i32 to index
      %c0_112 = arith.constant 0 : index
      %c0_113 = arith.constant 0 : index
      %465 = vector.load %arg1[%464, %c0_112, %c0_113] : memref<8x8x512xbf16, #tpu.memory_space<vmem>>, vector<1x8x512xbf16>
      %466 = vector.shape_cast %465 : vector<1x8x512xbf16> to vector<8x512xbf16>
      %467 = arith.extf %466 : vector<8x512xbf16> to vector<8x512xf32>
      %468 = arith.truncf %432 : vector<8x128xf32> to vector<8x128xbf16>
      %c0_114 = arith.constant 0 : index
      %c0_115 = arith.constant 0 : index
      %469 = vector.load %arg2[%c0_114, %c0_115] : memref<128x512xbf16, #tpu.memory_space<vmem>>, vector<128x512xbf16>
      %cst_116 = arith.constant dense<0.000000e+00> : vector<8x512xf32>
      %470 = tpu.matmul %468, %469, %cst_116 {dimension_numbers = #tpu.dot_dimension_numbers<[1], [0], [0], [1], [0, 0, 1, 1], [], []>} : vector<8x128xbf16>, vector<128x512xbf16>, vector<8x512xf32> -> vector<8x512xf32>
      %471 = arith.addf %467, %470 : vector<8x512xf32>
      %472 = vector.extract_strided_slice %471 {offsets = [0, 0], sizes = [8, 128], strides = [1, 1]} : vector<8x512xf32> to vector<8x128xf32>
      %473 = arith.negf %472 : vector<8x128xf32>
      %474 = math.exp %473 : vector<8x128xf32>
      %cst_117 = arith.constant 1.000000e+00 : f32
      %475 = vector.broadcast %cst_117 : f32 to vector<8x128xf32>
      %476 = arith.addf %475, %474 : vector<8x128xf32>
      %477 = arith.divf %475, %476 : vector<8x128xf32>
      %478 = vector.extract_strided_slice %471 {offsets = [0, 128], sizes = [8, 128], strides = [1, 1]} : vector<8x512xf32> to vector<8x128xf32>
      %479 = arith.negf %478 : vector<8x128xf32>
      %480 = math.exp %479 : vector<8x128xf32>
      %cst_118 = arith.constant 1.000000e+00 : f32
      %481 = vector.broadcast %cst_118 : f32 to vector<8x128xf32>
      %482 = arith.addf %481, %480 : vector<8x128xf32>
      %483 = arith.divf %481, %482 : vector<8x128xf32>
      %484 = vector.extract_strided_slice %471 {offsets = [0, 256], sizes = [8, 128], strides = [1, 1]} : vector<8x512xf32> to vector<8x128xf32>
      %485 = math.tanh %484 : vector<8x128xf32>
      %486 = vector.extract_strided_slice %471 {offsets = [0, 384], sizes = [8, 128], strides = [1, 1]} : vector<8x512xf32> to vector<8x128xf32>
      %487 = arith.negf %486 : vector<8x128xf32>
      %488 = math.exp %487 : vector<8x128xf32>
      %cst_119 = arith.constant 1.000000e+00 : f32
      %489 = vector.broadcast %cst_119 : f32 to vector<8x128xf32>
      %490 = arith.addf %489, %488 : vector<8x128xf32>
      %491 = arith.divf %489, %490 : vector<8x128xf32>
      %492 = arith.mulf %483, %430 : vector<8x128xf32>
      %493 = arith.mulf %477, %485 : vector<8x128xf32>
      %494 = arith.addf %492, %493 : vector<8x128xf32>
      %495 = math.tanh %494 : vector<8x128xf32>
      %496 = arith.mulf %491, %495 : vector<8x128xf32>
      %497 = arith.truncf %496 : vector<8x128xf32> to vector<8x128xbf16>
      %498 = arith.truncf %463 : vector<8x128xf32> to vector<8x128xbf16>
      %499 = tpu.concatenate %497, %498 in 1 : vector<8x128xbf16>, vector<8x128xbf16> -> vector<8x256xbf16>
      %c0_120 = arith.constant 0 : index
      %c0_121 = arith.constant 0 : index
      %500 = vector.load %arg3[%c0_120, %c0_121] : memref<256x512xbf16, #tpu.memory_space<vmem>>, vector<256x512xbf16>
      %cst_122 = arith.constant dense<0.000000e+00> : vector<8x512xf32>
      %501 = tpu.matmul %499, %500, %cst_122 {dimension_numbers = #tpu.dot_dimension_numbers<[1], [0], [0], [1], [0, 0, 1, 1], [], []>} : vector<8x256xbf16>, vector<256x512xbf16>, vector<8x512xf32> -> vector<8x512xf32>
      %502 = arith.addf %501, %5 : vector<8x512xf32>
      %503 = vector.extract_strided_slice %502 {offsets = [0, 0], sizes = [8, 128], strides = [1, 1]} : vector<8x512xf32> to vector<8x128xf32>
      %504 = arith.negf %503 : vector<8x128xf32>
      %505 = math.exp %504 : vector<8x128xf32>
      %cst_123 = arith.constant 1.000000e+00 : f32
      %506 = vector.broadcast %cst_123 : f32 to vector<8x128xf32>
      %507 = arith.addf %506, %505 : vector<8x128xf32>
      %508 = arith.divf %506, %507 : vector<8x128xf32>
      %509 = vector.extract_strided_slice %502 {offsets = [0, 128], sizes = [8, 128], strides = [1, 1]} : vector<8x512xf32> to vector<8x128xf32>
      %510 = arith.negf %509 : vector<8x128xf32>
      %511 = math.exp %510 : vector<8x128xf32>
      %cst_124 = arith.constant 1.000000e+00 : f32
      %512 = vector.broadcast %cst_124 : f32 to vector<8x128xf32>
      %513 = arith.addf %512, %511 : vector<8x128xf32>
      %514 = arith.divf %512, %513 : vector<8x128xf32>
      %515 = vector.extract_strided_slice %502 {offsets = [0, 256], sizes = [8, 128], strides = [1, 1]} : vector<8x512xf32> to vector<8x128xf32>
      %516 = math.tanh %515 : vector<8x128xf32>
      %517 = vector.extract_strided_slice %502 {offsets = [0, 384], sizes = [8, 128], strides = [1, 1]} : vector<8x512xf32> to vector<8x128xf32>
      %518 = arith.negf %517 : vector<8x128xf32>
      %519 = math.exp %518 : vector<8x128xf32>
      %cst_125 = arith.constant 1.000000e+00 : f32
      %520 = vector.broadcast %cst_125 : f32 to vector<8x128xf32>
      %521 = arith.addf %520, %519 : vector<8x128xf32>
      %522 = arith.divf %520, %521 : vector<8x128xf32>
      %523 = arith.mulf %514, %461 : vector<8x128xf32>
      %524 = arith.mulf %508, %516 : vector<8x128xf32>
      %525 = arith.addf %523, %524 : vector<8x128xf32>
      %526 = math.tanh %525 : vector<8x128xf32>
      %527 = arith.mulf %522, %526 : vector<8x128xf32>
      %c8_i32 = arith.constant 8 : i32
      %c0_126 = arith.constant 0 : index
      %c0_127 = arith.constant 0 : index
      %528 = vector.load %arg8[%c0_126, %c0_127] : memref<8x128xf32, #tpu.memory_space<vmem>>, vector<8x128xf32>
      tpu.vector_store %arg8[%c0_126, %c0_127], %496 {strides = array<i32>} : memref<8x128xf32, #tpu.memory_space<vmem>>, vector<8x128xf32>,
      %c0_128 = arith.constant 0 : index
      %c0_129 = arith.constant 0 : index
      %529 = vector.load %arg9[%c0_128, %c0_129] : memref<8x128xf32, #tpu.memory_space<vmem>>, vector<8x128xf32>
      tpu.vector_store %arg9[%c0_128, %c0_129], %494 {strides = array<i32>} : memref<8x128xf32, #tpu.memory_space<vmem>>, vector<8x128xf32>,
      %c0_130 = arith.constant 0 : index
      %c0_131 = arith.constant 0 : index
      %530 = vector.load %arg10[%c0_130, %c0_131] : memref<8x128xf32, #tpu.memory_space<vmem>>, vector<8x128xf32>
      tpu.vector_store %arg10[%c0_130, %c0_131], %527 {strides = array<i32>} : memref<8x128xf32, #tpu.memory_space<vmem>>, vector<8x128xf32>,
      %c0_132 = arith.constant 0 : index
      %c0_133 = arith.constant 0 : index
      %531 = vector.load %arg11[%c0_132, %c0_133] : memref<8x128xf32, #tpu.memory_space<vmem>>, vector<8x128xf32>
      tpu.vector_store %arg11[%c0_132, %c0_133], %525 {strides = array<i32>} : memref<8x128xf32, #tpu.memory_space<vmem>>, vector<8x128xf32>,
    } else {
    }
    %c0_i32_4 = arith.constant 0 : i32
    %9 = arith.cmpi eq, %arg0, %c0_i32_4 : i32
    %10 = arith.extui %9 : i1 to i32
    %c0_i32_5 = arith.constant 0 : i32
    %11 = arith.cmpi ne, %10, %c0_i32_5 : i32
    scf.if %11 {
      %c0_6 = arith.constant 0 : index
      %c0_7 = arith.constant 0 : index
      %12 = vector.load %arg8[%c0_6, %c0_7] : memref<8x128xf32, #tpu.memory_space<vmem>>, vector<8x128xf32>
      %c0_8 = arith.constant 0 : index
      %c0_9 = arith.constant 0 : index
      %13 = vector.load %arg9[%c0_8, %c0_9] : memref<8x128xf32, #tpu.memory_space<vmem>>, vector<8x128xf32>
      %c0_10 = arith.constant 0 : index
      %c0_11 = arith.constant 0 : index
      %14 = vector.load %arg10[%c0_10, %c0_11] : memref<8x128xf32, #tpu.memory_space<vmem>>, vector<8x128xf32>
      %c0_12 = arith.constant 0 : index
      %c0_13 = arith.constant 0 : index
      %15 = vector.load %arg11[%c0_12, %c0_13] : memref<8x128xf32, #tpu.memory_space<vmem>>, vector<8x128xf32>
      %c0_i32_14 = arith.constant 0 : i32
      %16 = arith.index_cast %c0_i32_14 : i32 to index
      %c0_15 = arith.constant 0 : index
      %c0_16 = arith.constant 0 : index
      %17 = vector.load %arg1[%16, %c0_15, %c0_16] : memref<8x8x512xbf16, #tpu.memory_space<vmem>>, vector<1x8x512xbf16>
      %18 = vector.shape_cast %17 : vector<1x8x512xbf16> to vector<8x512xbf16>
      %19 = arith.extf %18 : vector<8x512xbf16> to vector<8x512xf32>
      %20 = arith.truncf %12 : vector<8x128xf32> to vector<8x128xbf16>
      %c0_17 = arith.constant 0 : index
      %c0_18 = arith.constant 0 : index
      %21 = vector.load %arg2[%c0_17, %c0_18] : memref<128x512xbf16, #tpu.memory_space<vmem>>, vector<128x512xbf16>
      %cst = arith.constant dense<0.000000e+00> : vector<8x512xf32>
      %22 = tpu.matmul %20, %21, %cst {dimension_numbers = #tpu.dot_dimension_numbers<[1], [0], [0], [1], [0, 0, 1, 1], [], []>} : vector<8x128xbf16>, vector<128x512xbf16>, vector<8x512xf32> -> vector<8x512xf32>
      %23 = arith.addf %19, %22 : vector<8x512xf32>
      %24 = vector.extract_strided_slice %23 {offsets = [0, 0], sizes = [8, 128], strides = [1, 1]} : vector<8x512xf32> to vector<8x128xf32>
      %25 = arith.negf %24 : vector<8x128xf32>
      %26 = math.exp %25 : vector<8x128xf32>
      %cst_19 = arith.constant 1.000000e+00 : f32
      %27 = vector.broadcast %cst_19 : f32 to vector<8x128xf32>
      %28 = arith.addf %27, %26 : vector<8x128xf32>
      %29 = arith.divf %27, %28 : vector<8x128xf32>
      %30 = vector.extract_strided_slice %23 {offsets = [0, 128], sizes = [8, 128], strides = [1, 1]} : vector<8x512xf32> to vector<8x128xf32>
      %31 = arith.negf %30 : vector<8x128xf32>
      %32 = math.exp %31 : vector<8x128xf32>
      %cst_20 = arith.constant 1.000000e+00 : f32
      %33 = vector.broadcast %cst_20 : f32 to vector<8x128xf32>
      %34 = arith.addf %33, %32 : vector<8x128xf32>
      %35 = arith.divf %33, %34 : vector<8x128xf32>
      %36 = vector.extract_strided_slice %23 {offsets = [0, 256], sizes = [8, 128], strides = [1, 1]} : vector<8x512xf32> to vector<8x128xf32>
      %37 = math.tanh %36 : vector<8x128xf32>
      %38 = vector.extract_strided_slice %23 {offsets = [0, 384], sizes = [8, 128], strides = [1, 1]} : vector<8x512xf32> to vector<8x128xf32>
      %39 = arith.negf %38 : vector<8x128xf32>
      %40 = math.exp %39 : vector<8x128xf32>
      %cst_21 = arith.constant 1.000000e+00 : f32
      %41 = vector.broadcast %cst_21 : f32 to vector<8x128xf32>
      %42 = arith.addf %41, %40 : vector<8x128xf32>
      %43 = arith.divf %41, %42 : vector<8x128xf32>
      %44 = arith.mulf %35, %13 : vector<8x128xf32>
      %45 = arith.mulf %29, %37 : vector<8x128xf32>
      %46 = arith.addf %44, %45 : vector<8x128xf32>
      %47 = math.tanh %46 : vector<8x128xf32>
      %48 = arith.mulf %43, %47 : vector<8x128xf32>
      %49 = arith.truncf %48 : vector<8x128xf32> to vector<8x128xbf16>
      %50 = arith.truncf %14 : vector<8x128xf32> to vector<8x128xbf16>
      %51 = tpu.concatenate %49, %50 in 1 : vector<8x128xbf16>, vector<8x128xbf16> -> vector<8x256xbf16>
      %c0_22 = arith.constant 0 : index
      %c0_23 = arith.constant 0 : index
      %52 = vector.load %arg3[%c0_22, %c0_23] : memref<256x512xbf16, #tpu.memory_space<vmem>>, vector<256x512xbf16>
      %cst_24 = arith.constant dense<0.000000e+00> : vector<8x512xf32>
      %53 = tpu.matmul %51, %52, %cst_24 {dimension_numbers = #tpu.dot_dimension_numbers<[1], [0], [0], [1], [0, 0, 1, 1], [], []>} : vector<8x256xbf16>, vector<256x512xbf16>, vector<8x512xf32> -> vector<8x512xf32>
      %54 = arith.addf %53, %5 : vector<8x512xf32>
      %55 = vector.extract_strided_slice %54 {offsets = [0, 0], sizes = [8, 128], strides = [1, 1]} : vector<8x512xf32> to vector<8x128xf32>
      %56 = arith.negf %55 : vector<8x128xf32>
      %57 = math.exp %56 : vector<8x128xf32>
      %cst_25 = arith.constant 1.000000e+00 : f32
      %58 = vector.broadcast %cst_25 : f32 to vector<8x128xf32>
      %59 = arith.addf %58, %57 : vector<8x128xf32>
      %60 = arith.divf %58, %59 : vector<8x128xf32>
      %61 = vector.extract_strided_slice %54 {offsets = [0, 128], sizes = [8, 128], strides = [1, 1]} : vector<8x512xf32> to vector<8x128xf32>
      %62 = arith.negf %61 : vector<8x128xf32>
      %63 = math.exp %62 : vector<8x128xf32>
      %cst_26 = arith.constant 1.000000e+00 : f32
      %64 = vector.broadcast %cst_26 : f32 to vector<8x128xf32>
      %65 = arith.addf %64, %63 : vector<8x128xf32>
      %66 = arith.divf %64, %65 : vector<8x128xf32>
      %67 = vector.extract_strided_slice %54 {offsets = [0, 256], sizes = [8, 128], strides = [1, 1]} : vector<8x512xf32> to vector<8x128xf32>
      %68 = math.tanh %67 : vector<8x128xf32>
      %69 = vector.extract_strided_slice %54 {offsets = [0, 384], sizes = [8, 128], strides = [1, 1]} : vector<8x512xf32> to vector<8x128xf32>
      %70 = arith.negf %69 : vector<8x128xf32>
      %71 = math.exp %70 : vector<8x128xf32>
      %cst_27 = arith.constant 1.000000e+00 : f32
      %72 = vector.broadcast %cst_27 : f32 to vector<8x128xf32>
      %73 = arith.addf %72, %71 : vector<8x128xf32>
      %74 = arith.divf %72, %73 : vector<8x128xf32>
      %75 = arith.mulf %66, %15 : vector<8x128xf32>
      %76 = arith.mulf %60, %68 : vector<8x128xf32>
      %77 = arith.addf %75, %76 : vector<8x128xf32>
      %78 = math.tanh %77 : vector<8x128xf32>
      %79 = arith.mulf %74, %78 : vector<8x128xf32>
      %c1_i32 = arith.constant 1 : i32
      %80 = arith.index_cast %c1_i32 : i32 to index
      %c0_28 = arith.constant 0 : index
      %c0_29 = arith.constant 0 : index
      %81 = vector.load %arg1[%80, %c0_28, %c0_29] : memref<8x8x512xbf16, #tpu.memory_space<vmem>>, vector<1x8x512xbf16>
      %82 = vector.shape_cast %81 : vector<1x8x512xbf16> to vector<8x512xbf16>
      %83 = arith.extf %82 : vector<8x512xbf16> to vector<8x512xf32>
      %84 = arith.truncf %48 : vector<8x128xf32> to vector<8x128xbf16>
      %c0_30 = arith.constant 0 : index
      %c0_31 = arith.constant 0 : index
      %85 = vector.load %arg2[%c0_30, %c0_31] : memref<128x512xbf16, #tpu.memory_space<vmem>>, vector<128x512xbf16>
      %cst_32 = arith.constant dense<0.000000e+00> : vector<8x512xf32>
      %86 = tpu.matmul %84, %85, %cst_32 {dimension_numbers = #tpu.dot_dimension_numbers<[1], [0], [0], [1], [0, 0, 1, 1], [], []>} : vector<8x128xbf16>, vector<128x512xbf16>, vector<8x512xf32> -> vector<8x512xf32>
      %87 = arith.addf %83, %86 : vector<8x512xf32>
      %88 = vector.extract_strided_slice %87 {offsets = [0, 0], sizes = [8, 128], strides = [1, 1]} : vector<8x512xf32> to vector<8x128xf32>
      %89 = arith.negf %88 : vector<8x128xf32>
      %90 = math.exp %89 : vector<8x128xf32>
      %cst_33 = arith.constant 1.000000e+00 : f32
      %91 = vector.broadcast %cst_33 : f32 to vector<8x128xf32>
      %92 = arith.addf %91, %90 : vector<8x128xf32>
      %93 = arith.divf %91, %92 : vector<8x128xf32>
      %94 = vector.extract_strided_slice %87 {offsets = [0, 128], sizes = [8, 128], strides = [1, 1]} : vector<8x512xf32> to vector<8x128xf32>
      %95 = arith.negf %94 : vector<8x128xf32>
      %96 = math.exp %95 : vector<8x128xf32>
      %cst_34 = arith.constant 1.000000e+00 : f32
      %97 = vector.broadcast %cst_34 : f32 to vector<8x128xf32>
      %98 = arith.addf %97, %96 : vector<8x128xf32>
      %99 = arith.divf %97, %98 : vector<8x128xf32>
      %100 = vector.extract_strided_slice %87 {offsets = [0, 256], sizes = [8, 128], strides = [1, 1]} : vector<8x512xf32> to vector<8x128xf32>
      %101 = math.tanh %100 : vector<8x128xf32>
      %102 = vector.extract_strided_slice %87 {offsets = [0, 384], sizes = [8, 128], strides = [1, 1]} : vector<8x512xf32> to vector<8x128xf32>
      %103 = arith.negf %102 : vector<8x128xf32>
      %104 = math.exp %103 : vector<8x128xf32>
      %cst_35 = arith.constant 1.000000e+00 : f32
      %105 = vector.broadcast %cst_35 : f32 to vector<8x128xf32>
      %106 = arith.addf %105, %104 : vector<8x128xf32>
      %107 = arith.divf %105, %106 : vector<8x128xf32>
      %108 = arith.mulf %99, %46 : vector<8x128xf32>
      %109 = arith.mulf %93, %101 : vector<8x128xf32>
      %110 = arith.addf %108, %109 : vector<8x128xf32>
      %111 = math.tanh %110 : vector<8x128xf32>
      %112 = arith.mulf %107, %111 : vector<8x128xf32>
      %113 = arith.truncf %112 : vector<8x128xf32> to vector<8x128xbf16>
      %114 = arith.truncf %79 : vector<8x128xf32> to vector<8x128xbf16>
      %115 = tpu.concatenate %113, %114 in 1 : vector<8x128xbf16>, vector<8x128xbf16> -> vector<8x256xbf16>
      %c0_36 = arith.constant 0 : index
      %c0_37 = arith.constant 0 : index
      %116 = vector.load %arg3[%c0_36, %c0_37] : memref<256x512xbf16, #tpu.memory_space<vmem>>, vector<256x512xbf16>
      %cst_38 = arith.constant dense<0.000000e+00> : vector<8x512xf32>
      %117 = tpu.matmul %115, %116, %cst_38 {dimension_numbers = #tpu.dot_dimension_numbers<[1], [0], [0], [1], [0, 0, 1, 1], [], []>} : vector<8x256xbf16>, vector<256x512xbf16>, vector<8x512xf32> -> vector<8x512xf32>
      %118 = arith.addf %117, %5 : vector<8x512xf32>
      %119 = vector.extract_strided_slice %118 {offsets = [0, 0], sizes = [8, 128], strides = [1, 1]} : vector<8x512xf32> to vector<8x128xf32>
      %120 = arith.negf %119 : vector<8x128xf32>
      %121 = math.exp %120 : vector<8x128xf32>
      %cst_39 = arith.constant 1.000000e+00 : f32
      %122 = vector.broadcast %cst_39 : f32 to vector<8x128xf32>
      %123 = arith.addf %122, %121 : vector<8x128xf32>
      %124 = arith.divf %122, %123 : vector<8x128xf32>
      %125 = vector.extract_strided_slice %118 {offsets = [0, 128], sizes = [8, 128], strides = [1, 1]} : vector<8x512xf32> to vector<8x128xf32>
      %126 = arith.negf %125 : vector<8x128xf32>
      %127 = math.exp %126 : vector<8x128xf32>
      %cst_40 = arith.constant 1.000000e+00 : f32
      %128 = vector.broadcast %cst_40 : f32 to vector<8x128xf32>
      %129 = arith.addf %128, %127 : vector<8x128xf32>
      %130 = arith.divf %128, %129 : vector<8x128xf32>
      %131 = vector.extract_strided_slice %118 {offsets = [0, 256], sizes = [8, 128], strides = [1, 1]} : vector<8x512xf32> to vector<8x128xf32>
      %132 = math.tanh %131 : vector<8x128xf32>
      %133 = vector.extract_strided_slice %118 {offsets = [0, 384], sizes = [8, 128], strides = [1, 1]} : vector<8x512xf32> to vector<8x128xf32>
      %134 = arith.negf %133 : vector<8x128xf32>
      %135 = math.exp %134 : vector<8x128xf32>
      %cst_41 = arith.constant 1.000000e+00 : f32
      %136 = vector.broadcast %cst_41 : f32 to vector<8x128xf32>
      %137 = arith.addf %136, %135 : vector<8x128xf32>
      %138 = arith.divf %136, %137 : vector<8x128xf32>
      %139 = arith.mulf %130, %77 : vector<8x128xf32>
      %140 = arith.mulf %124, %132 : vector<8x128xf32>
      %141 = arith.addf %139, %140 : vector<8x128xf32>
      %142 = math.tanh %141 : vector<8x128xf32>
      %143 = arith.mulf %138, %142 : vector<8x128xf32>
      %c2_i32 = arith.constant 2 : i32
      %144 = arith.index_cast %c2_i32 : i32 to index
      %c0_42 = arith.constant 0 : index
      %c0_43 = arith.constant 0 : index
      %145 = vector.load %arg1[%144, %c0_42, %c0_43] : memref<8x8x512xbf16, #tpu.memory_space<vmem>>, vector<1x8x512xbf16>
      %146 = vector.shape_cast %145 : vector<1x8x512xbf16> to vector<8x512xbf16>
      %147 = arith.extf %146 : vector<8x512xbf16> to vector<8x512xf32>
      %148 = arith.truncf %112 : vector<8x128xf32> to vector<8x128xbf16>
      %c0_44 = arith.constant 0 : index
      %c0_45 = arith.constant 0 : index
      %149 = vector.load %arg2[%c0_44, %c0_45] : memref<128x512xbf16, #tpu.memory_space<vmem>>, vector<128x512xbf16>
      %cst_46 = arith.constant dense<0.000000e+00> : vector<8x512xf32>
      %150 = tpu.matmul %148, %149, %cst_46 {dimension_numbers = #tpu.dot_dimension_numbers<[1], [0], [0], [1], [0, 0, 1, 1], [], []>} : vector<8x128xbf16>, vector<128x512xbf16>, vector<8x512xf32> -> vector<8x512xf32>
      %151 = arith.addf %147, %150 : vector<8x512xf32>
      %152 = vector.extract_strided_slice %151 {offsets = [0, 0], sizes = [8, 128], strides = [1, 1]} : vector<8x512xf32> to vector<8x128xf32>
      %153 = arith.negf %152 : vector<8x128xf32>
      %154 = math.exp %153 : vector<8x128xf32>
      %cst_47 = arith.constant 1.000000e+00 : f32
      %155 = vector.broadcast %cst_47 : f32 to vector<8x128xf32>
      %156 = arith.addf %155, %154 : vector<8x128xf32>
      %157 = arith.divf %155, %156 : vector<8x128xf32>
      %158 = vector.extract_strided_slice %151 {offsets = [0, 128], sizes = [8, 128], strides = [1, 1]} : vector<8x512xf32> to vector<8x128xf32>
      %159 = arith.negf %158 : vector<8x128xf32>
      %160 = math.exp %159 : vector<8x128xf32>
      %cst_48 = arith.constant 1.000000e+00 : f32
      %161 = vector.broadcast %cst_48 : f32 to vector<8x128xf32>
      %162 = arith.addf %161, %160 : vector<8x128xf32>
      %163 = arith.divf %161, %162 : vector<8x128xf32>
      %164 = vector.extract_strided_slice %151 {offsets = [0, 256], sizes = [8, 128], strides = [1, 1]} : vector<8x512xf32> to vector<8x128xf32>
      %165 = math.tanh %164 : vector<8x128xf32>
      %166 = vector.extract_strided_slice %151 {offsets = [0, 384], sizes = [8, 128], strides = [1, 1]} : vector<8x512xf32> to vector<8x128xf32>
      %167 = arith.negf %166 : vector<8x128xf32>
      %168 = math.exp %167 : vector<8x128xf32>
      %cst_49 = arith.constant 1.000000e+00 : f32
      %169 = vector.broadcast %cst_49 : f32 to vector<8x128xf32>
      %170 = arith.addf %169, %168 : vector<8x128xf32>
      %171 = arith.divf %169, %170 : vector<8x128xf32>
      %172 = arith.mulf %163, %110 : vector<8x128xf32>
      %173 = arith.mulf %157, %165 : vector<8x128xf32>
      %174 = arith.addf %172, %173 : vector<8x128xf32>
      %175 = math.tanh %174 : vector<8x128xf32>
      %176 = arith.mulf %171, %175 : vector<8x128xf32>
      %177 = arith.truncf %176 : vector<8x128xf32> to vector<8x128xbf16>
      %178 = arith.truncf %143 : vector<8x128xf32> to vector<8x128xbf16>
      %179 = tpu.concatenate %177, %178 in 1 : vector<8x128xbf16>, vector<8x128xbf16> -> vector<8x256xbf16>
      %c0_50 = arith.constant 0 : index
      %c0_51 = arith.constant 0 : index
      %180 = vector.load %arg3[%c0_50, %c0_51] : memref<256x512xbf16, #tpu.memory_space<vmem>>, vector<256x512xbf16>
      %cst_52 = arith.constant dense<0.000000e+00> : vector<8x512xf32>
      %181 = tpu.matmul %179, %180, %cst_52 {dimension_numbers = #tpu.dot_dimension_numbers<[1], [0], [0], [1], [0, 0, 1, 1], [], []>} : vector<8x256xbf16>, vector<256x512xbf16>, vector<8x512xf32> -> vector<8x512xf32>
      %182 = arith.addf %181, %5 : vector<8x512xf32>
      %183 = vector.extract_strided_slice %182 {offsets = [0, 0], sizes = [8, 128], strides = [1, 1]} : vector<8x512xf32> to vector<8x128xf32>
      %184 = arith.negf %183 : vector<8x128xf32>
      %185 = math.exp %184 : vector<8x128xf32>
      %cst_53 = arith.constant 1.000000e+00 : f32
      %186 = vector.broadcast %cst_53 : f32 to vector<8x128xf32>
      %187 = arith.addf %186, %185 : vector<8x128xf32>
      %188 = arith.divf %186, %187 : vector<8x128xf32>
      %189 = vector.extract_strided_slice %182 {offsets = [0, 128], sizes = [8, 128], strides = [1, 1]} : vector<8x512xf32> to vector<8x128xf32>
      %190 = arith.negf %189 : vector<8x128xf32>
      %191 = math.exp %190 : vector<8x128xf32>
      %cst_54 = arith.constant 1.000000e+00 : f32
      %192 = vector.broadcast %cst_54 : f32 to vector<8x128xf32>
      %193 = arith.addf %192, %191 : vector<8x128xf32>
      %194 = arith.divf %192, %193 : vector<8x128xf32>
      %195 = vector.extract_strided_slice %182 {offsets = [0, 256], sizes = [8, 128], strides = [1, 1]} : vector<8x512xf32> to vector<8x128xf32>
      %196 = math.tanh %195 : vector<8x128xf32>
      %197 = vector.extract_strided_slice %182 {offsets = [0, 384], sizes = [8, 128], strides = [1, 1]} : vector<8x512xf32> to vector<8x128xf32>
      %198 = arith.negf %197 : vector<8x128xf32>
      %199 = math.exp %198 : vector<8x128xf32>
      %cst_55 = arith.constant 1.000000e+00 : f32
      %200 = vector.broadcast %cst_55 : f32 to vector<8x128xf32>
      %201 = arith.addf %200, %199 : vector<8x128xf32>
      %202 = arith.divf %200, %201 : vector<8x128xf32>
      %203 = arith.mulf %194, %141 : vector<8x128xf32>
      %204 = arith.mulf %188, %196 : vector<8x128xf32>
      %205 = arith.addf %203, %204 : vector<8x128xf32>
      %206 = math.tanh %205 : vector<8x128xf32>
      %207 = arith.mulf %202, %206 : vector<8x128xf32>
      %c3_i32 = arith.constant 3 : i32
      %208 = arith.index_cast %c3_i32 : i32 to index
      %c0_56 = arith.constant 0 : index
      %c0_57 = arith.constant 0 : index
      %209 = vector.load %arg1[%208, %c0_56, %c0_57] : memref<8x8x512xbf16, #tpu.memory_space<vmem>>, vector<1x8x512xbf16>
      %210 = vector.shape_cast %209 : vector<1x8x512xbf16> to vector<8x512xbf16>
      %211 = arith.extf %210 : vector<8x512xbf16> to vector<8x512xf32>
      %212 = arith.truncf %176 : vector<8x128xf32> to vector<8x128xbf16>
      %c0_58 = arith.constant 0 : index
      %c0_59 = arith.constant 0 : index
      %213 = vector.load %arg2[%c0_58, %c0_59] : memref<128x512xbf16, #tpu.memory_space<vmem>>, vector<128x512xbf16>
      %cst_60 = arith.constant dense<0.000000e+00> : vector<8x512xf32>
      %214 = tpu.matmul %212, %213, %cst_60 {dimension_numbers = #tpu.dot_dimension_numbers<[1], [0], [0], [1], [0, 0, 1, 1], [], []>} : vector<8x128xbf16>, vector<128x512xbf16>, vector<8x512xf32> -> vector<8x512xf32>
      %215 = arith.addf %211, %214 : vector<8x512xf32>
      %216 = vector.extract_strided_slice %215 {offsets = [0, 0], sizes = [8, 128], strides = [1, 1]} : vector<8x512xf32> to vector<8x128xf32>
      %217 = arith.negf %216 : vector<8x128xf32>
      %218 = math.exp %217 : vector<8x128xf32>
      %cst_61 = arith.constant 1.000000e+00 : f32
      %219 = vector.broadcast %cst_61 : f32 to vector<8x128xf32>
      %220 = arith.addf %219, %218 : vector<8x128xf32>
      %221 = arith.divf %219, %220 : vector<8x128xf32>
      %222 = vector.extract_strided_slice %215 {offsets = [0, 128], sizes = [8, 128], strides = [1, 1]} : vector<8x512xf32> to vector<8x128xf32>
      %223 = arith.negf %222 : vector<8x128xf32>
      %224 = math.exp %223 : vector<8x128xf32>
      %cst_62 = arith.constant 1.000000e+00 : f32
      %225 = vector.broadcast %cst_62 : f32 to vector<8x128xf32>
      %226 = arith.addf %225, %224 : vector<8x128xf32>
      %227 = arith.divf %225, %226 : vector<8x128xf32>
      %228 = vector.extract_strided_slice %215 {offsets = [0, 256], sizes = [8, 128], strides = [1, 1]} : vector<8x512xf32> to vector<8x128xf32>
      %229 = math.tanh %228 : vector<8x128xf32>
      %230 = vector.extract_strided_slice %215 {offsets = [0, 384], sizes = [8, 128], strides = [1, 1]} : vector<8x512xf32> to vector<8x128xf32>
      %231 = arith.negf %230 : vector<8x128xf32>
      %232 = math.exp %231 : vector<8x128xf32>
      %cst_63 = arith.constant 1.000000e+00 : f32
      %233 = vector.broadcast %cst_63 : f32 to vector<8x128xf32>
      %234 = arith.addf %233, %232 : vector<8x128xf32>
      %235 = arith.divf %233, %234 : vector<8x128xf32>
      %236 = arith.mulf %227, %174 : vector<8x128xf32>
      %237 = arith.mulf %221, %229 : vector<8x128xf32>
      %238 = arith.addf %236, %237 : vector<8x128xf32>
      %239 = math.tanh %238 : vector<8x128xf32>
      %240 = arith.mulf %235, %239 : vector<8x128xf32>
      %241 = arith.truncf %240 : vector<8x128xf32> to vector<8x128xbf16>
      %242 = arith.truncf %207 : vector<8x128xf32> to vector<8x128xbf16>
      %243 = tpu.concatenate %241, %242 in 1 : vector<8x128xbf16>, vector<8x128xbf16> -> vector<8x256xbf16>
      %c0_64 = arith.constant 0 : index
      %c0_65 = arith.constant 0 : index
      %244 = vector.load %arg3[%c0_64, %c0_65] : memref<256x512xbf16, #tpu.memory_space<vmem>>, vector<256x512xbf16>
      %cst_66 = arith.constant dense<0.000000e+00> : vector<8x512xf32>
      %245 = tpu.matmul %243, %244, %cst_66 {dimension_numbers = #tpu.dot_dimension_numbers<[1], [0], [0], [1], [0, 0, 1, 1], [], []>} : vector<8x256xbf16>, vector<256x512xbf16>, vector<8x512xf32> -> vector<8x512xf32>
      %246 = arith.addf %245, %5 : vector<8x512xf32>
      %247 = vector.extract_strided_slice %246 {offsets = [0, 0], sizes = [8, 128], strides = [1, 1]} : vector<8x512xf32> to vector<8x128xf32>
      %248 = arith.negf %247 : vector<8x128xf32>
      %249 = math.exp %248 : vector<8x128xf32>
      %cst_67 = arith.constant 1.000000e+00 : f32
      %250 = vector.broadcast %cst_67 : f32 to vector<8x128xf32>
      %251 = arith.addf %250, %249 : vector<8x128xf32>
      %252 = arith.divf %250, %251 : vector<8x128xf32>
      %253 = vector.extract_strided_slice %246 {offsets = [0, 128], sizes = [8, 128], strides = [1, 1]} : vector<8x512xf32> to vector<8x128xf32>
      %254 = arith.negf %253 : vector<8x128xf32>
      %255 = math.exp %254 : vector<8x128xf32>
      %cst_68 = arith.constant 1.000000e+00 : f32
      %256 = vector.broadcast %cst_68 : f32 to vector<8x128xf32>
      %257 = arith.addf %256, %255 : vector<8x128xf32>
      %258 = arith.divf %256, %257 : vector<8x128xf32>
      %259 = vector.extract_strided_slice %246 {offsets = [0, 256], sizes = [8, 128], strides = [1, 1]} : vector<8x512xf32> to vector<8x128xf32>
      %260 = math.tanh %259 : vector<8x128xf32>
      %261 = vector.extract_strided_slice %246 {offsets = [0, 384], sizes = [8, 128], strides = [1, 1]} : vector<8x512xf32> to vector<8x128xf32>
      %262 = arith.negf %261 : vector<8x128xf32>
      %263 = math.exp %262 : vector<8x128xf32>
      %cst_69 = arith.constant 1.000000e+00 : f32
      %264 = vector.broadcast %cst_69 : f32 to vector<8x128xf32>
      %265 = arith.addf %264, %263 : vector<8x128xf32>
      %266 = arith.divf %264, %265 : vector<8x128xf32>
      %267 = arith.mulf %258, %205 : vector<8x128xf32>
      %268 = arith.mulf %252, %260 : vector<8x128xf32>
      %269 = arith.addf %267, %268 : vector<8x128xf32>
      %270 = math.tanh %269 : vector<8x128xf32>
      %271 = arith.mulf %266, %270 : vector<8x128xf32>
      %c4_i32 = arith.constant 4 : i32
      %272 = arith.index_cast %c4_i32 : i32 to index
      %c0_70 = arith.constant 0 : index
      %c0_71 = arith.constant 0 : index
      %273 = vector.load %arg1[%272, %c0_70, %c0_71] : memref<8x8x512xbf16, #tpu.memory_space<vmem>>, vector<1x8x512xbf16>
      %274 = vector.shape_cast %273 : vector<1x8x512xbf16> to vector<8x512xbf16>
      %275 = arith.extf %274 : vector<8x512xbf16> to vector<8x512xf32>
      %276 = arith.truncf %240 : vector<8x128xf32> to vector<8x128xbf16>
      %c0_72 = arith.constant 0 : index
      %c0_73 = arith.constant 0 : index
      %277 = vector.load %arg2[%c0_72, %c0_73] : memref<128x512xbf16, #tpu.memory_space<vmem>>, vector<128x512xbf16>
      %cst_74 = arith.constant dense<0.000000e+00> : vector<8x512xf32>
      %278 = tpu.matmul %276, %277, %cst_74 {dimension_numbers = #tpu.dot_dimension_numbers<[1], [0], [0], [1], [0, 0, 1, 1], [], []>} : vector<8x128xbf16>, vector<128x512xbf16>, vector<8x512xf32> -> vector<8x512xf32>
      %279 = arith.addf %275, %278 : vector<8x512xf32>
      %280 = vector.extract_strided_slice %279 {offsets = [0, 0], sizes = [8, 128], strides = [1, 1]} : vector<8x512xf32> to vector<8x128xf32>
      %281 = arith.negf %280 : vector<8x128xf32>
      %282 = math.exp %281 : vector<8x128xf32>
      %cst_75 = arith.constant 1.000000e+00 : f32
      %283 = vector.broadcast %cst_75 : f32 to vector<8x128xf32>
      %284 = arith.addf %283, %282 : vector<8x128xf32>
      %285 = arith.divf %283, %284 : vector<8x128xf32>
      %286 = vector.extract_strided_slice %279 {offsets = [0, 128], sizes = [8, 128], strides = [1, 1]} : vector<8x512xf32> to vector<8x128xf32>
      %287 = arith.negf %286 : vector<8x128xf32>
      %288 = math.exp %287 : vector<8x128xf32>
      %cst_76 = arith.constant 1.000000e+00 : f32
      %289 = vector.broadcast %cst_76 : f32 to vector<8x128xf32>
      %290 = arith.addf %289, %288 : vector<8x128xf32>
      %291 = arith.divf %289, %290 : vector<8x128xf32>
      %292 = vector.extract_strided_slice %279 {offsets = [0, 256], sizes = [8, 128], strides = [1, 1]} : vector<8x512xf32> to vector<8x128xf32>
      %293 = math.tanh %292 : vector<8x128xf32>
      %294 = vector.extract_strided_slice %279 {offsets = [0, 384], sizes = [8, 128], strides = [1, 1]} : vector<8x512xf32> to vector<8x128xf32>
      %295 = arith.negf %294 : vector<8x128xf32>
      %296 = math.exp %295 : vector<8x128xf32>
      %cst_77 = arith.constant 1.000000e+00 : f32
      %297 = vector.broadcast %cst_77 : f32 to vector<8x128xf32>
      %298 = arith.addf %297, %296 : vector<8x128xf32>
      %299 = arith.divf %297, %298 : vector<8x128xf32>
      %300 = arith.mulf %291, %238 : vector<8x128xf32>
      %301 = arith.mulf %285, %293 : vector<8x128xf32>
      %302 = arith.addf %300, %301 : vector<8x128xf32>
      %303 = math.tanh %302 : vector<8x128xf32>
      %304 = arith.mulf %299, %303 : vector<8x128xf32>
      %305 = arith.truncf %304 : vector<8x128xf32> to vector<8x128xbf16>
      %306 = arith.truncf %271 : vector<8x128xf32> to vector<8x128xbf16>
      %307 = tpu.concatenate %305, %306 in 1 : vector<8x128xbf16>, vector<8x128xbf16> -> vector<8x256xbf16>
      %c0_78 = arith.constant 0 : index
      %c0_79 = arith.constant 0 : index
      %308 = vector.load %arg3[%c0_78, %c0_79] : memref<256x512xbf16, #tpu.memory_space<vmem>>, vector<256x512xbf16>
      %cst_80 = arith.constant dense<0.000000e+00> : vector<8x512xf32>
      %309 = tpu.matmul %307, %308, %cst_80 {dimension_numbers = #tpu.dot_dimension_numbers<[1], [0], [0], [1], [0, 0, 1, 1], [], []>} : vector<8x256xbf16>, vector<256x512xbf16>, vector<8x512xf32> -> vector<8x512xf32>
      %310 = arith.addf %309, %5 : vector<8x512xf32>
      %311 = vector.extract_strided_slice %310 {offsets = [0, 0], sizes = [8, 128], strides = [1, 1]} : vector<8x512xf32> to vector<8x128xf32>
      %312 = arith.negf %311 : vector<8x128xf32>
      %313 = math.exp %312 : vector<8x128xf32>
      %cst_81 = arith.constant 1.000000e+00 : f32
      %314 = vector.broadcast %cst_81 : f32 to vector<8x128xf32>
      %315 = arith.addf %314, %313 : vector<8x128xf32>
      %316 = arith.divf %314, %315 : vector<8x128xf32>
      %317 = vector.extract_strided_slice %310 {offsets = [0, 128], sizes = [8, 128], strides = [1, 1]} : vector<8x512xf32> to vector<8x128xf32>
      %318 = arith.negf %317 : vector<8x128xf32>
      %319 = math.exp %318 : vector<8x128xf32>
      %cst_82 = arith.constant 1.000000e+00 : f32
      %320 = vector.broadcast %cst_82 : f32 to vector<8x128xf32>
      %321 = arith.addf %320, %319 : vector<8x128xf32>
      %322 = arith.divf %320, %321 : vector<8x128xf32>
      %323 = vector.extract_strided_slice %310 {offsets = [0, 256], sizes = [8, 128], strides = [1, 1]} : vector<8x512xf32> to vector<8x128xf32>
      %324 = math.tanh %323 : vector<8x128xf32>
      %325 = vector.extract_strided_slice %310 {offsets = [0, 384], sizes = [8, 128], strides = [1, 1]} : vector<8x512xf32> to vector<8x128xf32>
      %326 = arith.negf %325 : vector<8x128xf32>
      %327 = math.exp %326 : vector<8x128xf32>
      %cst_83 = arith.constant 1.000000e+00 : f32
      %328 = vector.broadcast %cst_83 : f32 to vector<8x128xf32>
      %329 = arith.addf %328, %327 : vector<8x128xf32>
      %330 = arith.divf %328, %329 : vector<8x128xf32>
      %331 = arith.mulf %322, %269 : vector<8x128xf32>
      %332 = arith.mulf %316, %324 : vector<8x128xf32>
      %333 = arith.addf %331, %332 : vector<8x128xf32>
      %334 = math.tanh %333 : vector<8x128xf32>
      %335 = arith.mulf %330, %334 : vector<8x128xf32>
      %c5_i32 = arith.constant 5 : i32
      %336 = arith.index_cast %c5_i32 : i32 to index
      %c0_84 = arith.constant 0 : index
      %c0_85 = arith.constant 0 : index
      %337 = vector.load %arg1[%336, %c0_84, %c0_85] : memref<8x8x512xbf16, #tpu.memory_space<vmem>>, vector<1x8x512xbf16>
      %338 = vector.shape_cast %337 : vector<1x8x512xbf16> to vector<8x512xbf16>
      %339 = arith.extf %338 : vector<8x512xbf16> to vector<8x512xf32>
      %340 = arith.truncf %304 : vector<8x128xf32> to vector<8x128xbf16>
      %c0_86 = arith.constant 0 : index
      %c0_87 = arith.constant 0 : index
      %341 = vector.load %arg2[%c0_86, %c0_87] : memref<128x512xbf16, #tpu.memory_space<vmem>>, vector<128x512xbf16>
      %cst_88 = arith.constant dense<0.000000e+00> : vector<8x512xf32>
      %342 = tpu.matmul %340, %341, %cst_88 {dimension_numbers = #tpu.dot_dimension_numbers<[1], [0], [0], [1], [0, 0, 1, 1], [], []>} : vector<8x128xbf16>, vector<128x512xbf16>, vector<8x512xf32> -> vector<8x512xf32>
      %343 = arith.addf %339, %342 : vector<8x512xf32>
      %344 = vector.extract_strided_slice %343 {offsets = [0, 0], sizes = [8, 128], strides = [1, 1]} : vector<8x512xf32> to vector<8x128xf32>
      %345 = arith.negf %344 : vector<8x128xf32>
      %346 = math.exp %345 : vector<8x128xf32>
      %cst_89 = arith.constant 1.000000e+00 : f32
      %347 = vector.broadcast %cst_89 : f32 to vector<8x128xf32>
      %348 = arith.addf %347, %346 : vector<8x128xf32>
      %349 = arith.divf %347, %348 : vector<8x128xf32>
      %350 = vector.extract_strided_slice %343 {offsets = [0, 128], sizes = [8, 128], strides = [1, 1]} : vector<8x512xf32> to vector<8x128xf32>
      %351 = arith.negf %350 : vector<8x128xf32>
      %352 = math.exp %351 : vector<8x128xf32>
      %cst_90 = arith.constant 1.000000e+00 : f32
      %353 = vector.broadcast %cst_90 : f32 to vector<8x128xf32>
      %354 = arith.addf %353, %352 : vector<8x128xf32>
      %355 = arith.divf %353, %354 : vector<8x128xf32>
      %356 = vector.extract_strided_slice %343 {offsets = [0, 256], sizes = [8, 128], strides = [1, 1]} : vector<8x512xf32> to vector<8x128xf32>
      %357 = math.tanh %356 : vector<8x128xf32>
      %358 = vector.extract_strided_slice %343 {offsets = [0, 384], sizes = [8, 128], strides = [1, 1]} : vector<8x512xf32> to vector<8x128xf32>
      %359 = arith.negf %358 : vector<8x128xf32>
      %360 = math.exp %359 : vector<8x128xf32>
      %cst_91 = arith.constant 1.000000e+00 : f32
      %361 = vector.broadcast %cst_91 : f32 to vector<8x128xf32>
      %362 = arith.addf %361, %360 : vector<8x128xf32>
      %363 = arith.divf %361, %362 : vector<8x128xf32>
      %364 = arith.mulf %355, %302 : vector<8x128xf32>
      %365 = arith.mulf %349, %357 : vector<8x128xf32>
      %366 = arith.addf %364, %365 : vector<8x128xf32>
      %367 = math.tanh %366 : vector<8x128xf32>
      %368 = arith.mulf %363, %367 : vector<8x128xf32>
      %369 = arith.truncf %368 : vector<8x128xf32> to vector<8x128xbf16>
      %370 = arith.truncf %335 : vector<8x128xf32> to vector<8x128xbf16>
      %371 = tpu.concatenate %369, %370 in 1 : vector<8x128xbf16>, vector<8x128xbf16> -> vector<8x256xbf16>
      %c0_92 = arith.constant 0 : index
      %c0_93 = arith.constant 0 : index
      %372 = vector.load %arg3[%c0_92, %c0_93] : memref<256x512xbf16, #tpu.memory_space<vmem>>, vector<256x512xbf16>
      %cst_94 = arith.constant dense<0.000000e+00> : vector<8x512xf32>
      %373 = tpu.matmul %371, %372, %cst_94 {dimension_numbers = #tpu.dot_dimension_numbers<[1], [0], [0], [1], [0, 0, 1, 1], [], []>} : vector<8x256xbf16>, vector<256x512xbf16>, vector<8x512xf32> -> vector<8x512xf32>
      %374 = arith.addf %373, %5 : vector<8x512xf32>
      %375 = vector.extract_strided_slice %374 {offsets = [0, 0], sizes = [8, 128], strides = [1, 1]} : vector<8x512xf32> to vector<8x128xf32>
      %376 = arith.negf %375 : vector<8x128xf32>
      %377 = math.exp %376 : vector<8x128xf32>
      %cst_95 = arith.constant 1.000000e+00 : f32
      %378 = vector.broadcast %cst_95 : f32 to vector<8x128xf32>
      %379 = arith.addf %378, %377 : vector<8x128xf32>
      %380 = arith.divf %378, %379 : vector<8x128xf32>
      %381 = vector.extract_strided_slice %374 {offsets = [0, 128], sizes = [8, 128], strides = [1, 1]} : vector<8x512xf32> to vector<8x128xf32>
      %382 = arith.negf %381 : vector<8x128xf32>
      %383 = math.exp %382 : vector<8x128xf32>
      %cst_96 = arith.constant 1.000000e+00 : f32
      %384 = vector.broadcast %cst_96 : f32 to vector<8x128xf32>
      %385 = arith.addf %384, %383 : vector<8x128xf32>
      %386 = arith.divf %384, %385 : vector<8x128xf32>
      %387 = vector.extract_strided_slice %374 {offsets = [0, 256], sizes = [8, 128], strides = [1, 1]} : vector<8x512xf32> to vector<8x128xf32>
      %388 = math.tanh %387 : vector<8x128xf32>
      %389 = vector.extract_strided_slice %374 {offsets = [0, 384], sizes = [8, 128], strides = [1, 1]} : vector<8x512xf32> to vector<8x128xf32>
      %390 = arith.negf %389 : vector<8x128xf32>
      %391 = math.exp %390 : vector<8x128xf32>
      %cst_97 = arith.constant 1.000000e+00 : f32
      %392 = vector.broadcast %cst_97 : f32 to vector<8x128xf32>
      %393 = arith.addf %392, %391 : vector<8x128xf32>
      %394 = arith.divf %392, %393 : vector<8x128xf32>
      %395 = arith.mulf %386, %333 : vector<8x128xf32>
      %396 = arith.mulf %380, %388 : vector<8x128xf32>
      %397 = arith.addf %395, %396 : vector<8x128xf32>
      %398 = math.tanh %397 : vector<8x128xf32>
      %399 = arith.mulf %394, %398 : vector<8x128xf32>
      %c6_i32 = arith.constant 6 : i32
      %400 = arith.index_cast %c6_i32 : i32 to index
      %c0_98 = arith.constant 0 : index
      %c0_99 = arith.constant 0 : index
      %401 = vector.load %arg1[%400, %c0_98, %c0_99] : memref<8x8x512xbf16, #tpu.memory_space<vmem>>, vector<1x8x512xbf16>
      %402 = vector.shape_cast %401 : vector<1x8x512xbf16> to vector<8x512xbf16>
      %403 = arith.extf %402 : vector<8x512xbf16> to vector<8x512xf32>
      %404 = arith.truncf %368 : vector<8x128xf32> to vector<8x128xbf16>
      %c0_100 = arith.constant 0 : index
      %c0_101 = arith.constant 0 : index
      %405 = vector.load %arg2[%c0_100, %c0_101] : memref<128x512xbf16, #tpu.memory_space<vmem>>, vector<128x512xbf16>
      %cst_102 = arith.constant dense<0.000000e+00> : vector<8x512xf32>
      %406 = tpu.matmul %404, %405, %cst_102 {dimension_numbers = #tpu.dot_dimension_numbers<[1], [0], [0], [1], [0, 0, 1, 1], [], []>} : vector<8x128xbf16>, vector<128x512xbf16>, vector<8x512xf32> -> vector<8x512xf32>
      %407 = arith.addf %403, %406 : vector<8x512xf32>
      %408 = vector.extract_strided_slice %407 {offsets = [0, 0], sizes = [8, 128], strides = [1, 1]} : vector<8x512xf32> to vector<8x128xf32>
      %409 = arith.negf %408 : vector<8x128xf32>
      %410 = math.exp %409 : vector<8x128xf32>
      %cst_103 = arith.constant 1.000000e+00 : f32
      %411 = vector.broadcast %cst_103 : f32 to vector<8x128xf32>
      %412 = arith.addf %411, %410 : vector<8x128xf32>
      %413 = arith.divf %411, %412 : vector<8x128xf32>
      %414 = vector.extract_strided_slice %407 {offsets = [0, 128], sizes = [8, 128], strides = [1, 1]} : vector<8x512xf32> to vector<8x128xf32>
      %415 = arith.negf %414 : vector<8x128xf32>
      %416 = math.exp %415 : vector<8x128xf32>
      %cst_104 = arith.constant 1.000000e+00 : f32
      %417 = vector.broadcast %cst_104 : f32 to vector<8x128xf32>
      %418 = arith.addf %417, %416 : vector<8x128xf32>
      %419 = arith.divf %417, %418 : vector<8x128xf32>
      %420 = vector.extract_strided_slice %407 {offsets = [0, 256], sizes = [8, 128], strides = [1, 1]} : vector<8x512xf32> to vector<8x128xf32>
      %421 = math.tanh %420 : vector<8x128xf32>
      %422 = vector.extract_strided_slice %407 {offsets = [0, 384], sizes = [8, 128], strides = [1, 1]} : vector<8x512xf32> to vector<8x128xf32>
      %423 = arith.negf %422 : vector<8x128xf32>
      %424 = math.exp %423 : vector<8x128xf32>
      %cst_105 = arith.constant 1.000000e+00 : f32
      %425 = vector.broadcast %cst_105 : f32 to vector<8x128xf32>
      %426 = arith.addf %425, %424 : vector<8x128xf32>
      %427 = arith.divf %425, %426 : vector<8x128xf32>
      %428 = arith.mulf %419, %366 : vector<8x128xf32>
      %429 = arith.mulf %413, %421 : vector<8x128xf32>
      %430 = arith.addf %428, %429 : vector<8x128xf32>
      %431 = math.tanh %430 : vector<8x128xf32>
      %432 = arith.mulf %427, %431 : vector<8x128xf32>
      %433 = arith.truncf %432 : vector<8x128xf32> to vector<8x128xbf16>
      %434 = arith.truncf %399 : vector<8x128xf32> to vector<8x128xbf16>
      %435 = tpu.concatenate %433, %434 in 1 : vector<8x128xbf16>, vector<8x128xbf16> -> vector<8x256xbf16>
      %c0_106 = arith.constant 0 : index
      %c0_107 = arith.constant 0 : index
      %436 = vector.load %arg3[%c0_106, %c0_107] : memref<256x512xbf16, #tpu.memory_space<vmem>>, vector<256x512xbf16>
      %cst_108 = arith.constant dense<0.000000e+00> : vector<8x512xf32>
      %437 = tpu.matmul %435, %436, %cst_108 {dimension_numbers = #tpu.dot_dimension_numbers<[1], [0], [0], [1], [0, 0, 1, 1], [], []>} : vector<8x256xbf16>, vector<256x512xbf16>, vector<8x512xf32> -> vector<8x512xf32>
      %438 = arith.addf %437, %5 : vector<8x512xf32>
      %439 = vector.extract_strided_slice %438 {offsets = [0, 0], sizes = [8, 128], strides = [1, 1]} : vector<8x512xf32> to vector<8x128xf32>
      %440 = arith.negf %439 : vector<8x128xf32>
      %441 = math.exp %440 : vector<8x128xf32>
      %cst_109 = arith.constant 1.000000e+00 : f32
      %442 = vector.broadcast %cst_109 : f32 to vector<8x128xf32>
      %443 = arith.addf %442, %441 : vector<8x128xf32>
      %444 = arith.divf %442, %443 : vector<8x128xf32>
      %445 = vector.extract_strided_slice %438 {offsets = [0, 128], sizes = [8, 128], strides = [1, 1]} : vector<8x512xf32> to vector<8x128xf32>
      %446 = arith.negf %445 : vector<8x128xf32>
      %447 = math.exp %446 : vector<8x128xf32>
      %cst_110 = arith.constant 1.000000e+00 : f32
      %448 = vector.broadcast %cst_110 : f32 to vector<8x128xf32>
      %449 = arith.addf %448, %447 : vector<8x128xf32>
      %450 = arith.divf %448, %449 : vector<8x128xf32>
      %451 = vector.extract_strided_slice %438 {offsets = [0, 256], sizes = [8, 128], strides = [1, 1]} : vector<8x512xf32> to vector<8x128xf32>
      %452 = math.tanh %451 : vector<8x128xf32>
      %453 = vector.extract_strided_slice %438 {offsets = [0, 384], sizes = [8, 128], strides = [1, 1]} : vector<8x512xf32> to vector<8x128xf32>
      %454 = arith.negf %453 : vector<8x128xf32>
      %455 = math.exp %454 : vector<8x128xf32>
      %cst_111 = arith.constant 1.000000e+00 : f32
      %456 = vector.broadcast %cst_111 : f32 to vector<8x128xf32>
      %457 = arith.addf %456, %455 : vector<8x128xf32>
      %458 = arith.divf %456, %457 : vector<8x128xf32>
      %459 = arith.mulf %450, %397 : vector<8x128xf32>
      %460 = arith.mulf %444, %452 : vector<8x128xf32>
      %461 = arith.addf %459, %460 : vector<8x128xf32>
      %462 = math.tanh %461 : vector<8x128xf32>
      %463 = arith.mulf %458, %462 : vector<8x128xf32>
      %c7_i32 = arith.constant 7 : i32
      %464 = arith.index_cast %c7_i32 : i32 to index
      %c0_112 = arith.constant 0 : index
      %c0_113 = arith.constant 0 : index
      %465 = vector.load %arg1[%464, %c0_112, %c0_113] : memref<8x8x512xbf16, #tpu.memory_space<vmem>>, vector<1x8x512xbf16>
      %466 = vector.shape_cast %465 : vector<1x8x512xbf16> to vector<8x512xbf16>
      %467 = arith.extf %466 : vector<8x512xbf16> to vector<8x512xf32>
      %468 = arith.truncf %432 : vector<8x128xf32> to vector<8x128xbf16>
      %c0_114 = arith.constant 0 : index
      %c0_115 = arith.constant 0 : index
      %469 = vector.load %arg2[%c0_114, %c0_115] : memref<128x512xbf16, #tpu.memory_space<vmem>>, vector<128x512xbf16>
      %cst_116 = arith.constant dense<0.000000e+00> : vector<8x512xf32>
      %470 = tpu.matmul %468, %469, %cst_116 {dimension_numbers = #tpu.dot_dimension_numbers<[1], [0], [0], [1], [0, 0, 1, 1], [], []>} : vector<8x128xbf16>, vector<128x512xbf16>, vector<8x512xf32> -> vector<8x512xf32>
      %471 = arith.addf %467, %470 : vector<8x512xf32>
      %472 = vector.extract_strided_slice %471 {offsets = [0, 0], sizes = [8, 128], strides = [1, 1]} : vector<8x512xf32> to vector<8x128xf32>
      %473 = arith.negf %472 : vector<8x128xf32>
      %474 = math.exp %473 : vector<8x128xf32>
      %cst_117 = arith.constant 1.000000e+00 : f32
      %475 = vector.broadcast %cst_117 : f32 to vector<8x128xf32>
      %476 = arith.addf %475, %474 : vector<8x128xf32>
      %477 = arith.divf %475, %476 : vector<8x128xf32>
      %478 = vector.extract_strided_slice %471 {offsets = [0, 128], sizes = [8, 128], strides = [1, 1]} : vector<8x512xf32> to vector<8x128xf32>
      %479 = arith.negf %478 : vector<8x128xf32>
      %480 = math.exp %479 : vector<8x128xf32>
      %cst_118 = arith.constant 1.000000e+00 : f32
      %481 = vector.broadcast %cst_118 : f32 to vector<8x128xf32>
      %482 = arith.addf %481, %480 : vector<8x128xf32>
      %483 = arith.divf %481, %482 : vector<8x128xf32>
      %484 = vector.extract_strided_slice %471 {offsets = [0, 256], sizes = [8, 128], strides = [1, 1]} : vector<8x512xf32> to vector<8x128xf32>
      %485 = math.tanh %484 : vector<8x128xf32>
      %486 = vector.extract_strided_slice %471 {offsets = [0, 384], sizes = [8, 128], strides = [1, 1]} : vector<8x512xf32> to vector<8x128xf32>
      %487 = arith.negf %486 : vector<8x128xf32>
      %488 = math.exp %487 : vector<8x128xf32>
      %cst_119 = arith.constant 1.000000e+00 : f32
      %489 = vector.broadcast %cst_119 : f32 to vector<8x128xf32>
      %490 = arith.addf %489, %488 : vector<8x128xf32>
      %491 = arith.divf %489, %490 : vector<8x128xf32>
      %492 = arith.mulf %483, %430 : vector<8x128xf32>
      %493 = arith.mulf %477, %485 : vector<8x128xf32>
      %494 = arith.addf %492, %493 : vector<8x128xf32>
      %495 = math.tanh %494 : vector<8x128xf32>
      %496 = arith.mulf %491, %495 : vector<8x128xf32>
      %497 = arith.truncf %496 : vector<8x128xf32> to vector<8x128xbf16>
      %498 = arith.truncf %463 : vector<8x128xf32> to vector<8x128xbf16>
      %499 = tpu.concatenate %497, %498 in 1 : vector<8x128xbf16>, vector<8x128xbf16> -> vector<8x256xbf16>
      %c0_120 = arith.constant 0 : index
      %c0_121 = arith.constant 0 : index
      %500 = vector.load %arg3[%c0_120, %c0_121] : memref<256x512xbf16, #tpu.memory_space<vmem>>, vector<256x512xbf16>
      %cst_122 = arith.constant dense<0.000000e+00> : vector<8x512xf32>
      %501 = tpu.matmul %499, %500, %cst_122 {dimension_numbers = #tpu.dot_dimension_numbers<[1], [0], [0], [1], [0, 0, 1, 1], [], []>} : vector<8x256xbf16>, vector<256x512xbf16>, vector<8x512xf32> -> vector<8x512xf32>
      %502 = arith.addf %501, %5 : vector<8x512xf32>
      %503 = vector.extract_strided_slice %502 {offsets = [0, 0], sizes = [8, 128], strides = [1, 1]} : vector<8x512xf32> to vector<8x128xf32>
      %504 = arith.negf %503 : vector<8x128xf32>
      %505 = math.exp %504 : vector<8x128xf32>
      %cst_123 = arith.constant 1.000000e+00 : f32
      %506 = vector.broadcast %cst_123 : f32 to vector<8x128xf32>
      %507 = arith.addf %506, %505 : vector<8x128xf32>
      %508 = arith.divf %506, %507 : vector<8x128xf32>
      %509 = vector.extract_strided_slice %502 {offsets = [0, 128], sizes = [8, 128], strides = [1, 1]} : vector<8x512xf32> to vector<8x128xf32>
      %510 = arith.negf %509 : vector<8x128xf32>
      %511 = math.exp %510 : vector<8x128xf32>
      %cst_124 = arith.constant 1.000000e+00 : f32
      %512 = vector.broadcast %cst_124 : f32 to vector<8x128xf32>
      %513 = arith.addf %512, %511 : vector<8x128xf32>
      %514 = arith.divf %512, %513 : vector<8x128xf32>
      %515 = vector.extract_strided_slice %502 {offsets = [0, 256], sizes = [8, 128], strides = [1, 1]} : vector<8x512xf32> to vector<8x128xf32>
      %516 = math.tanh %515 : vector<8x128xf32>
      %517 = vector.extract_strided_slice %502 {offsets = [0, 384], sizes = [8, 128], strides = [1, 1]} : vector<8x512xf32> to vector<8x128xf32>
      %518 = arith.negf %517 : vector<8x128xf32>
      %519 = math.exp %518 : vector<8x128xf32>
      %cst_125 = arith.constant 1.000000e+00 : f32
      %520 = vector.broadcast %cst_125 : f32 to vector<8x128xf32>
      %521 = arith.addf %520, %519 : vector<8x128xf32>
      %522 = arith.divf %520, %521 : vector<8x128xf32>
      %523 = arith.mulf %514, %461 : vector<8x128xf32>
      %524 = arith.mulf %508, %516 : vector<8x128xf32>
      %525 = arith.addf %523, %524 : vector<8x128xf32>
      %526 = math.tanh %525 : vector<8x128xf32>
      %527 = arith.mulf %522, %526 : vector<8x128xf32>
      %c8_i32 = arith.constant 8 : i32
      %c0_126 = arith.constant 0 : index
      %c0_127 = arith.constant 0 : index
      %528 = vector.load %arg5[%c0_126, %c0_127] : memref<128x128xf32, #tpu.memory_space<vmem>>, vector<128x128xf32>
      %cst_128 = arith.constant dense<0.000000e+00> : vector<8x128xf32>
      %529 = tpu.matmul %527, %528, %cst_128 {dimension_numbers = #tpu.dot_dimension_numbers<[1], [0], [0], [1], [0, 0, 1, 1], [], []>} : vector<8x128xf32>, vector<128x128xf32>, vector<8x128xf32> -> vector<8x128xf32>
      %c0_129 = arith.constant 0 : index
      %c0_130 = arith.constant 0 : index
      %530 = vector.load %arg6[%c0_129, %c0_130] : memref<1x128xf32, #tpu.memory_space<vmem>>, vector<1x128xf32>
      %531 = vector.broadcast %530 : vector<1x128xf32> to vector<8x128xf32>
      %532 = arith.addf %529, %531 : vector<8x128xf32>
      %c0_131 = arith.constant 0 : index
      %c0_132 = arith.constant 0 : index
      %533 = vector.load %arg7[%c0_131, %c0_132] : memref<8x128xf32, #tpu.memory_space<vmem>>, vector<8x128xf32>
      tpu.vector_store %arg7[%c0_131, %c0_132], %532 {strides = array<i32>} : memref<8x128xf32, #tpu.memory_space<vmem>>, vector<8x128xf32>,
    } else {
    }
    return
  }
  func.func @transform_0(%arg0: i32) -> (i32, i32, i32) {
    %c0_i32 = arith.constant 0 : i32
    %c0_i32_0 = arith.constant 0 : i32
    %c0_i32_1 = arith.constant 0 : i32
    return %arg0, %c0_i32, %c0_i32_0 : i32, i32, i32
  }
  func.func @transform_1(%arg0: i32) -> (i32, i32) {
    %c0_i32 = arith.constant 0 : i32
    %c0_i32_0 = arith.constant 0 : i32
    %c0_i32_1 = arith.constant 0 : i32
    return %c0_i32, %c0_i32_0 : i32, i32
  }
  func.func @transform_2(%arg0: i32) -> (i32, i32) {
    %c0_i32 = arith.constant 0 : i32
    %c0_i32_0 = arith.constant 0 : i32
    %c0_i32_1 = arith.constant 0 : i32
    return %c0_i32, %c0_i32_0 : i32, i32
  }
  func.func @transform_3(%arg0: i32) -> (i32, i32) {
    %c0_i32 = arith.constant 0 : i32
    %c0_i32_0 = arith.constant 0 : i32
    %c0_i32_1 = arith.constant 0 : i32
    return %c0_i32, %c0_i32_0 : i32, i32
  }
  func.func @transform_4(%arg0: i32) -> (i32, i32) {
    %c0_i32 = arith.constant 0 : i32
    %c0_i32_0 = arith.constant 0 : i32
    %c0_i32_1 = arith.constant 0 : i32
    return %c0_i32, %c0_i32_0 : i32, i32
  }
  func.func @transform_5(%arg0: i32) -> (i32, i32) {
    %c0_i32 = arith.constant 0 : i32
    %c0_i32_0 = arith.constant 0 : i32
    %c0_i32_1 = arith.constant 0 : i32
    return %c0_i32, %c0_i32_0 : i32, i32
  }
  func.func @transform_6(%arg0: i32) -> (i32, i32) {
    %c0_i32 = arith.constant 0 : i32
    %c0_i32_0 = arith.constant 0 : i32
    %c0_i32_1 = arith.constant 0 : i32
    return %c0_i32, %c0_i32_0 : i32, i32
  }
}

</mosaic_0001>

<bundles_post_ra>
// kernel: narnet_forward.1
= control target key start
LH: loop header
LB: loop body
LE: loop exit
PB: predicated region body
PF: predicated region fallthrough
CT: control target
= control target key end

     0   :  { %v8359_v1 = vmov 0   ;;  %v5889_v38 = vmov 0.0|0.0   ;;  %vm5891_vm0 = vmmov 0   ;;  %s8352_s1 = inlined_call_operand.vmem [shape: bf16[128,512], index: 1, kind: input, shape index: {}]   ;;  %s8353_s2 = inlined_call_operand.vmem [shape: bf16[256,512], index: 2, kind: input, shape index: {}]   ;;  %s8354_s0 = inlined_call_operand.vmem [shape: bf16[8,8,512], index: 0, kind: input, shape index: {}]   ;;  %s8355_s3 = inlined_call_operand.vmem [shape: f32[1,512], index: 3, kind: input, shape index: {}]   ;;  %s8356_s4 = inlined_call_operand.vmem [shape: f32[128,128], index: 4, kind: input, shape index: {}]   ;;  %s8357_s5 = inlined_call_operand.vmem [shape: f32[1,128], index: 5, kind: input, shape index: {}]   ;;  %s8358_s6 = inlined_call_operand.vmem [shape: f32[8,128], index: 6, kind: output, shape index: {}]  }
   0x1   :  { %v5930_v0 = vld [vmem:[%s8352_s1 + $0xe4] ss:$16 sps:$4 sm:$0xff]   ;;  %2680 = vmatprep.mubr.bf16.mxu0 %v8359_v1  ;;  %2721 = vmatprep.mubr.bf16.mxu1 %v8359_v1  ;;  %v5937_v2 = vld [vmem:[%s8352_s1 + $0xe0] ss:$16 sps:$4 sm:$0xff]   ;;  %v5960_v6 = vld [vmem:[%s8352_s1 + $0xec] ss:$16 sps:$4 sm:$0xff]  }
   0x2   :  { %8643 = vst [vmem:[#allocation6_spill] sm:$0xff] %v5930_v0  ;;  %2648 = vmatprep.subr.bf16.mxu0 %v5930_v0  ;;  %v5943_v3 = vld [vmem:[%s8352_s1 + $0xc4] ss:$16 sps:$4 sm:$0xff]   ;;  %v5949_v4 = vld [vmem:[%s8352_s1 + $0xc0] ss:$16 sps:$4 sm:$0xff]   ;;  %8644 = vst [vmem:[#allocation7_spill] sm:$0xff] %v5960_v6  ;;  %2689 = vmatprep.subr.bf16.mxu1 %v5960_v6 }
   0x3   :  { %2649 = vmatpush1.bf16.msra.mxu0 %v5937_v2  ;;  %v5955_v5 = vld [vmem:[%s8352_s1 + $0xa4] ss:$16 sps:$4 sm:$0xff]   ;;  %v5965_v7 = vld [vmem:[%s8352_s1 + $0xe8] ss:$16 sps:$4 sm:$0xff]   ;;  %v5971_v8 = vld [vmem:[%s8352_s1 + $0xa0] ss:$16 sps:$4 sm:$0xff]  }
   0x4   :  { %2650 = vmatprep.subr.bf16.mxu0 %v5943_v3  ;;  %v5978_v9 = vld [vmem:[%s8352_s1 + $0x84] ss:$16 sps:$4 sm:$0xff]   ;;  %2690 = vmatpush1.bf16.msra.mxu1 %v5965_v7  ;;  %v5984_v10 = vld [vmem:[%s8352_s1 + $0xcc] ss:$16 sps:$4 sm:$0xff]   ;;  %v5989_v11 = vld [vmem:[%s8352_s1 + $0xc8] ss:$16 sps:$4 sm:$0xff]  }
   0x5   :  { %2691 = vmatprep.subr.bf16.mxu1 %v5984_v10  ;;  %v5996_v12 = vld [vmem:[%s8352_s1 + $0x80] ss:$16 sps:$4 sm:$0xff]   ;;  %v6001_v13 = vld [vmem:[%s8352_s1 + $0x64] ss:$16 sps:$4 sm:$0xff]   ;;  %v6006_v14 = vld [vmem:[%s8352_s1 + $0xac] ss:$16 sps:$4 sm:$0xff]  }
   0x6   :  { %v6013_v15 = vld [vmem:[%s8352_s1 + $0xa8] ss:$16 sps:$4 sm:$0xff]   ;;  %v6019_v16 = vld [vmem:[%s8352_s1 + $0x8c] ss:$16 sps:$4 sm:$0xff]   ;;  %v6025_v17 = vld [vmem:[%s8352_s1 + $0x60] ss:$16 sps:$4 sm:$0xff]  }
   0x7   :  { %2651 = vmatpush1.bf16.msra.mxu0 %v5949_v4  ;;  %v6031_v18 = vld [vmem:[%s8352_s1 + $0x44] ss:$16 sps:$4 sm:$0xff]   ;;  %v6037_v19 = vld [vmem:[%s8352_s1 + $0x88] ss:$16 sps:$4 sm:$0xff]   ;;  %v6043_v20 = vld [vmem:[%s8352_s1 + $0x6c] ss:$16 sps:$4 sm:$0xff]  }
   0x8   :  { %2652 = vmatprep.subr.bf16.mxu0 %v5955_v5  ;;  %2692 = vmatpush1.bf16.msra.mxu1 %v5989_v11  ;;  %v6049_v21 = vld [vmem:[%s8352_s1 + $0x40] ss:$16 sps:$4 sm:$0xff]   ;;  %v6054_v22 = vld [vmem:[%s8352_s1 + $0x24] ss:$16 sps:$4 sm:$0xff]   ;;  %v6061_v23 = vld [vmem:[%s8352_s1 + $0x68] ss:$16 sps:$4 sm:$0xff]  }
   0x9   :  { %2693 = vmatprep.subr.bf16.mxu1 %v6006_v14  ;;  %v6067_v24 = vld [vmem:[%s8352_s1 + $0x4c] ss:$16 sps:$4 sm:$0xff]   ;;  %v6073_v25 = vld [vmem:[%s8352_s1 + $0x20] ss:$16 sps:$4 sm:$0xff]   ;;  %v6078_v26 = vld [vmem:[%s8352_s1 + $0x4] ss:$16 sps:$4 sm:$0xff]  }
   0xa   :  { %v6085_v27 = vld [vmem:[%s8352_s1 + $0x48] ss:$16 sps:$4 sm:$0xff]   ;;  %v6091_v28 = vld [vmem:[%s8352_s1 + $0x2c] ss:$16 sps:$4 sm:$0xff]   ;;  %v6096_v29 = vld [vmem:[%s8352_s1] ss:$16 sps:$4 sm:$0xff]  }
   0xb   :  { %2653 = vmatpush1.bf16.msra.mxu0 %v5971_v8  ;;  %v6101_v30 = vld [vmem:[%s8352_s1 + $0x28] ss:$16 sps:$4 sm:$0xff]   ;;  %v6106_v31 = vld [vmem:[%s8353_s2 + $0xe4] ss:$16 sps:$4 sm:$0xff]   ;;  %v6112_v32 = vld [vmem:[%s8352_s1 + $0xc] ss:$16 sps:$4 sm:$0xff]  }
   0xc   :  { %2654 = vmatprep.subr.bf16.mxu0 %v5978_v9  ;;  %2694 = vmatpush1.bf16.msra.mxu1 %v6013_v15  ;;  %v6120_v33 = vld [vmem:[%s8353_s2 + $0xe0] ss:$16 sps:$4 sm:$0xff]   ;;  %v6125_v34 = vld [vmem:[%s8352_s1 + $0x8] ss:$16 sps:$4 sm:$0xff]   ;;  %v6130_v35 = vld [vmem:[%s8353_s2 + $0xc4] ss:$16 sps:$4 sm:$0xff]  }
   0xd   :  { %2695 = vmatprep.subr.bf16.mxu1 %v6019_v16  ;;  %v6136_v36 = vld [vmem:[%s8353_s2 + $0xec] ss:$16 sps:$4 sm:$0xff]   ;;  %v6144_v37 = vld [vmem:[%s8353_s2 + $0xc0] ss:$16 sps:$4 sm:$0xff]   ;;  %v6149_v39 = vld [vmem:[%s8353_s2 + $0xe8] ss:$16 sps:$4 sm:$0xff]  }
   0xe   :  { %v6155_v40 = vld [vmem:[%s8353_s2 + $0xcc] ss:$16 sps:$4 sm:$0xff]   ;;  %v6163_v41 = vld [vmem:[%s8353_s2 + $0xc8] ss:$16 sps:$4 sm:$0xff]   ;;  %v6172_v42 = vld [vmem:[%s8353_s2 + $0xa4] ss:$16 sps:$4 sm:$0xff]  }
   0xf   :  { %2655 = vmatpush1.bf16.msra.mxu0 %v5996_v12  ;;  %v6177_v43 = vld [vmem:[%s8353_s2 + $0xac] ss:$16 sps:$4 sm:$0xff]   ;;  %v6182_v44 = vld [vmem:[%s8353_s2 + $0xa0] ss:$16 sps:$4 sm:$0xff]   ;;  %v6187_v45 = vld [vmem:[%s8353_s2 + $0xa8] ss:$16 sps:$4 sm:$0xff]  }
  0x10   :  { %2656 = vmatprep.subr.bf16.mxu0 %v6001_v13  ;;  %2696 = vmatpush1.bf16.msra.mxu1 %v6037_v19  ;;  %v6196_v46 = vld [vmem:[%s8353_s2 + $0x84] ss:$16 sps:$4 sm:$0xff]   ;;  %v6201_v47 = vld [vmem:[%s8353_s2 + $0x8c] ss:$16 sps:$4 sm:$0xff]   ;;  %v6206_v48 = vld [vmem:[%s8353_s2 + $0x80] ss:$16 sps:$4 sm:$0xff]  }
  0x11   :  { %2697 = vmatprep.subr.bf16.mxu1 %v6043_v20  ;;  %8645 = vst [vmem:[#allocation8_spill] sm:$0xff] %v6206_v48  ;;  %v6211_v49 = vld [vmem:[%s8353_s2 + $0x88] ss:$16 sps:$4 sm:$0xff]   ;;  %v6220_v50 = vld [vmem:[%s8353_s2 + $0x64] ss:$16 sps:$4 sm:$0xff]  }
  0x12   :  { %8646 = vst [vmem:[#allocation9_spill] sm:$0xff] %v6211_v49  ;;  %8647 = vst [vmem:[#allocation10_spill] sm:$0xff] %v6220_v50  ;;  %v6225_v51 = vld [vmem:[%s8353_s2 + $0x6c] ss:$16 sps:$4 sm:$0xff]   ;;  %v6230_v52 = vld [vmem:[%s8353_s2 + $0x60] ss:$16 sps:$4 sm:$0xff]  }
  0x13   :  { %2657 = vmatpush1.bf16.msra.mxu0 %v6025_v17  ;;  %8648 = vst [vmem:[#allocation11_spill] sm:$0xff] %v6225_v51  ;;  %8649 = vst [vmem:[#allocation12_spill] sm:$0xff] %v6230_v52  ;;  %v6235_v53 = vld [vmem:[%s8353_s2 + $0x68] ss:$16 sps:$4 sm:$0xff]   ;;  %v6244_v54 = vld [vmem:[%s8353_s2 + $0x44] ss:$16 sps:$4 sm:$0xff]  }
  0x14   :  { %2658 = vmatprep.subr.bf16.mxu0 %v6031_v18  ;;  %2698 = vmatpush1.bf16.msra.mxu1 %v6061_v23  ;;  %8650 = vst [vmem:[#allocation13_spill] sm:$0xff] %v6235_v53  ;;  %8651 = vst [vmem:[#allocation14_spill] sm:$0xff] %v6244_v54  ;;  %v6249_v55 = vld [vmem:[%s8353_s2 + $0x4c] ss:$16 sps:$4 sm:$0xff]   ;;  %v6254_v56 = vld [vmem:[%s8353_s2 + $0x40] ss:$16 sps:$4 sm:$0xff]  }
  0x15   :  { %2699 = vmatprep.subr.bf16.mxu1 %v6067_v24  ;;  %8652 = vst [vmem:[#allocation15_spill] sm:$0xff] %v6249_v55  ;;  %8653 = vst [vmem:[#allocation16_spill] sm:$0xff] %v6254_v56  ;;  %v6259_v57 = vld [vmem:[%s8353_s2 + $0x48] ss:$16 sps:$4 sm:$0xff]   ;;  %v6268_v58 = vld [vmem:[%s8353_s2 + $0x24] ss:$16 sps:$4 sm:$0xff]  }
  0x16   :  { %8654 = vst [vmem:[#allocation17_spill] sm:$0xff] %v6259_v57  ;;  %8655 = vst [vmem:[#allocation18_spill] sm:$0xff] %v6268_v58  ;;  %v6273_v59 = vld [vmem:[%s8353_s2 + $0x2c] ss:$16 sps:$4 sm:$0xff]   ;;  %v6278_v60 = vld [vmem:[%s8353_s2 + $0x20] ss:$16 sps:$4 sm:$0xff]  }
  0x17   :  { %2659 = vmatpush1.bf16.msra.mxu0 %v6049_v21  ;;  %8656 = vst [vmem:[#allocation19_spill] sm:$0xff] %v6273_v59  ;;  %8657 = vst [vmem:[#allocation20_spill] sm:$0xff] %v6278_v60  ;;  %v6283_v61 = vld [vmem:[%s8353_s2 + $0x28] ss:$16 sps:$4 sm:$0xff]   ;;  %v6292_v62 = vld [vmem:[%s8353_s2 + $0x4] ss:$16 sps:$4 sm:$0xff]  }
  0x18   :  { %2660 = vmatprep.subr.bf16.mxu0 %v6054_v22  ;;  %2700 = vmatpush1.bf16.msra.mxu1 %v6085_v27  ;;  %8658 = vst [vmem:[#allocation21_spill] sm:$0xff] %v6283_v61  ;;  %8659 = vst [vmem:[#allocation22_spill] sm:$0xff] %v6292_v62  ;;  %v6297_v63 = vld [vmem:[%s8353_s2 + $0xc] ss:$16 sps:$4 sm:$0xff]   ;;  %v6307_v1 = vld [vmem:[%s8353_s2 + $0x8] ss:$16 sps:$4 sm:$0xff]  }
  0x19   :  { %2701 = vmatprep.subr.bf16.mxu1 %v6091_v28  ;;  %8660 = vst [vmem:[#allocation23_spill] sm:$0xff] %v6297_v63  ;;  %8662 = vst [vmem:[#allocation25_spill] sm:$0xff] %v6307_v1 }
  0x1b   :  { %2661 = vmatpush1.bf16.msra.mxu0 %v6073_v25 }
  0x1c   :  { %2662 = vmatprep.subr.bf16.mxu0 %v6078_v26  ;;  %2702 = vmatpush1.bf16.msra.mxu1 %v6101_v30 }
  0x1d   :  { %2703 = vmatprep.subr.bf16.mxu1 %v6112_v32 }
  0x1f   :  { %2663 = vmatpush1.bf16.msra.mxu0 %v6096_v29 }
  0x20   :  { %3144 = vmatprep.subr.bf16.mxu0 %v6106_v31  ;;  %2704 = vmatpush1.bf16.msra.mxu1 %v6125_v34 }
  0x21   :  { %3185 = vmatprep.subr.bf16.mxu1 %v6136_v36 }
  0x22   :  { %2681 = vmatmul.mubr.bf16.vlgmr.msra.gmra.mxu0 %v5889_v38 }
  0x23   :  { %3145 = vmatpush1.bf16.msra.mxu0 %v6120_v33  ;;  %3176 = vmatprep.mubr.bf16.mxu0 %v5889_v38 }
  0x24   :  { %3146 = vmatprep.subr.bf16.mxu0 %v6130_v35  ;;  %2722 = vmatmul.mubr.bf16.vlgmr.msra.gmra.mxu1 %v5889_v38 }
  0x25   :  { %3186 = vmatpush1.bf16.msra.mxu1 %v6149_v39  ;;  %3217 = vmatprep.mubr.bf16.mxu1 %v5889_v38  ;;  %v6302_v38 = vld [vmem:[%s8353_s2] ss:$16 sps:$4 sm:$0xff]  }
  0x26   :  { %3187 = vmatprep.subr.bf16.mxu1 %v6155_v40  ;;  %8661 = vst [vmem:[#allocation24_spill] sm:$0xff] %v6302_v38 }
  0x27   :  { %3147 = vmatpush1.bf16.msra.mxu0 %v6144_v37 }
  0x28   :  { %3148 = vmatprep.subr.bf16.mxu0 %v6172_v42 }
  0x29   :  { %3188 = vmatpush1.bf16.msra.mxu1 %v6163_v41 }
  0x2a   :  { %3189 = vmatprep.subr.bf16.mxu1 %v6177_v43 }
  0x2b   :  { %3149 = vmatpush1.bf16.msra.mxu0 %v6182_v44 }
  0x2c   :  { %3150 = vmatprep.subr.bf16.mxu0 %v6196_v46 }
  0x2d   :  { %3190 = vmatpush1.bf16.msra.mxu1 %v6187_v45 }
  0x2e   :  { %3191 = vmatprep.subr.bf16.mxu1 %v6201_v47 }
  0x2f   :  { %3151 = vmatpush1.bf16.msra.mxu0 %v6206_v48 }
  0x30   :  { %3152 = vmatprep.subr.bf16.mxu0 %v6220_v50 }
  0x31   :  { %3192 = vmatpush1.bf16.msra.mxu1 %v6211_v49 }
  0x32   :  { %3193 = vmatprep.subr.bf16.mxu1 %v6225_v51 }
  0x33   :  { %3153 = vmatpush1.bf16.msra.mxu0 %v6230_v52 }
  0x34   :  { %3154 = vmatprep.subr.bf16.mxu0 %v6244_v54 }
  0x35   :  { %3194 = vmatpush1.bf16.msra.mxu1 %v6235_v53 }
  0x36   :  { %3195 = vmatprep.subr.bf16.mxu1 %v6249_v55 }
  0x37   :  { %3155 = vmatpush1.bf16.msra.mxu0 %v6254_v56 }
  0x38   :  { %3156 = vmatprep.subr.bf16.mxu0 %v6268_v58 }
  0x39   :  { %3196 = vmatpush1.bf16.msra.mxu1 %v6259_v57 }
  0x3a   :  { %3197 = vmatprep.subr.bf16.mxu1 %v6273_v59  ;;  %v6446_v59 = vld [vmem:[%s8353_s2 + $0x140] ss:$16 sps:$4 sm:$0xff]  }
  0x3b   :  { %3157 = vmatpush1.bf16.msra.mxu0 %v6278_v60  ;;  %v6321_v60 = vld [vmem:[%s8353_s2 + $0x1ec] ss:$16 sps:$4 sm:$0xff]   ;;  %8685 = vst [vmem:[#allocation48_spill] sm:$0xff] %v6446_v59 }
  0x3c   :  { %3158 = vmatprep.subr.bf16.mxu0 %v6292_v62  ;;  %8664 = vst [vmem:[#allocation27_spill] sm:$0xff] %v6321_v60  ;;  %v6326_v62 = vld [vmem:[%s8353_s2 + $0x1e0] ss:$16 sps:$4 sm:$0xff]  }
  0x3d   :  { %3198 = vmatpush1.bf16.msra.mxu1 %v6283_v61  ;;  %v6316_v61 = vld [vmem:[%s8353_s2 + $0x1e4] ss:$16 sps:$4 sm:$0xff]   ;;  %8665 = vst [vmem:[#allocation28_spill] sm:$0xff] %v6326_v62 }
  0x3e   :  { %3199 = vmatprep.subr.bf16.mxu1 %v6297_v63  ;;  %8663 = vst [vmem:[#allocation26_spill] sm:$0xff] %v6316_v61  ;;  %v6345_v63 = vld [vmem:[%s8353_s2 + $0x1cc] ss:$16 sps:$4 sm:$0xff]  }
  0x3f   :  { %3159 = vmatpush1.bf16.msra.mxu0 %v6302_v38  ;;  %v6331_v38 = vld [vmem:[%s8353_s2 + $0x1e8] ss:$16 sps:$4 sm:$0xff]   ;;  %8668 = vst [vmem:[#allocation31_spill] sm:$0xff] %v6345_v63 }
  0x40   :  { %8666 = vst [vmem:[#allocation29_spill] sm:$0xff] %v6331_v38  ;;  %3160 = vmatprep.subr.bf16.mxu0 %v6316_v61  ;;  %v6350_v61 = vld [vmem:[%s8353_s2 + $0x1c0] ss:$16 sps:$4 sm:$0xff]  }
  0x41   :  { %3200 = vmatpush1.bf16.msra.mxu1 %v6307_v1  ;;  %v6340_v1 = vld [vmem:[%s8353_s2 + $0x1c4] ss:$16 sps:$4 sm:$0xff]   ;;  %8669 = vst [vmem:[#allocation32_spill] sm:$0xff] %v6350_v61 }
  0x42   :  { %3201 = vmatprep.subr.bf16.mxu1 %v6321_v60  ;;  %8667 = vst [vmem:[#allocation30_spill] sm:$0xff] %v6340_v1  ;;  %v6369_v60 = vld [vmem:[%s8353_s2 + $0x1ac] ss:$16 sps:$4 sm:$0xff]  }
  0x43   :  { %3161 = vmatpush2.bf16.msra.mxu0 %v6326_v62  ;;  %v6355_v62 = vld [vmem:[%s8353_s2 + $0x1c8] ss:$16 sps:$4 sm:$0xff]   ;;  %8672 = vst [vmem:[#allocation35_spill] sm:$0xff] %v6369_v60 }
  0x44   :  { %8670 = vst [vmem:[#allocation33_spill] sm:$0xff] %v6355_v62  ;;  %3162 = vmatprep.subr.bf16.mxu0 %v6340_v1  ;;  %v6374_v1 = vld [vmem:[%s8353_s2 + $0x1a0] ss:$16 sps:$4 sm:$0xff]  }
  0x45   :  { %3202 = vmatpush2.bf16.msra.mxu1 %v6331_v38  ;;  %v6364_v38 = vld [vmem:[%s8353_s2 + $0x1a4] ss:$16 sps:$4 sm:$0xff]   ;;  %8673 = vst [vmem:[#allocation36_spill] sm:$0xff] %v6374_v1 }
  0x46   :  { %3203 = vmatprep.subr.bf16.mxu1 %v6345_v63  ;;  %8671 = vst [vmem:[#allocation34_spill] sm:$0xff] %v6364_v38  ;;  %v6393_v63 = vld [vmem:[%s8353_s2 + $0x18c] ss:$16 sps:$4 sm:$0xff]  }
  0x47   :  { %3163 = vmatpush2.bf16.msra.mxu0 %v6350_v61  ;;  %v6379_v61 = vld [vmem:[%s8353_s2 + $0x1a8] ss:$16 sps:$4 sm:$0xff]   ;;  %8676 = vst [vmem:[#allocation39_spill] sm:$0xff] %v6393_v63 }
  0x48   :  { %8674 = vst [vmem:[#allocation37_spill] sm:$0xff] %v6379_v61  ;;  %3164 = vmatprep.subr.bf16.mxu0 %v6364_v38  ;;  %v6398_v38 = vld [vmem:[%s8353_s2 + $0x180] ss:$16 sps:$4 sm:$0xff]  }
  0x49   :  { %3204 = vmatpush2.bf16.msra.mxu1 %v6355_v62  ;;  %v6388_v62 = vld [vmem:[%s8353_s2 + $0x184] ss:$16 sps:$4 sm:$0xff]   ;;  %8677 = vst [vmem:[#allocation40_spill] sm:$0xff] %v6398_v38 }
  0x4a   :  { %3205 = vmatprep.subr.bf16.mxu1 %v6369_v60  ;;  %8675 = vst [vmem:[#allocation38_spill] sm:$0xff] %v6388_v62  ;;  %v6417_v60 = vld [vmem:[%s8353_s2 + $0x16c] ss:$16 sps:$4 sm:$0xff]  }
  0x4b   :  { %3165 = vmatpush2.bf16.msra.mxu0 %v6374_v1  ;;  %v6403_v1 = vld [vmem:[%s8353_s2 + $0x188] ss:$16 sps:$4 sm:$0xff]   ;;  %8680 = vst [vmem:[#allocation43_spill] sm:$0xff] %v6417_v60 }
  0x4c   :  { %8678 = vst [vmem:[#allocation41_spill] sm:$0xff] %v6403_v1  ;;  %3166 = vmatprep.subr.bf16.mxu0 %v6388_v62  ;;  %v6422_v62 = vld [vmem:[%s8353_s2 + $0x160] ss:$16 sps:$4 sm:$0xff]  }
  0x4d   :  { %3206 = vmatpush2.bf16.msra.mxu1 %v6379_v61  ;;  %v6412_v61 = vld [vmem:[%s8353_s2 + $0x164] ss:$16 sps:$4 sm:$0xff]   ;;  %8681 = vst [vmem:[#allocation44_spill] sm:$0xff] %v6422_v62 }
  0x4e   :  { %3207 = vmatprep.subr.bf16.mxu1 %v6393_v63  ;;  %8679 = vst [vmem:[#allocation42_spill] sm:$0xff] %v6412_v61  ;;  %v6439_v63 = vld [vmem:[%s8353_s2 + $0x14c] ss:$16 sps:$4 sm:$0xff]  }
  0x4f   :  { %3167 = vmatpush2.bf16.msra.mxu0 %v6398_v38  ;;  %v6427_v38 = vld [vmem:[%s8353_s2 + $0x168] ss:$16 sps:$4 sm:$0xff]   ;;  %8684 = vst [vmem:[#allocation47_spill] sm:$0xff] %v6439_v63 }
  0x50   :  { %8682 = vst [vmem:[#allocation45_spill] sm:$0xff] %v6427_v38  ;;  %3168 = vmatprep.subr.bf16.mxu0 %v6412_v61  ;;  %v6451_v61 = vld [vmem:[%s8353_s2 + $0x148] ss:$16 sps:$4 sm:$0xff]  }
  0x51   :  { %3208 = vmatpush2.bf16.msra.mxu1 %v6403_v1  ;;  %v6432_v1 = vld [vmem:[%s8353_s2 + $0x144] ss:$16 sps:$4 sm:$0xff]   ;;  %8686 = vst [vmem:[#allocation49_spill] sm:$0xff] %v6451_v61 }
  0x52   :  { %8683 = vst [vmem:[#allocation46_spill] sm:$0xff] %v6432_v1  ;;  %3209 = vmatprep.subr.bf16.mxu1 %v6417_v60 }
  0x53   :  { %3169 = vmatpush2.bf16.msra.mxu0 %v6422_v62  ;;  %v6458_v62 = vld [vmem:[%s8353_s2 + $0x124] ss:$16 sps:$4 sm:$0xff]  }
  0x54   :  { %3170 = vmatprep.subr.bf16.mxu0 %v6432_v1  ;;  %8687 = vst [vmem:[#allocation50_spill] sm:$0xff] %v6458_v62  ;;  %v6470_v1 = vld [vmem:[%s8353_s2 + $0x120] ss:$16 sps:$4 sm:$0xff]  }
  0x55   :  { %3210 = vmatpush2.bf16.msra.mxu1 %v6427_v38  ;;  %v6463_v38 = vld [vmem:[%s8353_s2 + $0x12c] ss:$16 sps:$4 sm:$0xff]   ;;  %8689 = vst [vmem:[#allocation52_spill] sm:$0xff] %v6470_v1 }
  0x56   :  { %3211 = vmatprep.subr.bf16.mxu1 %v6439_v63  ;;  %8688 = vst [vmem:[#allocation51_spill] sm:$0xff] %v6463_v38  ;;  %v6475_v63 = vld [vmem:[%s8353_s2 + $0x128] ss:$16 sps:$4 sm:$0xff]  }
  0x57   :  { %3171 = vmatpush2.bf16.msra.mxu0 %v6446_v59  ;;  %8690 = vst [vmem:[#allocation53_spill] sm:$0xff] %v6475_v63  ;;  %v6482_v59 = vld [vmem:[%s8353_s2 + $0x104] ss:$16 sps:$4 sm:$0xff]  }
  0x58   :  { %3172 = vmatprep.subr.bf16.mxu0 %v6458_v62  ;;  %8691 = vst [vmem:[#allocation54_spill] sm:$0xff] %v6482_v59  ;;  %v6494_v62 = vld [vmem:[%s8353_s2 + $0x100] ss:$16 sps:$4 sm:$0xff]  }
  0x59   :  { %3212 = vmatpush2.bf16.msra.mxu1 %v6451_v61  ;;  %v6487_v61 = vld [vmem:[%s8353_s2 + $0x10c] ss:$16 sps:$4 sm:$0xff]   ;;  %8693 = vst [vmem:[#allocation56_spill] sm:$0xff] %v6494_v62 }
  0x5a   :  { %3213 = vmatprep.subr.bf16.mxu1 %v6463_v38  ;;  %8692 = vst [vmem:[#allocation55_spill] sm:$0xff] %v6487_v61  ;;  %v6499_v38 = vld [vmem:[%s8353_s2 + $0x108] ss:$16 sps:$4 sm:$0xff]  }
  0x5b   :  { %3173 = vmatpush2.bf16.msra.mxu0 %v6470_v1  ;;  %8694 = vst [vmem:[#allocation57_spill] sm:$0xff] %v6499_v38 }
  0x5c   :  { %3174 = vmatprep.subr.bf16.mxu0 %v6482_v59 }
  0x5d   :  { %3214 = vmatpush2.bf16.msra.mxu1 %v6475_v63  ;;  %v2449_v63 = vld [vmem:[%s8354_s0] sm:$0xff] }
  0x5e   :  { %3215 = vmatprep.subr.bf16.mxu1 %v6487_v61  ;;  %v2451_v1 = vunpack.c.l.bf16 %v2449_v63  ;;  %v2452_v60 = vunpack.c.h.bf16 %v2449_v63 }
  0x5f   :  { %3175 = vmatpush2.bf16.msra.mxu0 %v6494_v62 }
  0x60   :  { %3257 = vmatprep.subr.bf16.mxu0 %v5930_v0  ;;  %v2450_v0 = vld [vmem:[%s8354_s0 + $0x8] sm:$0xff] }
  0x61   :  { %3216 = vmatpush2.bf16.msra.mxu1 %v6499_v38  ;;  %v2454_v53 = vunpack.c.h.bf16 %v2450_v0  ;;  %v2453_v51 = vunpack.c.l.bf16 %v2450_v0 }
  0x62   :  { %3298 = vmatprep.subr.bf16.mxu1 %v5960_v6 }
  0xe2   :  { %v2682_v58 = vpop.f32.mrf.mxu0 }
  0xe3   :  { %v2730_v57 = vadd.f32 %v2682_v58, %v2451_v1 }
  0xe4   :  { %v2684_v56 = vpop.f32.mrf.mxu0  ;;  %v2723_v38 = vpop.f32.mrf.mxu1 }
  0xe5   :  { %v5113_v59 = vmul.f32 -1.442695, %v2730_v57  ;;  %v2731_v55 = vadd.f32 %v2684_v56, %v2452_v60  ;;  %v2732_v1 = vadd.f32 %v2723_v38, %v2453_v51  ;;  %v8695_v38 = vmov 0  }
  0xe6   :  { %v2686_v61 = vpop.f32.mrf.mxu0  ;;  %v2725_v54 = vpop.f32.mrf.mxu1 }
  0xe7   :  { %5440 = vpow2.f32 %v5113_v59  ;;  %v5114_v62 = vmul.f32 -1.442695, %v2731_v55  ;;  %v2733_v50 = vadd.f32 %v2725_v54, %v2454_v53 }
  0xe8   :  { %v2687_v6 = vpop.f32.mrf.mxu0  ;;  %v2727_v52 = vpop.f32.mrf.mxu1 }
  0xe9   :  { %5442 = vpow2.f32 %v5114_v62  ;;  %v5115_v58 = vmul.f32 -1.442695, %v2733_v50 }
  0xea   :  { %v2728_v63 = vpop.f32.mrf.mxu1  ;;  %5444 = vtanh.f32 %v2732_v1  ;;  %v8712_v1 = vld [vmem:[#allocation24_spill] sm:$0xff] }
  0xeb   :  { %5446 = vpow2.f32 %v5115_v58  ;;  %v8711_v63 = vld [vmem:[#allocation23_spill] sm:$0xff]  ;;  %v8713_v58 = vld [vmem:[#allocation25_spill] sm:$0xff] }
  0xf4   :  { %v5441_v57 = vpop.eup %5440 }
  0xf5   :  { %v2737_v56 = vadd.f32 1.0, %v5441_v57  ;;  %v8714_v57 = vld [vmem:[#allocation26_spill] sm:$0xff] }
  0xf6   :  { %v5443_v59 = vpop.eup %5442 }
  0xf7   :  { %5448 = vrcp.f32 %v2737_v56  ;;  %v2743_v55 = vadd.f32 1.0, %v5443_v59  ;;  %v5445_v60 = vpop.eup %5444  ;;  %v8715_v56 = vld [vmem:[#allocation27_spill] sm:$0xff]  ;;  %v8716_v59 = vld [vmem:[#allocation28_spill] sm:$0xff] }
  0xf8   :  { %v5447_v61 = vpop.eup %5446 }
  0xf9   :  { %5450 = vrcp.f32 %v2743_v55  ;;  %v2750_v49 = vadd.f32 1.0, %v5447_v61  ;;  %v8717_v55 = vld [vmem:[#allocation29_spill] sm:$0xff]  ;;  %v8719_v61 = vld [vmem:[#allocation31_spill] sm:$0xff] }
  0xfb   :  { %5452 = vrcp.f32 %v2750_v49  ;;  %v8710_v49 = vld [vmem:[#allocation22_spill] sm:$0xff] }
 0x104   :  { %v5449_v6 = vpop.eup %5448 }
 0x105   :  { %v2754_v52 = vmul.f32 %v5449_v6, %v5445_v60  ;;  %v8718_v60 = vld [vmem:[#allocation30_spill] sm:$0xff]  ;;  %v8720_v6 = vld [vmem:[#allocation32_spill] sm:$0xff] }
 0x106   :  { %v5451_v62 = vpop.eup %5450 }
 0x107   :  { %v2753_v48 = vmul.f32 0.0, %v5451_v62  ;;  %v8721_v62 = vld [vmem:[#allocation33_spill] sm:$0xff] }
 0x108   :  { %v5453_v50 = vpop.eup %5452 }
 0x109   :  { %v6513_v0 = vadd.f32 %v2754_v52, %v2753_v48  ;;  %v8709_v48 = vld [vmem:[#allocation21_spill] sm:$0xff]  ;;  %v8722_v52 = vld [vmem:[#allocation34_spill] sm:$0xff] }
 0x10b   :  { %5454 = vtanh.f32 %v6513_v0 }
 0x118   :  { %v5455_v51 = vpop.eup %5454 }
 0x119   :  { %v2757_v53 = vmul.f32 %v5455_v51, %v5453_v50  ;;  %v8723_v50 = vld [vmem:[#allocation35_spill] sm:$0xff]  ;;  %v8724_v51 = vld [vmem:[#allocation36_spill] sm:$0xff] }
 0x11b   :  { %v2758_v54 = vpack.c.bf16 %v2757_v53, %v2757_v53  ;;  %v8725_v53 = vld [vmem:[#allocation37_spill] sm:$0xff] }
 0x11d   :  { %3177 = vmatmul.mubr.bf16.vlgmr.msra.gmra.mxu0 %v2758_v54  ;;  %3218 = vmatmul.mubr.bf16.vlgmr.msra.gmra.mxu1 %v2758_v54 }
 0x11e   :  { %3258 = vmatpush1.bf16.msra.mxu0 %v5937_v2  ;;  %3299 = vmatpush1.bf16.msra.mxu1 %v5965_v7  ;;  %v8696_v2 = vld [vmem:[#allocation8_spill] sm:$0xff] }
 0x11f   :  { %3259 = vmatprep.subr.bf16.mxu0 %v5943_v3  ;;  %3300 = vmatprep.subr.bf16.mxu1 %v5984_v10  ;;  %v8697_v3 = vld [vmem:[#allocation9_spill] sm:$0xff]  ;;  %v8700_v7 = vld [vmem:[#allocation12_spill] sm:$0xff]  ;;  %v8703_v10 = vld [vmem:[#allocation15_spill] sm:$0xff] }
 0x120   :  { %3289 = vmatprep.mubr.bf16.mxu0 %v8695_v38  ;;  %3330 = vmatprep.mubr.bf16.mxu1 %v8695_v38 }
 0x122   :  { %3260 = vmatpush1.bf16.msra.mxu0 %v5949_v4  ;;  %3301 = vmatpush1.bf16.msra.mxu1 %v5989_v11  ;;  %v8698_v4 = vld [vmem:[#allocation10_spill] sm:$0xff]  ;;  %v8704_v11 = vld [vmem:[#allocation16_spill] sm:$0xff] }
 0x123   :  { %3261 = vmatprep.subr.bf16.mxu0 %v5955_v5  ;;  %3302 = vmatprep.subr.bf16.mxu1 %v6006_v14  ;;  %v8699_v5 = vld [vmem:[#allocation11_spill] sm:$0xff] }
 0x124   :  { %v8707_v14 = vld [vmem:[#allocation19_spill] sm:$0xff] }
 0x126   :  { %3262 = vmatpush1.bf16.msra.mxu0 %v5971_v8  ;;  %3303 = vmatpush1.bf16.msra.mxu1 %v6013_v15  ;;  %v8701_v8 = vld [vmem:[#allocation13_spill] sm:$0xff]  ;;  %v8708_v15 = vld [vmem:[#allocation20_spill] sm:$0xff] }
 0x127   :  { %3263 = vmatprep.subr.bf16.mxu0 %v5978_v9  ;;  %3304 = vmatprep.subr.bf16.mxu1 %v6019_v16  ;;  %v8702_v9 = vld [vmem:[#allocation14_spill] sm:$0xff] }
 0x12a   :  { %3264 = vmatpush1.bf16.msra.mxu0 %v5996_v12  ;;  %3305 = vmatpush1.bf16.msra.mxu1 %v6037_v19  ;;  %v8705_v12 = vld [vmem:[#allocation17_spill] sm:$0xff] }
 0x12b   :  { %3265 = vmatprep.subr.bf16.mxu0 %v6001_v13  ;;  %3306 = vmatprep.subr.bf16.mxu1 %v6043_v20  ;;  %v8706_v13 = vld [vmem:[#allocation18_spill] sm:$0xff] }
 0x12e   :  { %3266 = vmatpush1.bf16.msra.mxu0 %v6025_v17  ;;  %3307 = vmatpush1.bf16.msra.mxu1 %v6061_v23 }
 0x12f   :  { %3267 = vmatprep.subr.bf16.mxu0 %v6031_v18  ;;  %3308 = vmatprep.subr.bf16.mxu1 %v6067_v24 }
 0x132   :  { %3268 = vmatpush1.bf16.msra.mxu0 %v6049_v21  ;;  %3309 = vmatpush1.bf16.msra.mxu1 %v6085_v27 }
 0x133   :  { %3269 = vmatprep.subr.bf16.mxu0 %v6054_v22  ;;  %3310 = vmatprep.subr.bf16.mxu1 %v6091_v28 }
 0x136   :  { %3270 = vmatpush1.bf16.msra.mxu0 %v6073_v25  ;;  %3311 = vmatpush1.bf16.msra.mxu1 %v6101_v30 }
 0x137   :  { %3271 = vmatprep.subr.bf16.mxu0 %v6078_v26  ;;  %3312 = vmatprep.subr.bf16.mxu1 %v6112_v32 }
 0x13a   :  { %3272 = vmatpush1.bf16.msra.mxu0 %v6096_v29  ;;  %3313 = vmatpush1.bf16.msra.mxu1 %v6125_v34 }
 0x13b   :  { %3369 = vmatprep.subr.bf16.mxu0 %v6106_v31  ;;  %3410 = vmatprep.subr.bf16.mxu1 %v6136_v36 }
 0x13d   :  { %3290 = vmatmul.mubr.bf16.vlgmr.msra.gmra.mxu0 %v2758_v54  ;;  %3331 = vmatmul.mubr.bf16.vlgmr.msra.gmra.mxu1 %v2758_v54  ;;  %v8726_v54 = vld [vmem:[#allocation38_spill] sm:$0xff] }
 0x13e   :  { %3370 = vmatpush1.bf16.msra.mxu0 %v6120_v33  ;;  %3411 = vmatpush1.bf16.msra.mxu1 %v6149_v39 }
 0x13f   :  { %3371 = vmatprep.subr.bf16.mxu0 %v6130_v35  ;;  %3412 = vmatprep.subr.bf16.mxu1 %v6155_v40 }
 0x142   :  { %3372 = vmatpush1.bf16.msra.mxu0 %v6144_v37  ;;  %3413 = vmatpush1.bf16.msra.mxu1 %v6163_v41 }
 0x143   :  { %3373 = vmatprep.subr.bf16.mxu0 %v6172_v42  ;;  %3414 = vmatprep.subr.bf16.mxu1 %v6177_v43 }
 0x146   :  { %3374 = vmatpush1.bf16.msra.mxu0 %v6182_v44  ;;  %3415 = vmatpush1.bf16.msra.mxu1 %v6187_v45 }
 0x147   :  { %3375 = vmatprep.subr.bf16.mxu0 %v6196_v46  ;;  %3416 = vmatprep.subr.bf16.mxu1 %v6201_v47 }
 0x14a   :  { %3376 = vmatpush1.bf16.msra.mxu0 %v8696_v2  ;;  %3417 = vmatpush1.bf16.msra.mxu1 %v8697_v3 }
 0x14b   :  { %3377 = vmatprep.subr.bf16.mxu0 %v8698_v4  ;;  %3418 = vmatprep.subr.bf16.mxu1 %v8699_v5 }
 0x14e   :  { %3378 = vmatpush1.bf16.msra.mxu0 %v8700_v7  ;;  %3419 = vmatpush1.bf16.msra.mxu1 %v8701_v8 }
 0x14f   :  { %3379 = vmatprep.subr.bf16.mxu0 %v8702_v9  ;;  %3420 = vmatprep.subr.bf16.mxu1 %v8703_v10 }
 0x152   :  { %3380 = vmatpush1.bf16.msra.mxu0 %v8704_v11  ;;  %3421 = vmatpush1.bf16.msra.mxu1 %v8705_v12 }
 0x153   :  { %3381 = vmatprep.subr.bf16.mxu0 %v8706_v13  ;;  %3422 = vmatprep.subr.bf16.mxu1 %v8707_v14 }
 0x156   :  { %3382 = vmatpush1.bf16.msra.mxu0 %v8708_v15  ;;  %3423 = vmatpush1.bf16.msra.mxu1 %v8709_v48 }
 0x157   :  { %3383 = vmatprep.subr.bf16.mxu0 %v8710_v49  ;;  %3424 = vmatprep.subr.bf16.mxu1 %v8711_v63 }
 0x15a   :  { %3384 = vmatpush1.bf16.msra.mxu0 %v8712_v1  ;;  %3425 = vmatpush1.bf16.msra.mxu1 %v8713_v58 }
 0x15b   :  { %3385 = vmatprep.subr.bf16.mxu0 %v8714_v57  ;;  %3426 = vmatprep.subr.bf16.mxu1 %v8715_v56 }
 0x15e   :  { %3386 = vmatpush2.bf16.msra.mxu0 %v8716_v59  ;;  %3427 = vmatpush2.bf16.msra.mxu1 %v8717_v55  ;;  %v8727_v59 = vld [vmem:[#allocation39_spill] sm:$0xff]  ;;  %v8728_v55 = vld [vmem:[#allocation40_spill] sm:$0xff] }
 0x15f   :  { %3387 = vmatprep.subr.bf16.mxu0 %v8718_v60  ;;  %3428 = vmatprep.subr.bf16.mxu1 %v8719_v61  ;;  %v8729_v60 = vld [vmem:[#allocation41_spill] sm:$0xff]  ;;  %v8730_v61 = vld [vmem:[#allocation42_spill] sm:$0xff] }
 0x162   :  { %3388 = vmatpush2.bf16.msra.mxu0 %v8720_v6  ;;  %3429 = vmatpush2.bf16.msra.mxu1 %v8721_v62  ;;  %v8731_v6 = vld [vmem:[#allocation43_spill] sm:$0xff]  ;;  %v8732_v62 = vld [vmem:[#allocation44_spill] sm:$0xff] }
 0x163   :  { %3389 = vmatprep.subr.bf16.mxu0 %v8722_v52  ;;  %3430 = vmatprep.subr.bf16.mxu1 %v8723_v50  ;;  %v8733_v52 = vld [vmem:[#allocation45_spill] sm:$0xff]  ;;  %v8734_v50 = vld [vmem:[#allocation46_spill] sm:$0xff] }
 0x166   :  { %3390 = vmatpush2.bf16.msra.mxu0 %v8724_v51  ;;  %3431 = vmatpush2.bf16.msra.mxu1 %v8725_v53  ;;  %v8735_v51 = vld [vmem:[#allocation47_spill] sm:$0xff]  ;;  %v8736_v53 = vld [vmem:[#allocation48_spill] sm:$0xff] }
 0x167   :  { %3391 = vmatprep.subr.bf16.mxu0 %v8726_v54  ;;  %3432 = vmatprep.subr.bf16.mxu1 %v8727_v59  ;;  %v8737_v54 = vld [vmem:[#allocation49_spill] sm:$0xff]  ;;  %v8738_v59 = vld [vmem:[#allocation50_spill] sm:$0xff] }
 0x16a   :  { %3392 = vmatpush2.bf16.msra.mxu0 %v8728_v55  ;;  %3433 = vmatpush2.bf16.msra.mxu1 %v8729_v60  ;;  %v8739_v55 = vld [vmem:[#allocation51_spill] sm:$0xff]  ;;  %v8740_v60 = vld [vmem:[#allocation52_spill] sm:$0xff] }
 0x16b   :  { %3393 = vmatprep.subr.bf16.mxu0 %v8730_v61  ;;  %3434 = vmatprep.subr.bf16.mxu1 %v8731_v6  ;;  %v8741_v61 = vld [vmem:[#allocation53_spill] sm:$0xff]  ;;  %v8742_v6 = vld [vmem:[#allocation54_spill] sm:$0xff] }
 0x16e   :  { %3394 = vmatpush2.bf16.msra.mxu0 %v8732_v62  ;;  %3435 = vmatpush2.bf16.msra.mxu1 %v8733_v52  ;;  %v8743_v62 = vld [vmem:[#allocation55_spill] sm:$0xff]  ;;  %v8744_v52 = vld [vmem:[#allocation56_spill] sm:$0xff] }
 0x16f   :  { %3395 = vmatprep.subr.bf16.mxu0 %v8734_v50  ;;  %3436 = vmatprep.subr.bf16.mxu1 %v8735_v51  ;;  %v8745_v50 = vld [vmem:[#allocation57_spill] sm:$0xff]  ;;  %v8746_v51 = vld [vmem:[#allocation6_spill] sm:$0xff] }
 0x172   :  { %3396 = vmatpush2.bf16.msra.mxu0 %v8736_v53  ;;  %3437 = vmatpush2.bf16.msra.mxu1 %v8737_v54  ;;  %v8747_v53 = vld [vmem:[#allocation7_spill] sm:$0xff]  ;;  %v34_v54 = vlaneseq }
 0x173   :  { %3397 = vmatprep.subr.bf16.mxu0 %v8738_v59  ;;  %3438 = vmatprep.subr.bf16.mxu1 %v8739_v55 }
 0x174   :  { %v35_v59 = vshrl.u32 %v34_v54, 7 }
 0x176   :  { %3398 = vmatpush2.bf16.msra.mxu0 %v8740_v60  ;;  %3439 = vmatpush2.bf16.msra.mxu1 %v8741_v61  ;;  %v36_v56 = vsub.s32 0, %v35_v59  ;;  %v32_v60 = vld [vmem:[%s8355_s3] sm:$0xf]  ;;  %v40_v61 = vsub.s32 1, %v35_v59  ;;  %v48_v54 = vsub.s32 3, %v35_v59 }
 0x177   :  { %3399 = vmatprep.subr.bf16.mxu0 %v8742_v6  ;;  %3440 = vmatprep.subr.bf16.mxu1 %v8743_v62 }
 0x178   :  { %v6617_v55 = vrot.slane %v32_v60, %v36_v56  ;;  %v6619_v6 = vrot.slane %v32_v60, %v40_v61  ;;  %v6623_v56 = vrot.slane %v32_v60, %v48_v54  ;;  %v44_v61 = vsub.s32 2, %v35_v59 }
 0x17a   :  { %3400 = vmatpush2.bf16.msra.mxu0 %v8744_v52  ;;  %3441 = vmatpush2.bf16.msra.mxu1 %v8745_v50  ;;  %8748 = vst [vmem:[#allocation8_spill] sm:$0xff] %v6617_v55  ;;  %8749 = vst [vmem:[#allocation9_spill] sm:$0xff] %v6619_v6  ;;  %v6626_v13 = vrot.slane %v32_v60, %v44_v61 }
 0x17b   :  { %3482 = vmatprep.subr.bf16.mxu0 %v8746_v51  ;;  %3523 = vmatprep.subr.bf16.mxu1 %v8747_v53  ;;  %8750 = vst [vmem:[#allocation10_spill] sm:$0xff] %v6623_v56 }
 0x17c   :  { %8751 = vst [vmem:[#allocation11_spill] sm:$0xff] %v6626_v13 }
 0x1dd   :  { %v3178_v62 = vpop.f32.mrf.mxu0  ;;  %v3219_v52 = vpop.f32.mrf.mxu1 }
 0x1de   :  { %v3179_v50 = vadd.f32 %v3178_v62, %v6617_v55 }
 0x1df   :  { %v3180_v57 = vpop.f32.mrf.mxu0  ;;  %v3221_v51 = vpop.f32.mrf.mxu1 }
 0x1e0   :  { %v5180_v58 = vmul.f32 -1.442695, %v3179_v50  ;;  %v3181_v53 = vadd.f32 %v3180_v57, %v6619_v6  ;;  %v3222_v14 = vadd.f32 %v3221_v51, %v6623_v56  ;;  %v3220_v50 = vadd.f32 %v3219_v52, %v6626_v13 }
 0x1e1   :  { %v3182_v1 = vpop.f32.mrf.mxu0  ;;  %v3223_v63 = vpop.f32.mrf.mxu1 }
 0x1e2   :  { %5456 = vpow2.f32 %v5180_v58  ;;  %v5181_v49 = vmul.f32 -1.442695, %v3181_v53  ;;  %v5182_v62 = vmul.f32 -1.442695, %v3222_v14 }
 0x1e3   :  { %v3183_v48 = vpop.f32.mrf.mxu0  ;;  %v3224_v15 = vpop.f32.mrf.mxu1 }
 0x1e4   :  { %5458 = vpow2.f32 %v5181_v49  ;;  %v5183_v15 = vld [vmem:[%s8354_s0 + $0x10] sm:$0xff] }
 0x1e5   :  { %5460 = vpow2.f32 %v5182_v62  ;;  %v3253_v48 = vunpack.c.l.bf16 %v5183_v15  ;;  %v3254_v49 = vunpack.c.h.bf16 %v5183_v15 }
 0x1ef   :  { %v5457_v55 = vpop.eup %5456 }
 0x1f0   :  { %v3229_v57 = vadd.f32 1.0, %v5457_v55 }
 0x1f1   :  { %v5459_v6 = vpop.eup %5458 }
 0x1f2   :  { %5462 = vrcp.f32 %v3229_v57  ;;  %v3235_v63 = vadd.f32 1.0, %v5459_v6  ;;  %v5461_v59 = vpop.eup %5460 }
 0x1f3   :  { %5464 = vtanh.f32 %v3220_v50  ;;  %v3242_v6 = vadd.f32 1.0, %v5461_v59 }
 0x1f4   :  { %5466 = vrcp.f32 %v3235_v63 }
 0x1fd   :  { %v3291_v1 = vpop.f32.mrf.mxu0  ;;  %v3332_v58 = vpop.f32.mrf.mxu1 }
 0x1fe   :  { %v3339_v14 = vadd.f32 %v3291_v1, %v3253_v48  ;;  %v5184_v48 = vld [vmem:[%s8354_s0 + $0x18] sm:$0xff] }
 0x1ff   :  { %v5463_v60 = vpop.eup %5462  ;;  %v3293_v51 = vpop.f32.mrf.mxu0  ;;  %v3256_v1 = vunpack.c.h.bf16 %v5184_v48  ;;  %v3255_v59 = vunpack.c.l.bf16 %v5184_v48 }
 0x200   :  { %v3334_v52 = vpop.f32.mrf.mxu1  ;;  %v5465_v55 = vpop.eup %5464  ;;  %v5185_v53 = vmul.f32 -1.442695, %v3339_v14  ;;  %v3340_v54 = vadd.f32 %v3293_v51, %v3254_v49 }
 0x201   :  { %v5467_v61 = vpop.eup %5466  ;;  %v3295_v62 = vpop.f32.mrf.mxu0  ;;  %v3246_v63 = vmul.f32 %v5465_v55, %v5463_v60  ;;  %v3342_v49 = vadd.f32 %v3334_v52, %v3256_v1  ;;  %v3341_v60 = vadd.f32 %v3332_v58, %v3255_v59 }
 0x202   :  { %v3336_v50 = vpop.f32.mrf.mxu1  ;;  %v3245_v57 = vmul.f32 0.0, %v5467_v61  ;;  %5468 = vpow2.f32 %v5185_v53  ;;  %v5186_v13 = vmul.f32 -1.442695, %v3340_v54 }
 0x203   :  { %v3296_v56 = vpop.f32.mrf.mxu0  ;;  %v5187_v14 = vmul.f32 -1.442695, %v3342_v49 }
 0x204   :  { %v3337_v15 = vpop.f32.mrf.mxu1  ;;  %v6632_v12 = vadd.f32 %v3246_v63, %v3245_v57  ;;  %5470 = vpow2.f32 %v5186_v13 }
 0x205   :  { %5472 = vrcp.f32 %v3242_v6 }
 0x206   :  { %5474 = vtanh.f32 %v6632_v12 }
 0x207   :  { %5476 = vpow2.f32 %v5187_v14 }
 0x20f   :  { %v5469_v51 = vpop.eup %5468 }
 0x210   :  { %v3346_v55 = vadd.f32 1.0, %v5469_v51  ;;  %v6645_v51 = vld [vmem:[%s8352_s1 + $0xe0] ss:$16 sps:$4 sm:$0xff]  }
 0x211   :  { %v5471_v53 = vpop.eup %5470 }
 0x212   :  { %v5473_v56 = vpop.eup %5472  ;;  %5478 = vrcp.f32 %v3346_v55  ;;  %v3352_v54 = vadd.f32 1.0, %v5471_v53  ;;  %v6663_v55 = vld [vmem:[%s8352_s1 + $0xcc] ss:$16 sps:$4 sm:$0xff]   ;;  %v6671_v53 = vld [vmem:[%s8352_s1 + $0xc0] ss:$16 sps:$4 sm:$0xff]  }
 0x213   :  { %v5475_v61 = vpop.eup %5474  ;;  %5480 = vtanh.f32 %v3341_v60  ;;  %v6657_v60 = vld [vmem:[%s8352_s1 + $0xc4] ss:$16 sps:$4 sm:$0xff]  }
 0x214   :  { %5482 = vrcp.f32 %v3352_v54  ;;  %v3249_v62 = vmul.f32 %v5475_v61, %v5473_v56  ;;  %v5477_v6 = vpop.eup %5476  ;;  %v6677_v56 = vld [vmem:[%s8352_s1 + $0xc8] ss:$16 sps:$4 sm:$0xff]   ;;  %v6683_v54 = vld [vmem:[%s8352_s1 + $0xa4] ss:$16 sps:$4 sm:$0xff]   ;;  %v6689_v61 = vld [vmem:[%s8352_s1 + $0xac] ss:$16 sps:$4 sm:$0xff]  }
 0x215   :  { %v3359_v63 = vadd.f32 1.0, %v5477_v6  ;;  %v6707_v6 = vld [vmem:[%s8352_s1 + $0x84] ss:$16 sps:$4 sm:$0xff]  }
 0x216   :  { %v3368_v13 = vpack.c.bf16 %v3249_v62, %v3249_v62  ;;  %v6695_v62 = vld [vmem:[%s8352_s1 + $0xa0] ss:$16 sps:$4 sm:$0xff]  }
 0x217   :  { %5484 = vrcp.f32 %v3359_v63  ;;  %v6806_v63 = vld [vmem:[%s8352_s1 + $0xe4] ss:$16 sps:$4 sm:$0xff]  }
 0x218   :  { %3401 = vmatprep.mubr.bf16.mxu0 %v3368_v13  ;;  %3442 = vmatprep.mubr.bf16.mxu1 %v3368_v13  ;;  %v6701_v13 = vld [vmem:[%s8352_s1 + $0xa8] ss:$16 sps:$4 sm:$0xff]   ;;  %8793 = vst [vmem:[#allocation12_spill] sm:$0xff] %v6806_v63 }
 0x21f   :  { %v5479_v50 = vpop.eup %5478 }
 0x220   :  { %v5481_v52 = vpop.eup %5480 }
 0x221   :  { %v5483_v57 = vpop.eup %5482  ;;  %v3363_v15 = vmul.f32 %v5481_v52, %v5479_v50  ;;  %v6714_v50 = vld [vmem:[%s8352_s1 + $0x80] ss:$16 sps:$4 sm:$0xff]   ;;  %v6721_v52 = vld [vmem:[%s8352_s1 + $0x64] ss:$16 sps:$4 sm:$0xff]  }
 0x222   :  { %v3362_v58 = vmul.f32 %v5483_v57, %v6513_v0  ;;  %v6651_v0 = vld [vmem:[%s8352_s1 + $0xe8] ss:$16 sps:$4 sm:$0xff]  }
 0x223   :  { %v8792_v57 = vld [vmem:[#allocation57_spill] sm:$0xff] }
 0x224   :  { %v6639_v48 = vadd.f32 %v3363_v15, %v3362_v58  ;;  %v5485_v1 = vpop.eup %5484  ;;  %v6812_v15 = vld [vmem:[%s8352_s1 + $0xec] ss:$16 sps:$4 sm:$0xff]  }
 0x225   :  { %8794 = vst [vmem:[#allocation13_spill] sm:$0xff] %v6812_v15 }
 0x226   :  { %5486 = vtanh.f32 %v6639_v48 }
 0x233   :  { %v5487_v49 = vpop.eup %5486 }
 0x234   :  { %v3366_v59 = vmul.f32 %v5487_v49, %v5485_v1  ;;  %v8795_v49 = vld [vmem:[#allocation8_spill] sm:$0xff] }
 0x236   :  { %v3367_v14 = vpack.c.bf16 %v3366_v59, %v3366_v59 }
 0x238   :  { %3402 = vmatmul.mubr.bf16.vlgmr.msra.gmra.mxu0 %v3367_v14  ;;  %3443 = vmatmul.mubr.bf16.vlgmr.msra.gmra.mxu1 %v3367_v14 }
 0x239   :  { %3483 = vmatpush1.bf16.msra.mxu0 %v6645_v51  ;;  %3524 = vmatpush1.bf16.msra.mxu1 %v6651_v0 }
 0x23a   :  { %3484 = vmatprep.subr.bf16.mxu0 %v6657_v60  ;;  %3525 = vmatprep.subr.bf16.mxu1 %v6663_v55 }
 0x23b   :  { %3514 = vmatprep.mubr.bf16.mxu0 %v8695_v38  ;;  %3555 = vmatprep.mubr.bf16.mxu1 %v8695_v38 }
 0x23d   :  { %3485 = vmatpush1.bf16.msra.mxu0 %v6671_v53  ;;  %3526 = vmatpush1.bf16.msra.mxu1 %v6677_v56 }
 0x23e   :  { %3486 = vmatprep.subr.bf16.mxu0 %v6683_v54  ;;  %3527 = vmatprep.subr.bf16.mxu1 %v6689_v61 }
 0x241   :  { %3487 = vmatpush1.bf16.msra.mxu0 %v6695_v62  ;;  %3528 = vmatpush1.bf16.msra.mxu1 %v6701_v13 }
 0x242   :  { %3488 = vmatprep.subr.bf16.mxu0 %v6707_v6  ;;  %3529 = vmatprep.subr.bf16.mxu1 %v6019_v16  ;;  %v8752_v16 = vld [vmem:[#allocation17_spill] sm:$0xff] }
 0x245   :  { %3489 = vmatpush1.bf16.msra.mxu0 %v6714_v50  ;;  %3530 = vmatpush1.bf16.msra.mxu1 %v6037_v19  ;;  %v8755_v19 = vld [vmem:[#allocation20_spill] sm:$0xff] }
 0x246   :  { %3490 = vmatprep.subr.bf16.mxu0 %v6721_v52  ;;  %3531 = vmatprep.subr.bf16.mxu1 %v6043_v20  ;;  %v8756_v20 = vld [vmem:[#allocation21_spill] sm:$0xff] }
 0x249   :  { %3491 = vmatpush1.bf16.msra.mxu0 %v6025_v17  ;;  %3532 = vmatpush1.bf16.msra.mxu1 %v6061_v23  ;;  %v8753_v17 = vld [vmem:[#allocation18_spill] sm:$0xff]  ;;  %v8759_v23 = vld [vmem:[#allocation24_spill] sm:$0xff] }
 0x24a   :  { %3492 = vmatprep.subr.bf16.mxu0 %v6031_v18  ;;  %3533 = vmatprep.subr.bf16.mxu1 %v6067_v24  ;;  %v8754_v18 = vld [vmem:[#allocation19_spill] sm:$0xff]  ;;  %v8760_v24 = vld [vmem:[#allocation25_spill] sm:$0xff] }
 0x24d   :  { %3493 = vmatpush1.bf16.msra.mxu0 %v6049_v21  ;;  %3534 = vmatpush1.bf16.msra.mxu1 %v6085_v27  ;;  %v8757_v21 = vld [vmem:[#allocation22_spill] sm:$0xff]  ;;  %v8763_v27 = vld [vmem:[#allocation28_spill] sm:$0xff] }
 0x24e   :  { %3494 = vmatprep.subr.bf16.mxu0 %v6054_v22  ;;  %3535 = vmatprep.subr.bf16.mxu1 %v6091_v28  ;;  %v8758_v22 = vld [vmem:[#allocation23_spill] sm:$0xff]  ;;  %v8764_v28 = vld [vmem:[#allocation29_spill] sm:$0xff] }
 0x251   :  { %3495 = vmatpush1.bf16.msra.mxu0 %v6073_v25  ;;  %3536 = vmatpush1.bf16.msra.mxu1 %v6101_v30  ;;  %v8761_v25 = vld [vmem:[#allocation26_spill] sm:$0xff]  ;;  %v8766_v30 = vld [vmem:[#allocation31_spill] sm:$0xff] }
 0x252   :  { %3496 = vmatprep.subr.bf16.mxu0 %v6078_v26  ;;  %3537 = vmatprep.subr.bf16.mxu1 %v6112_v32  ;;  %v8762_v26 = vld [vmem:[#allocation27_spill] sm:$0xff]  ;;  %v8768_v32 = vld [vmem:[#allocation33_spill] sm:$0xff] }
 0x255   :  { %3497 = vmatpush1.bf16.msra.mxu0 %v6096_v29  ;;  %3538 = vmatpush1.bf16.msra.mxu1 %v6125_v34  ;;  %v8765_v29 = vld [vmem:[#allocation30_spill] sm:$0xff]  ;;  %v8770_v34 = vld [vmem:[#allocation35_spill] sm:$0xff] }
 0x256   :  { %3594 = vmatprep.subr.bf16.mxu0 %v6106_v31  ;;  %3635 = vmatprep.subr.bf16.mxu1 %v6136_v36  ;;  %v8767_v31 = vld [vmem:[#allocation32_spill] sm:$0xff]  ;;  %v8772_v36 = vld [vmem:[#allocation37_spill] sm:$0xff] }
 0x258   :  { %3515 = vmatmul.mubr.bf16.vlgmr.msra.gmra.mxu0 %v3367_v14  ;;  %3556 = vmatmul.mubr.bf16.vlgmr.msra.gmra.mxu1 %v3367_v14 }
 0x259   :  { %3595 = vmatpush1.bf16.msra.mxu0 %v6120_v33  ;;  %3636 = vmatpush1.bf16.msra.mxu1 %v6149_v39  ;;  %v8769_v33 = vld [vmem:[#allocation34_spill] sm:$0xff]  ;;  %v8774_v39 = vld [vmem:[#allocation39_spill] sm:$0xff] }
 0x25a   :  { %3596 = vmatprep.subr.bf16.mxu0 %v6130_v35  ;;  %3637 = vmatprep.subr.bf16.mxu1 %v6155_v40  ;;  %v8771_v35 = vld [vmem:[#allocation36_spill] sm:$0xff] }
 0x25b   :  { %v8775_v40 = vld [vmem:[#allocation40_spill] sm:$0xff] }
 0x25d   :  { %3597 = vmatpush1.bf16.msra.mxu0 %v6144_v37  ;;  %3638 = vmatpush1.bf16.msra.mxu1 %v6163_v41  ;;  %v8773_v37 = vld [vmem:[#allocation38_spill] sm:$0xff]  ;;  %v8776_v41 = vld [vmem:[#allocation41_spill] sm:$0xff] }
 0x25e   :  { %3598 = vmatprep.subr.bf16.mxu0 %v6172_v42  ;;  %3639 = vmatprep.subr.bf16.mxu1 %v6177_v43  ;;  %v8777_v42 = vld [vmem:[#allocation42_spill] sm:$0xff]  ;;  %v8778_v43 = vld [vmem:[#allocation43_spill] sm:$0xff] }
 0x261   :  { %3599 = vmatpush1.bf16.msra.mxu0 %v6182_v44  ;;  %3640 = vmatpush1.bf16.msra.mxu1 %v6187_v45  ;;  %v8779_v44 = vld [vmem:[#allocation44_spill] sm:$0xff]  ;;  %v8780_v45 = vld [vmem:[#allocation45_spill] sm:$0xff] }
 0x262   :  { %3600 = vmatprep.subr.bf16.mxu0 %v6196_v46  ;;  %3641 = vmatprep.subr.bf16.mxu1 %v6201_v47  ;;  %v8781_v46 = vld [vmem:[#allocation46_spill] sm:$0xff]  ;;  %v8782_v47 = vld [vmem:[#allocation47_spill] sm:$0xff] }
 0x265   :  { %3601 = vmatpush1.bf16.msra.mxu0 %v8696_v2  ;;  %3642 = vmatpush1.bf16.msra.mxu1 %v8697_v3  ;;  %v8783_v2 = vld [vmem:[#allocation48_spill] sm:$0xff]  ;;  %v8784_v3 = vld [vmem:[#allocation49_spill] sm:$0xff] }
 0x266   :  { %3602 = vmatprep.subr.bf16.mxu0 %v8698_v4  ;;  %3643 = vmatprep.subr.bf16.mxu1 %v8699_v5  ;;  %v8785_v4 = vld [vmem:[#allocation50_spill] sm:$0xff]  ;;  %v8786_v5 = vld [vmem:[#allocation51_spill] sm:$0xff] }
 0x269   :  { %3603 = vmatpush1.bf16.msra.mxu0 %v8700_v7  ;;  %3644 = vmatpush1.bf16.msra.mxu1 %v8701_v8  ;;  %v8787_v7 = vld [vmem:[#allocation52_spill] sm:$0xff]  ;;  %v8788_v8 = vld [vmem:[#allocation53_spill] sm:$0xff] }
 0x26a   :  { %3604 = vmatprep.subr.bf16.mxu0 %v8702_v9  ;;  %3645 = vmatprep.subr.bf16.mxu1 %v8703_v10  ;;  %v8789_v9 = vld [vmem:[#allocation54_spill] sm:$0xff]  ;;  %v8790_v10 = vld [vmem:[#allocation55_spill] sm:$0xff] }
 0x26d   :  { %3605 = vmatpush1.bf16.msra.mxu0 %v8704_v11  ;;  %3646 = vmatpush1.bf16.msra.mxu1 %v8752_v16  ;;  %v8791_v11 = vld [vmem:[#allocation56_spill] sm:$0xff] }
 0x26e   :  { %3606 = vmatprep.subr.bf16.mxu0 %v8753_v17  ;;  %3647 = vmatprep.subr.bf16.mxu1 %v8754_v18  ;;  %v8796_v18 = vld [vmem:[#allocation9_spill] sm:$0xff] }
 0x271   :  { %3607 = vmatpush1.bf16.msra.mxu0 %v8755_v19  ;;  %3648 = vmatpush1.bf16.msra.mxu1 %v8756_v20 }
 0x272   :  { %3608 = vmatprep.subr.bf16.mxu0 %v8757_v21  ;;  %3649 = vmatprep.subr.bf16.mxu1 %v8758_v22 }
 0x275   :  { %3609 = vmatpush1.bf16.msra.mxu0 %v8759_v23  ;;  %3650 = vmatpush1.bf16.msra.mxu1 %v8760_v24 }
 0x276   :  { %3610 = vmatprep.subr.bf16.mxu0 %v8761_v25  ;;  %3651 = vmatprep.subr.bf16.mxu1 %v8762_v26  ;;  %v8797_v25 = vld [vmem:[#allocation10_spill] sm:$0xff] }
 0x279   :  { %3611 = vmatpush2.bf16.msra.mxu0 %v8763_v27  ;;  %3652 = vmatpush2.bf16.msra.mxu1 %v8764_v28 }
 0x27a   :  { %3612 = vmatprep.subr.bf16.mxu0 %v8765_v29  ;;  %3653 = vmatprep.subr.bf16.mxu1 %v8766_v30  ;;  %v8798_v29 = vld [vmem:[#allocation11_spill] sm:$0xff] }
 0x27d   :  { %3613 = vmatpush2.bf16.msra.mxu0 %v8767_v31  ;;  %3654 = vmatpush2.bf16.msra.mxu1 %v8768_v32 }
 0x27e   :  { %3614 = vmatprep.subr.bf16.mxu0 %v8769_v33  ;;  %3655 = vmatprep.subr.bf16.mxu1 %v8770_v34  ;;  %v5191_v34 = vld [vmem:[%s8354_s0 + $0x20] sm:$0xff] }
 0x281   :  { %3615 = vmatpush2.bf16.msra.mxu0 %v8771_v35  ;;  %3656 = vmatpush2.bf16.msra.mxu1 %v8772_v36  ;;  %v3478_v35 = vunpack.c.l.bf16 %v5191_v34  ;;  %v3479_v36 = vunpack.c.h.bf16 %v5191_v34 }
 0x282   :  { %3616 = vmatprep.subr.bf16.mxu0 %v8773_v37  ;;  %3657 = vmatprep.subr.bf16.mxu1 %v8774_v39 }
 0x285   :  { %3617 = vmatpush2.bf16.msra.mxu0 %v8775_v40  ;;  %3658 = vmatpush2.bf16.msra.mxu1 %v8776_v41 }
 0x286   :  { %3618 = vmatprep.subr.bf16.mxu0 %v8777_v42  ;;  %3659 = vmatprep.subr.bf16.mxu1 %v8778_v43 }
 0x289   :  { %3619 = vmatpush2.bf16.msra.mxu0 %v8779_v44  ;;  %3660 = vmatpush2.bf16.msra.mxu1 %v8780_v45 }
 0x28a   :  { %3620 = vmatprep.subr.bf16.mxu0 %v8781_v46  ;;  %3661 = vmatprep.subr.bf16.mxu1 %v8782_v47 }
 0x28d   :  { %3621 = vmatpush2.bf16.msra.mxu0 %v8783_v2  ;;  %3662 = vmatpush2.bf16.msra.mxu1 %v8784_v3 }
 0x28e   :  { %3622 = vmatprep.subr.bf16.mxu0 %v8785_v4  ;;  %3663 = vmatprep.subr.bf16.mxu1 %v8786_v5 }
 0x291   :  { %3623 = vmatpush2.bf16.msra.mxu0 %v8787_v7  ;;  %3664 = vmatpush2.bf16.msra.mxu1 %v8788_v8 }
 0x292   :  { %3624 = vmatprep.subr.bf16.mxu0 %v8789_v9  ;;  %3665 = vmatprep.subr.bf16.mxu1 %v8790_v10 }
 0x295   :  { %3625 = vmatpush2.bf16.msra.mxu0 %v8791_v11  ;;  %3666 = vmatpush2.bf16.msra.mxu1 %v8792_v57  ;;  %v5192_v57 = vld [vmem:[%s8354_s0 + $0x28] sm:$0xff] }
 0x296   :  { %3707 = vmatprep.subr.bf16.mxu0 %v6806_v63  ;;  %3748 = vmatprep.subr.bf16.mxu1 %v6812_v15 }
 0x2f8   :  { %v3403_v58 = vpop.f32.mrf.mxu0  ;;  %v3444_v1 = vpop.f32.mrf.mxu1 }
 0x2f9   :  { %v3404_v59 = vadd.f32 %v3403_v58, %v8795_v49  ;;  %v3445_v30 = vadd.f32 %v3444_v1, %v8798_v29  ;;  %v3481_v1 = vunpack.c.h.bf16 %v5192_v57 }
 0x2fa   :  { %v3405_v14 = vpop.f32.mrf.mxu0  ;;  %v3446_v16 = vpop.f32.mrf.mxu1 }
 0x2fb   :  { %v5188_v17 = vmul.f32 -1.442695, %v3404_v59  ;;  %v3406_v19 = vadd.f32 %v3405_v14, %v8796_v18  ;;  %v3447_v26 = vadd.f32 %v3446_v16, %v8797_v25  ;;  %v3480_v14 = vunpack.c.l.bf16 %v5192_v57  ;;  %v6953_v57 = vld [vmem:[%s8353_s2 + $0xe4] ss:$16 sps:$4 sm:$0xff]  }
 0x2fc   :  { %v3407_v20 = vpop.f32.mrf.mxu0  ;;  %v3448_v21 = vpop.f32.mrf.mxu1 }
 0x2fd   :  { %5488 = vpow2.f32 %v5188_v17  ;;  %v5189_v22 = vmul.f32 -1.442695, %v3406_v19  ;;  %v5190_v27 = vmul.f32 -1.442695, %v3447_v26 }
 0x2fe   :  { %v3408_v23 = vpop.f32.mrf.mxu0  ;;  %v3449_v24 = vpop.f32.mrf.mxu1 }
 0x2ff   :  { %5490 = vpow2.f32 %v5189_v22 }
 0x300   :  { %5492 = vpow2.f32 %v5190_v27 }
 0x30a   :  { %v5489_v28 = vpop.eup %5488 }
 0x30b   :  { %v3454_v31 = vadd.f32 1.0, %v5489_v28 }
 0x30c   :  { %v5491_v32 = vpop.eup %5490 }
 0x30d   :  { %5494 = vrcp.f32 %v3454_v31  ;;  %v3460_v33 = vadd.f32 1.0, %v5491_v32  ;;  %v5493_v40 = vpop.eup %5492 }
 0x30e   :  { %5496 = vtanh.f32 %v3445_v30  ;;  %v3467_v3 = vadd.f32 1.0, %v5493_v40 }
 0x30f   :  { %5498 = vrcp.f32 %v3460_v33 }
 0x318   :  { %v3516_v37 = vpop.f32.mrf.mxu0  ;;  %v3557_v39 = vpop.f32.mrf.mxu1 }
 0x319   :  { %v3564_v41 = vadd.f32 %v3516_v37, %v3478_v35 }
 0x31a   :  { %v5495_v42 = vpop.eup %5494  ;;  %v3518_v43 = vpop.f32.mrf.mxu0 }
 0x31b   :  { %v3559_v44 = vpop.f32.mrf.mxu1  ;;  %v5497_v45 = vpop.eup %5496  ;;  %v5193_v46 = vmul.f32 -1.442695, %v3564_v41  ;;  %v3565_v47 = vadd.f32 %v3518_v43, %v3479_v36  ;;  %v6856_v41 = vld [vmem:[%s8352_s1 + $0x88] ss:$16 sps:$4 sm:$0xff]   ;;  %v6869_v43 = vld [vmem:[%s8352_s1 + $0x60] ss:$16 sps:$4 sm:$0xff]  }
 0x31c   :  { %v5499_v2 = vpop.eup %5498  ;;  %v3520_v4 = vpop.f32.mrf.mxu0  ;;  %v3471_v7 = vmul.f32 %v5497_v45, %v5495_v42  ;;  %v3567_v59 = vadd.f32 %v3559_v44, %v3481_v1  ;;  %v6863_v42 = vld [vmem:[%s8352_s1 + $0x6c] ss:$16 sps:$4 sm:$0xff]   ;;  %v6875_v44 = vld [vmem:[%s8352_s1 + $0x68] ss:$16 sps:$4 sm:$0xff]   ;;  %v6881_v45 = vld [vmem:[%s8352_s1 + $0x44] ss:$16 sps:$4 sm:$0xff]  }
 0x31d   :  { %v3561_v5 = vpop.f32.mrf.mxu1  ;;  %v3470_v8 = vmul.f32 %v5499_v2, %v6632_v12  ;;  %5500 = vpow2.f32 %v5193_v46  ;;  %v5194_v9 = vmul.f32 -1.442695, %v3565_v47  ;;  %v3566_v12 = vadd.f32 %v3557_v39, %v3480_v14  ;;  %v6887_v46 = vld [vmem:[%s8352_s1 + $0x4c] ss:$16 sps:$4 sm:$0xff]   ;;  %v6893_v47 = vld [vmem:[%s8352_s1 + $0x40] ss:$16 sps:$4 sm:$0xff]  }
 0x31e   :  { %v3521_v10 = vpop.f32.mrf.mxu0  ;;  %v5195_v16 = vmul.f32 -1.442695, %v3567_v59  ;;  %v6899_v2 = vld [vmem:[%s8352_s1 + $0x48] ss:$16 sps:$4 sm:$0xff]   ;;  %v6911_v4 = vld [vmem:[%s8352_s1 + $0x2c] ss:$16 sps:$4 sm:$0xff]  }
 0x31f   :  { %v3562_v11 = vpop.f32.mrf.mxu1  ;;  %5502 = vpow2.f32 %v5194_v9  ;;  %v6826_v58 = vadd.f32 %v3471_v7, %v3470_v8  ;;  %v6917_v5 = vld [vmem:[%s8352_s1 + $0x20] ss:$16 sps:$4 sm:$0xff]   ;;  %v6923_v7 = vld [vmem:[%s8352_s1 + $0x28] ss:$16 sps:$4 sm:$0xff]   ;;  %v6929_v8 = vld [vmem:[%s8352_s1 + $0x4] ss:$16 sps:$4 sm:$0xff]  }
 0x320   :  { %5504 = vrcp.f32 %v3467_v3  ;;  %v6905_v3 = vld [vmem:[%s8352_s1 + $0x24] ss:$16 sps:$4 sm:$0xff]   ;;  %v6935_v9 = vld [vmem:[%s8352_s1 + $0xc] ss:$16 sps:$4 sm:$0xff]   ;;  %v6941_v10 = vld [vmem:[%s8352_s1] ss:$16 sps:$4 sm:$0xff]  }
 0x321   :  { %5506 = vtanh.f32 %v6826_v58  ;;  %v6947_v11 = vld [vmem:[%s8352_s1 + $0x8] ss:$16 sps:$4 sm:$0xff]   ;;  %v6959_v1 = vld [vmem:[%s8353_s2 + $0xec] ss:$16 sps:$4 sm:$0xff]   ;;  %v6965_v59 = vld [vmem:[%s8353_s2 + $0xe0] ss:$16 sps:$4 sm:$0xff]  }
 0x322   :  { %5508 = vpow2.f32 %v5195_v16  ;;  %v6971_v14 = vld [vmem:[%s8353_s2 + $0xe8] ss:$16 sps:$4 sm:$0xff]   ;;  %v6977_v16 = vld [vmem:[%s8353_s2 + $0xc4] ss:$16 sps:$4 sm:$0xff]  }
 0x32a   :  { %v5501_v17 = vpop.eup %5500 }
 0x32b   :  { %v3571_v19 = vadd.f32 1.0, %v5501_v17  ;;  %v6983_v17 = vld [vmem:[%s8353_s2 + $0xcc] ss:$16 sps:$4 sm:$0xff]  }
 0x32c   :  { %v5503_v20 = vpop.eup %5502 }
 0x32d   :  { %v5505_v21 = vpop.eup %5504  ;;  %5510 = vrcp.f32 %v3571_v19  ;;  %v3577_v22 = vadd.f32 1.0, %v5503_v20  ;;  %v6995_v19 = vld [vmem:[%s8353_s2 + $0xc8] ss:$16 sps:$4 sm:$0xff]   ;;  %v7001_v20 = vld [vmem:[%s8353_s2 + $0xa4] ss:$16 sps:$4 sm:$0xff]  }
 0x32e   :  { %v5507_v23 = vpop.eup %5506  ;;  %5512 = vtanh.f32 %v3566_v12  ;;  %v6989_v12 = vld [vmem:[%s8353_s2 + $0xc0] ss:$16 sps:$4 sm:$0xff]  }
 0x32f   :  { %5514 = vrcp.f32 %v3577_v22  ;;  %v3474_v24 = vmul.f32 %v5507_v23, %v5505_v21  ;;  %v5509_v27 = vpop.eup %5508  ;;  %v7007_v21 = vld [vmem:[%s8353_s2 + $0xac] ss:$16 sps:$4 sm:$0xff]   ;;  %v7013_v22 = vld [vmem:[%s8353_s2 + $0xa0] ss:$16 sps:$4 sm:$0xff]   ;;  %v7019_v23 = vld [vmem:[%s8353_s2 + $0xa8] ss:$16 sps:$4 sm:$0xff]  }
 0x330   :  { %v3584_v32 = vadd.f32 1.0, %v5509_v27  ;;  %8799 = vst [vmem:[#allocation14_spill] sm:$0xff] %v7013_v22  ;;  %8800 = vst [vmem:[#allocation15_spill] sm:$0xff] %v7019_v23  ;;  %v7037_v27 = vld [vmem:[%s8353_s2 + $0x80] ss:$16 sps:$4 sm:$0xff]  }
 0x331   :  { %v3593_v26 = vpack.c.bf16 %v3474_v24, %v3474_v24  ;;  %v7025_v24 = vld [vmem:[%s8353_s2 + $0x84] ss:$16 sps:$4 sm:$0xff]   ;;  %8803 = vst [vmem:[#allocation7_spill] sm:$0xff] %v7037_v27 }
 0x332   :  { %5516 = vrcp.f32 %v3584_v32  ;;  %8801 = vst [vmem:[#allocation16_spill] sm:$0xff] %v7025_v24  ;;  %v7061_v32 = vld [vmem:[%s8353_s2 + $0x60] ss:$16 sps:$4 sm:$0xff]  }
 0x333   :  { %3626 = vmatprep.mubr.bf16.mxu0 %v3593_v26  ;;  %3667 = vmatprep.mubr.bf16.mxu1 %v3593_v26  ;;  %v7031_v26 = vld [vmem:[%s8353_s2 + $0x8c] ss:$16 sps:$4 sm:$0xff]   ;;  %8807 = vst [vmem:[#allocation20_spill] sm:$0xff] %v7061_v32 }
 0x334   :  { %8802 = vst [vmem:[#allocation6_spill] sm:$0xff] %v7031_v26 }
 0x33a   :  { %v5511_v28 = vpop.eup %5510 }
 0x33b   :  { %v5513_v30 = vpop.eup %5512 }
 0x33c   :  { %v5515_v31 = vpop.eup %5514  ;;  %v3588_v33 = vmul.f32 %v5513_v30, %v5511_v28  ;;  %v7043_v28 = vld [vmem:[%s8353_s2 + $0x88] ss:$16 sps:$4 sm:$0xff]   ;;  %v7049_v30 = vld [vmem:[%s8353_s2 + $0x64] ss:$16 sps:$4 sm:$0xff]  }
 0x33d   :  { %v3587_v34 = vmul.f32 %v5515_v31, %v6639_v48  ;;  %v6849_v48 = vld [vmem:[%s8352_s1 + $0x8c] ss:$16 sps:$4 sm:$0xff]   ;;  %8804 = vst [vmem:[#allocation17_spill] sm:$0xff] %v7043_v28  ;;  %8805 = vst [vmem:[#allocation18_spill] sm:$0xff] %v7049_v30 }
 0x33e   :  { %v7055_v31 = vld [vmem:[%s8353_s2 + $0x6c] ss:$16 sps:$4 sm:$0xff]  }
 0x33f   :  { %v6830_v35 = vadd.f32 %v3588_v33, %v3587_v34  ;;  %v5517_v36 = vpop.eup %5516  ;;  %8806 = vst [vmem:[#allocation19_spill] sm:$0xff] %v7055_v31  ;;  %v7067_v33 = vld [vmem:[%s8353_s2 + $0x68] ss:$16 sps:$4 sm:$0xff]   ;;  %v7073_v34 = vld [vmem:[%s8353_s2 + $0x44] ss:$16 sps:$4 sm:$0xff]  }
 0x340   :  { %8808 = vst [vmem:[#allocation21_spill] sm:$0xff] %v7067_v33  ;;  %8809 = vst [vmem:[#allocation22_spill] sm:$0xff] %v7073_v34 }
 0x341   :  { %5518 = vtanh.f32 %v6830_v35 }
 0x34e   :  { %v5519_v37 = vpop.eup %5518 }
 0x34f   :  { %v3591_v39 = vmul.f32 %v5519_v37, %v5517_v36  ;;  %v7079_v36 = vld [vmem:[%s8353_s2 + $0x4c] ss:$16 sps:$4 sm:$0xff]   ;;  %v7085_v37 = vld [vmem:[%s8353_s2 + $0x40] ss:$16 sps:$4 sm:$0xff]  }
 0x350   :  { %8810 = vst [vmem:[#allocation23_spill] sm:$0xff] %v7079_v36  ;;  %8811 = vst [vmem:[#allocation24_spill] sm:$0xff] %v7085_v37 }
 0x351   :  { %v3592_v40 = vpack.c.bf16 %v3591_v39, %v3591_v39  ;;  %v7091_v39 = vld [vmem:[%s8353_s2 + $0x48] ss:$16 sps:$4 sm:$0xff]  }
 0x352   :  { %8812 = vst [vmem:[#allocation25_spill] sm:$0xff] %v7091_v39 }
 0x353   :  { %3627 = vmatmul.mubr.bf16.vlgmr.msra.gmra.mxu0 %v3592_v40  ;;  %3668 = vmatmul.mubr.bf16.vlgmr.msra.gmra.mxu1 %v3592_v40 }
 0x354   :  { %3708 = vmatpush1.bf16.msra.mxu0 %v6645_v51  ;;  %3749 = vmatpush1.bf16.msra.mxu1 %v6651_v0 }
 0x355   :  { %3709 = vmatprep.subr.bf16.mxu0 %v6657_v60  ;;  %3750 = vmatprep.subr.bf16.mxu1 %v6663_v55 }
 0x356   :  { %3739 = vmatprep.mubr.bf16.mxu0 %v8695_v38  ;;  %3780 = vmatprep.mubr.bf16.mxu1 %v8695_v38 }
 0x358   :  { %3710 = vmatpush1.bf16.msra.mxu0 %v6671_v53  ;;  %3751 = vmatpush1.bf16.msra.mxu1 %v6677_v56 }
 0x359   :  { %3711 = vmatprep.subr.bf16.mxu0 %v6683_v54  ;;  %3752 = vmatprep.subr.bf16.mxu1 %v6689_v61 }
 0x35c   :  { %3712 = vmatpush1.bf16.msra.mxu0 %v6695_v62  ;;  %3753 = vmatpush1.bf16.msra.mxu1 %v6701_v13 }
 0x35d   :  { %3713 = vmatprep.subr.bf16.mxu0 %v6707_v6  ;;  %3754 = vmatprep.subr.bf16.mxu1 %v6849_v48 }
 0x360   :  { %3714 = vmatpush1.bf16.msra.mxu0 %v6714_v50  ;;  %3755 = vmatpush1.bf16.msra.mxu1 %v6856_v41 }
 0x361   :  { %3715 = vmatprep.subr.bf16.mxu0 %v6721_v52  ;;  %3756 = vmatprep.subr.bf16.mxu1 %v6863_v42 }
 0x364   :  { %3716 = vmatpush1.bf16.msra.mxu0 %v6869_v43  ;;  %3757 = vmatpush1.bf16.msra.mxu1 %v6875_v44 }
 0x365   :  { %3717 = vmatprep.subr.bf16.mxu0 %v6881_v45  ;;  %3758 = vmatprep.subr.bf16.mxu1 %v6887_v46 }
 0x368   :  { %3718 = vmatpush1.bf16.msra.mxu0 %v6893_v47  ;;  %3759 = vmatpush1.bf16.msra.mxu1 %v6899_v2 }
 0x369   :  { %3719 = vmatprep.subr.bf16.mxu0 %v6905_v3  ;;  %3760 = vmatprep.subr.bf16.mxu1 %v6911_v4 }
 0x36c   :  { %3720 = vmatpush1.bf16.msra.mxu0 %v6917_v5  ;;  %3761 = vmatpush1.bf16.msra.mxu1 %v6923_v7 }
 0x36d   :  { %3721 = vmatprep.subr.bf16.mxu0 %v6929_v8  ;;  %3762 = vmatprep.subr.bf16.mxu1 %v6935_v9 }
 0x370   :  { %3722 = vmatpush1.bf16.msra.mxu0 %v6941_v10  ;;  %3763 = vmatpush1.bf16.msra.mxu1 %v6947_v11 }
 0x371   :  { %3819 = vmatprep.subr.bf16.mxu0 %v6953_v57  ;;  %3860 = vmatprep.subr.bf16.mxu1 %v6959_v1 }
 0x373   :  { %3740 = vmatmul.mubr.bf16.vlgmr.msra.gmra.mxu0 %v3592_v40  ;;  %3781 = vmatmul.mubr.bf16.vlgmr.msra.gmra.mxu1 %v3592_v40  ;;  %v7097_v40 = vld [vmem:[%s8353_s2 + $0x24] ss:$16 sps:$4 sm:$0xff]  }
 0x374   :  { %3820 = vmatpush1.bf16.msra.mxu0 %v6965_v59  ;;  %3861 = vmatpush1.bf16.msra.mxu1 %v6971_v14  ;;  %8813 = vst [vmem:[#allocation26_spill] sm:$0xff] %v7097_v40 }
 0x375   :  { %3821 = vmatprep.subr.bf16.mxu0 %v6977_v16  ;;  %3862 = vmatprep.subr.bf16.mxu1 %v6983_v17 }
 0x378   :  { %3822 = vmatpush1.bf16.msra.mxu0 %v6989_v12  ;;  %3863 = vmatpush1.bf16.msra.mxu1 %v6995_v19 }
 0x379   :  { %3823 = vmatprep.subr.bf16.mxu0 %v7001_v20  ;;  %3864 = vmatprep.subr.bf16.mxu1 %v7007_v21 }
 0x37c   :  { %3824 = vmatpush1.bf16.msra.mxu0 %v7013_v22  ;;  %3865 = vmatpush1.bf16.msra.mxu1 %v7019_v23 }
 0x37d   :  { %3825 = vmatprep.subr.bf16.mxu0 %v7025_v24  ;;  %3866 = vmatprep.subr.bf16.mxu1 %v7031_v26 }
 0x380   :  { %3826 = vmatpush1.bf16.msra.mxu0 %v7037_v27  ;;  %3867 = vmatpush1.bf16.msra.mxu1 %v7043_v28 }
 0x381   :  { %3827 = vmatprep.subr.bf16.mxu0 %v7049_v30  ;;  %3868 = vmatprep.subr.bf16.mxu1 %v7055_v31 }
 0x384   :  { %3828 = vmatpush1.bf16.msra.mxu0 %v7061_v32  ;;  %3869 = vmatpush1.bf16.msra.mxu1 %v7067_v33 }
 0x385   :  { %3829 = vmatprep.subr.bf16.mxu0 %v7073_v34  ;;  %3870 = vmatprep.subr.bf16.mxu1 %v7079_v36  ;;  %v7103_v36 = vld [vmem:[%s8353_s2 + $0x2c] ss:$16 sps:$4 sm:$0xff]  }
 0x386   :  { %8814 = vst [vmem:[#allocation27_spill] sm:$0xff] %v7103_v36 }
 0x388   :  { %3830 = vmatpush1.bf16.msra.mxu0 %v7085_v37  ;;  %3871 = vmatpush1.bf16.msra.mxu1 %v7091_v39  ;;  %v7109_v37 = vld [vmem:[%s8353_s2 + $0x20] ss:$16 sps:$4 sm:$0xff]   ;;  %v7115_v39 = vld [vmem:[%s8353_s2 + $0x28] ss:$16 sps:$4 sm:$0xff]  }
 0x389   :  { %3831 = vmatprep.subr.bf16.mxu0 %v7097_v40  ;;  %3872 = vmatprep.subr.bf16.mxu1 %v7103_v36  ;;  %8815 = vst [vmem:[#allocation28_spill] sm:$0xff] %v7109_v37  ;;  %8816 = vst [vmem:[#allocation29_spill] sm:$0xff] %v7115_v39  ;;  %v7121_v40 = vld [vmem:[%s8353_s2 + $0x4] ss:$16 sps:$4 sm:$0xff]   ;;  %v7127_v36 = vld [vmem:[%s8353_s2 + $0xc] ss:$16 sps:$4 sm:$0xff]  }
 0x38a   :  { %8817 = vst [vmem:[#allocation30_spill] sm:$0xff] %v7121_v40  ;;  %8818 = vst [vmem:[#allocation31_spill] sm:$0xff] %v7127_v36 }
 0x38c   :  { %3832 = vmatpush1.bf16.msra.mxu0 %v7109_v37  ;;  %3873 = vmatpush1.bf16.msra.mxu1 %v7115_v39  ;;  %v7133_v37 = vld [vmem:[%s8353_s2] ss:$16 sps:$4 sm:$0xff]   ;;  %v7139_v39 = vld [vmem:[%s8353_s2 + $0x8] ss:$16 sps:$4 sm:$0xff]  }
 0x38d   :  { %3833 = vmatprep.subr.bf16.mxu0 %v7121_v40  ;;  %3874 = vmatprep.subr.bf16.mxu1 %v7127_v36  ;;  %8819 = vst [vmem:[#allocation32_spill] sm:$0xff] %v7133_v37  ;;  %8820 = vst [vmem:[#allocation33_spill] sm:$0xff] %v7139_v39  ;;  %v7145_v40 = vld [vmem:[%s8353_s2 + $0x1e4] ss:$16 sps:$4 sm:$0xff]   ;;  %v7151_v36 = vld [vmem:[%s8353_s2 + $0x1ec] ss:$16 sps:$4 sm:$0xff]  }
 0x38e   :  { %8821 = vst [vmem:[#allocation34_spill] sm:$0xff] %v7145_v40  ;;  %8822 = vst [vmem:[#allocation35_spill] sm:$0xff] %v7151_v36 }
 0x390   :  { %3834 = vmatpush1.bf16.msra.mxu0 %v7133_v37  ;;  %3875 = vmatpush1.bf16.msra.mxu1 %v7139_v39  ;;  %v7157_v37 = vld [vmem:[%s8353_s2 + $0x1e0] ss:$16 sps:$4 sm:$0xff]   ;;  %v7163_v39 = vld [vmem:[%s8353_s2 + $0x1e8] ss:$16 sps:$4 sm:$0xff]  }
 0x391   :  { %3835 = vmatprep.subr.bf16.mxu0 %v7145_v40  ;;  %3876 = vmatprep.subr.bf16.mxu1 %v7151_v36  ;;  %8823 = vst [vmem:[#allocation36_spill] sm:$0xff] %v7157_v37  ;;  %8824 = vst [vmem:[#allocation37_spill] sm:$0xff] %v7163_v39  ;;  %v7169_v40 = vld [vmem:[%s8353_s2 + $0x1c4] ss:$16 sps:$4 sm:$0xff]   ;;  %v7175_v36 = vld [vmem:[%s8353_s2 + $0x1cc] ss:$16 sps:$4 sm:$0xff]  }
 0x392   :  { %8825 = vst [vmem:[#allocation38_spill] sm:$0xff] %v7169_v40  ;;  %8826 = vst [vmem:[#allocation39_spill] sm:$0xff] %v7175_v36 }
 0x394   :  { %3836 = vmatpush2.bf16.msra.mxu0 %v7157_v37  ;;  %3877 = vmatpush2.bf16.msra.mxu1 %v7163_v39  ;;  %v7181_v37 = vld [vmem:[%s8353_s2 + $0x1c0] ss:$16 sps:$4 sm:$0xff]   ;;  %v7187_v39 = vld [vmem:[%s8353_s2 + $0x1c8] ss:$16 sps:$4 sm:$0xff]  }
 0x395   :  { %3837 = vmatprep.subr.bf16.mxu0 %v7169_v40  ;;  %3878 = vmatprep.subr.bf16.mxu1 %v7175_v36  ;;  %8827 = vst [vmem:[#allocation40_spill] sm:$0xff] %v7181_v37  ;;  %8828 = vst [vmem:[#allocation41_spill] sm:$0xff] %v7187_v39  ;;  %v7193_v40 = vld [vmem:[%s8353_s2 + $0x1a4] ss:$16 sps:$4 sm:$0xff]   ;;  %v7199_v36 = vld [vmem:[%s8353_s2 + $0x1ac] ss:$16 sps:$4 sm:$0xff]  }
 0x396   :  { %8829 = vst [vmem:[#allocation42_spill] sm:$0xff] %v7193_v40  ;;  %8830 = vst [vmem:[#allocation43_spill] sm:$0xff] %v7199_v36 }
 0x398   :  { %3838 = vmatpush2.bf16.msra.mxu0 %v7181_v37  ;;  %3879 = vmatpush2.bf16.msra.mxu1 %v7187_v39  ;;  %v7205_v37 = vld [vmem:[%s8353_s2 + $0x1a0] ss:$16 sps:$4 sm:$0xff]   ;;  %v7211_v39 = vld [vmem:[%s8353_s2 + $0x1a8] ss:$16 sps:$4 sm:$0xff]  }
 0x399   :  { %3839 = vmatprep.subr.bf16.mxu0 %v7193_v40  ;;  %3880 = vmatprep.subr.bf16.mxu1 %v7199_v36  ;;  %8831 = vst [vmem:[#allocation44_spill] sm:$0xff] %v7205_v37  ;;  %8832 = vst [vmem:[#allocation45_spill] sm:$0xff] %v7211_v39  ;;  %v7217_v40 = vld [vmem:[%s8353_s2 + $0x184] ss:$16 sps:$4 sm:$0xff]   ;;  %v7223_v36 = vld [vmem:[%s8353_s2 + $0x18c] ss:$16 sps:$4 sm:$0xff]  }
 0x39a   :  { %8833 = vst [vmem:[#allocation46_spill] sm:$0xff] %v7217_v40  ;;  %8834 = vst [vmem:[#allocation47_spill] sm:$0xff] %v7223_v36 }
 0x39c   :  { %3840 = vmatpush2.bf16.msra.mxu0 %v7205_v37  ;;  %3881 = vmatpush2.bf16.msra.mxu1 %v7211_v39  ;;  %v7229_v37 = vld [vmem:[%s8353_s2 + $0x180] ss:$16 sps:$4 sm:$0xff]   ;;  %v7235_v39 = vld [vmem:[%s8353_s2 + $0x188] ss:$16 sps:$4 sm:$0xff]  }
 0x39d   :  { %3841 = vmatprep.subr.bf16.mxu0 %v7217_v40  ;;  %3882 = vmatprep.subr.bf16.mxu1 %v7223_v36  ;;  %8835 = vst [vmem:[#allocation48_spill] sm:$0xff] %v7229_v37  ;;  %8836 = vst [vmem:[#allocation49_spill] sm:$0xff] %v7235_v39  ;;  %v7241_v40 = vld [vmem:[%s8353_s2 + $0x164] ss:$16 sps:$4 sm:$0xff]   ;;  %v7247_v36 = vld [vmem:[%s8353_s2 + $0x16c] ss:$16 sps:$4 sm:$0xff]  }
 0x39e   :  { %8837 = vst [vmem:[#allocation50_spill] sm:$0xff] %v7241_v40  ;;  %8838 = vst [vmem:[#allocation51_spill] sm:$0xff] %v7247_v36 }
 0x3a0   :  { %3842 = vmatpush2.bf16.msra.mxu0 %v7229_v37  ;;  %3883 = vmatpush2.bf16.msra.mxu1 %v7235_v39  ;;  %v7253_v37 = vld [vmem:[%s8353_s2 + $0x160] ss:$16 sps:$4 sm:$0xff]   ;;  %v7259_v39 = vld [vmem:[%s8353_s2 + $0x168] ss:$16 sps:$4 sm:$0xff]  }
 0x3a1   :  { %3843 = vmatprep.subr.bf16.mxu0 %v7241_v40  ;;  %3884 = vmatprep.subr.bf16.mxu1 %v7247_v36  ;;  %8839 = vst [vmem:[#allocation52_spill] sm:$0xff] %v7253_v37  ;;  %8840 = vst [vmem:[#allocation53_spill] sm:$0xff] %v7259_v39  ;;  %v7265_v40 = vld [vmem:[%s8353_s2 + $0x144] ss:$16 sps:$4 sm:$0xff]   ;;  %v7271_v36 = vld [vmem:[%s8353_s2 + $0x14c] ss:$16 sps:$4 sm:$0xff]  }
 0x3a2   :  { %8841 = vst [vmem:[#allocation54_spill] sm:$0xff] %v7265_v40  ;;  %8842 = vst [vmem:[#allocation55_spill] sm:$0xff] %v7271_v36 }
 0x3a4   :  { %3844 = vmatpush2.bf16.msra.mxu0 %v7253_v37  ;;  %3885 = vmatpush2.bf16.msra.mxu1 %v7259_v39  ;;  %v7277_v37 = vld [vmem:[%s8353_s2 + $0x140] ss:$16 sps:$4 sm:$0xff]   ;;  %v7283_v39 = vld [vmem:[%s8353_s2 + $0x148] ss:$16 sps:$4 sm:$0xff]  }
 0x3a5   :  { %3845 = vmatprep.subr.bf16.mxu0 %v7265_v40  ;;  %3886 = vmatprep.subr.bf16.mxu1 %v7271_v36  ;;  %8843 = vst [vmem:[#allocation56_spill] sm:$0xff] %v7277_v37  ;;  %8844 = vst [vmem:[#allocation57_spill] sm:$0xff] %v7283_v39  ;;  %v7289_v40 = vld [vmem:[%s8353_s2 + $0x124] ss:$16 sps:$4 sm:$0xff]   ;;  %v7295_v36 = vld [vmem:[%s8353_s2 + $0x12c] ss:$16 sps:$4 sm:$0xff]  }
 0x3a6   :  { %8845 = vst [vmem:[#allocation58_spill] sm:$0xff] %v7289_v40  ;;  %8846 = vst [vmem:[#allocation59_spill] sm:$0xff] %v7295_v36 }
 0x3a8   :  { %3846 = vmatpush2.bf16.msra.mxu0 %v7277_v37  ;;  %3887 = vmatpush2.bf16.msra.mxu1 %v7283_v39  ;;  %v7301_v37 = vld [vmem:[%s8353_s2 + $0x120] ss:$16 sps:$4 sm:$0xff]   ;;  %v7307_v39 = vld [vmem:[%s8353_s2 + $0x128] ss:$16 sps:$4 sm:$0xff]  }
 0x3a9   :  { %3847 = vmatprep.subr.bf16.mxu0 %v7289_v40  ;;  %3888 = vmatprep.subr.bf16.mxu1 %v7295_v36  ;;  %8847 = vst [vmem:[#allocation60_spill] sm:$0xff] %v7301_v37  ;;  %8848 = vst [vmem:[#allocation61_spill] sm:$0xff] %v7307_v39  ;;  %v7313_v40 = vld [vmem:[%s8353_s2 + $0x104] ss:$16 sps:$4 sm:$0xff]   ;;  %v7319_v36 = vld [vmem:[%s8353_s2 + $0x10c] ss:$16 sps:$4 sm:$0xff]  }
 0x3aa   :  { %8849 = vst [vmem:[#allocation62_spill] sm:$0xff] %v7313_v40  ;;  %8850 = vst [vmem:[#allocation63_spill] sm:$0xff] %v7319_v36 }
 0x3ac   :  { %3848 = vmatpush2.bf16.msra.mxu0 %v7301_v37  ;;  %3889 = vmatpush2.bf16.msra.mxu1 %v7307_v39  ;;  %v7325_v37 = vld [vmem:[%s8353_s2 + $0x100] ss:$16 sps:$4 sm:$0xff]   ;;  %v7331_v39 = vld [vmem:[%s8353_s2 + $0x108] ss:$16 sps:$4 sm:$0xff]  }
 0x3ad   :  { %3849 = vmatprep.subr.bf16.mxu0 %v7313_v40  ;;  %3890 = vmatprep.subr.bf16.mxu1 %v7319_v36  ;;  %8851 = vst [vmem:[#allocation64_spill] sm:$0xff] %v7325_v37  ;;  %8852 = vst [vmem:[#allocation65_spill] sm:$0xff] %v7331_v39 }
 0x3b0   :  { %3850 = vmatpush2.bf16.msra.mxu0 %v7325_v37  ;;  %3891 = vmatpush2.bf16.msra.mxu1 %v7331_v39 }
 0x3b1   :  { %3932 = vmatprep.subr.bf16.mxu0 %v6806_v63  ;;  %3973 = vmatprep.subr.bf16.mxu1 %v6812_v15 }
 0x413   :  { %v3628_v40 = vpop.f32.mrf.mxu0  ;;  %v3669_v36 = vpop.f32.mrf.mxu1 }
 0x414   :  { %v3629_v34 = vadd.f32 %v3628_v40, %v8795_v49  ;;  %v3670_v23 = vadd.f32 %v3669_v36, %v8798_v29 }
 0x415   :  { %v3630_v33 = vpop.f32.mrf.mxu0  ;;  %v3671_v32 = vpop.f32.mrf.mxu1 }
 0x416   :  { %v5196_v31 = vmul.f32 -1.442695, %v3629_v34  ;;  %v3631_v37 = vadd.f32 %v3630_v33, %v8796_v18  ;;  %v3672_v63 = vadd.f32 %v3671_v32, %v8797_v25 }
 0x417   :  { %v3632_v30 = vpop.f32.mrf.mxu0  ;;  %v3673_v28 = vpop.f32.mrf.mxu1 }
 0x418   :  { %5520 = vpow2.f32 %v5196_v31  ;;  %v5197_v27 = vmul.f32 -1.442695, %v3631_v37  ;;  %v5198_v39 = vmul.f32 -1.442695, %v3672_v63  ;;  %v5199_v28 = vld [vmem:[%s8354_s0 + $0x30] sm:$0xff] }
 0x419   :  { %v3633_v26 = vpop.f32.mrf.mxu0  ;;  %v3674_v24 = vpop.f32.mrf.mxu1 }
 0x41a   :  { %5522 = vpow2.f32 %v5197_v27  ;;  %v3703_v26 = vunpack.c.l.bf16 %v5199_v28  ;;  %v3704_v24 = vunpack.c.h.bf16 %v5199_v28 }
 0x41b   :  { %5524 = vpow2.f32 %v5198_v39 }
 0x425   :  { %v5521_v15 = vpop.eup %5520 }
 0x426   :  { %v3679_v22 = vadd.f32 1.0, %v5521_v15 }
 0x427   :  { %v5523_v40 = vpop.eup %5522 }
 0x428   :  { %5526 = vrcp.f32 %v3679_v22  ;;  %v3685_v34 = vadd.f32 1.0, %v5523_v40  ;;  %v5525_v31 = vpop.eup %5524 }
 0x429   :  { %5528 = vtanh.f32 %v3670_v23  ;;  %v3692_v40 = vadd.f32 1.0, %v5525_v31 }
 0x42a   :  { %5530 = vrcp.f32 %v3685_v34 }
 0x433   :  { %v3741_v27 = vpop.f32.mrf.mxu0  ;;  %v3782_v30 = vpop.f32.mrf.mxu1 }
 0x434   :  { %v3789_v63 = vadd.f32 %v3741_v27, %v3703_v26  ;;  %v5200_v26 = vld [vmem:[%s8354_s0 + $0x38] sm:$0xff] }
 0x435   :  { %v5527_v32 = vpop.eup %5526  ;;  %v3743_v33 = vpop.f32.mrf.mxu0 }
 0x436   :  { %v3784_v36 = vpop.f32.mrf.mxu1  ;;  %v5529_v15 = vpop.eup %5528  ;;  %v5201_v37 = vmul.f32 -1.442695, %v3789_v63  ;;  %v3790_v39 = vadd.f32 %v3743_v33, %v3704_v24  ;;  %v3706_v24 = vunpack.c.h.bf16 %v5200_v26  ;;  %v3705_v63 = vunpack.c.l.bf16 %v5200_v26 }
 0x437   :  { %v5531_v22 = vpop.eup %5530  ;;  %v3745_v23 = vpop.f32.mrf.mxu0  ;;  %v3696_v29 = vmul.f32 %v5529_v15, %v5527_v32 }
 0x438   :  { %v3786_v34 = vpop.f32.mrf.mxu1  ;;  %v3695_v25 = vmul.f32 %v5531_v22, %v6826_v58  ;;  %5532 = vpow2.f32 %v5201_v37  ;;  %v5202_v18 = vmul.f32 -1.442695, %v3790_v39  ;;  %v3792_v31 = vadd.f32 %v3784_v36, %v3706_v24 }
 0x439   :  { %v3746_v28 = vpop.f32.mrf.mxu0  ;;  %v3791_v58 = vadd.f32 %v3782_v30, %v3705_v63 }
 0x43a   :  { %v3787_v49 = vpop.f32.mrf.mxu1  ;;  %5534 = vpow2.f32 %v5202_v18  ;;  %v7347_v27 = vadd.f32 %v3696_v29, %v3695_v25  ;;  %v5203_v32 = vmul.f32 -1.442695, %v3792_v31 }
 0x43b   :  { %5536 = vrcp.f32 %v3692_v40 }
 0x43c   :  { %5538 = vtanh.f32 %v7347_v27 }
 0x43d   :  { %5540 = vpow2.f32 %v5203_v32 }
 0x445   :  { %v5533_v33 = vpop.eup %5532 }
 0x446   :  { %v3796_v15 = vadd.f32 1.0, %v5533_v33  ;;  %v8867_v33 = vld [vmem:[#allocation26_spill] sm:$0xff] }
 0x447   :  { %v5535_v37 = vpop.eup %5534 }
 0x448   :  { %v5537_v49 = vpop.eup %5536  ;;  %5542 = vrcp.f32 %v3796_v15  ;;  %v3802_v39 = vadd.f32 1.0, %v5535_v37  ;;  %v8869_v15 = vld [vmem:[#allocation28_spill] sm:$0xff]  ;;  %v8870_v37 = vld [vmem:[#allocation29_spill] sm:$0xff] }
 0x449   :  { %v5539_v22 = vpop.eup %5538  ;;  %5544 = vtanh.f32 %v3791_v58  ;;  %v8868_v58 = vld [vmem:[#allocation27_spill] sm:$0xff] }
 0x44a   :  { %5546 = vrcp.f32 %v3802_v39  ;;  %v3699_v18 = vmul.f32 %v5539_v22, %v5537_v49  ;;  %v5541_v29 = vpop.eup %5540  ;;  %v8871_v49 = vld [vmem:[#allocation30_spill] sm:$0xff]  ;;  %v8872_v39 = vld [vmem:[#allocation31_spill] sm:$0xff]  ;;  %v8873_v22 = vld [vmem:[#allocation32_spill] sm:$0xff] }
 0x44b   :  { %v3809_v34 = vadd.f32 1.0, %v5541_v29  ;;  %v8876_v29 = vld [vmem:[#allocation35_spill] sm:$0xff] }
 0x44c   :  { %v3818_v25 = vpack.c.bf16 %v3699_v18, %v3699_v18  ;;  %v8874_v18 = vld [vmem:[#allocation33_spill] sm:$0xff] }
 0x44d   :  { %5548 = vrcp.f32 %v3809_v34  ;;  %v8880_v34 = vld [vmem:[#allocation39_spill] sm:$0xff] }
 0x44e   :  { %3851 = vmatprep.mubr.bf16.mxu0 %v3818_v25  ;;  %3892 = vmatprep.mubr.bf16.mxu1 %v3818_v25  ;;  %v8875_v25 = vld [vmem:[#allocation34_spill] sm:$0xff] }
 0x455   :  { %v5543_v40 = vpop.eup %5542 }
 0x456   :  { %v5545_v36 = vpop.eup %5544 }
 0x457   :  { %v5547_v23 = vpop.eup %5546  ;;  %v3813_v28 = vmul.f32 %v5545_v36, %v5543_v40  ;;  %v8877_v40 = vld [vmem:[#allocation36_spill] sm:$0xff]  ;;  %v8878_v36 = vld [vmem:[#allocation37_spill] sm:$0xff] }
 0x458   :  { %v3812_v30 = vmul.f32 %v5547_v23, %v6830_v35  ;;  %v8866_v35 = vld [vmem:[#allocation25_spill] sm:$0xff]  ;;  %v8879_v23 = vld [vmem:[#allocation38_spill] sm:$0xff] }
 0x45a   :  { %v7351_v26 = vadd.f32 %v3813_v28, %v3812_v30  ;;  %v5549_v24 = vpop.eup %5548  ;;  %v8881_v28 = vld [vmem:[#allocation40_spill] sm:$0xff]  ;;  %v8882_v30 = vld [vmem:[#allocation41_spill] sm:$0xff] }
 0x45c   :  { %5550 = vtanh.f32 %v7351_v26 }
 0x469   :  { %v5551_v31 = vpop.eup %5550 }
 0x46a   :  { %v3816_v63 = vmul.f32 %v5551_v31, %v5549_v24  ;;  %v8883_v24 = vld [vmem:[#allocation42_spill] sm:$0xff]  ;;  %v8884_v31 = vld [vmem:[#allocation43_spill] sm:$0xff] }
 0x46c   :  { %v3817_v32 = vpack.c.bf16 %v3816_v63, %v3816_v63  ;;  %v8885_v63 = vld [vmem:[#allocation44_spill] sm:$0xff] }
 0x46e   :  { %3852 = vmatmul.mubr.bf16.vlgmr.msra.gmra.mxu0 %v3817_v32  ;;  %3893 = vmatmul.mubr.bf16.vlgmr.msra.gmra.mxu1 %v3817_v32 }
 0x46f   :  { %3933 = vmatpush1.bf16.msra.mxu0 %v6645_v51  ;;  %3974 = vmatpush1.bf16.msra.mxu1 %v6651_v0  ;;  %v8853_v51 = vld [vmem:[#allocation14_spill] sm:$0xff]  ;;  %v8854_v0 = vld [vmem:[#allocation15_spill] sm:$0xff] }
 0x470   :  { %3934 = vmatprep.subr.bf16.mxu0 %v6657_v60  ;;  %3975 = vmatprep.subr.bf16.mxu1 %v6663_v55  ;;  %v8855_v60 = vld [vmem:[#allocation16_spill] sm:$0xff]  ;;  %v8856_v55 = vld [vmem:[#allocation6_spill] sm:$0xff] }
 0x471   :  { %3964 = vmatprep.mubr.bf16.mxu0 %v8695_v38  ;;  %4005 = vmatprep.mubr.bf16.mxu1 %v8695_v38 }
 0x473   :  { %3935 = vmatpush1.bf16.msra.mxu0 %v6671_v53  ;;  %3976 = vmatpush1.bf16.msra.mxu1 %v6677_v56  ;;  %v8857_v53 = vld [vmem:[#allocation7_spill] sm:$0xff]  ;;  %v8858_v56 = vld [vmem:[#allocation17_spill] sm:$0xff] }
 0x474   :  { %3936 = vmatprep.subr.bf16.mxu0 %v6683_v54  ;;  %3977 = vmatprep.subr.bf16.mxu1 %v6689_v61  ;;  %v8859_v54 = vld [vmem:[#allocation18_spill] sm:$0xff]  ;;  %v8860_v61 = vld [vmem:[#allocation19_spill] sm:$0xff] }
 0x477   :  { %3937 = vmatpush1.bf16.msra.mxu0 %v6695_v62  ;;  %3978 = vmatpush1.bf16.msra.mxu1 %v6701_v13  ;;  %v8861_v62 = vld [vmem:[#allocation20_spill] sm:$0xff]  ;;  %v8862_v13 = vld [vmem:[#allocation21_spill] sm:$0xff] }
 0x478   :  { %3938 = vmatprep.subr.bf16.mxu0 %v6707_v6  ;;  %3979 = vmatprep.subr.bf16.mxu1 %v6849_v48  ;;  %v8863_v6 = vld [vmem:[#allocation22_spill] sm:$0xff] }
 0x47b   :  { %3939 = vmatpush1.bf16.msra.mxu0 %v6714_v50  ;;  %3980 = vmatpush1.bf16.msra.mxu1 %v6856_v41  ;;  %v8864_v50 = vld [vmem:[#allocation23_spill] sm:$0xff] }
 0x47c   :  { %3940 = vmatprep.subr.bf16.mxu0 %v6721_v52  ;;  %3981 = vmatprep.subr.bf16.mxu1 %v6863_v42  ;;  %v8865_v52 = vld [vmem:[#allocation24_spill] sm:$0xff] }
 0x47f   :  { %3941 = vmatpush1.bf16.msra.mxu0 %v6869_v43  ;;  %3982 = vmatpush1.bf16.msra.mxu1 %v6875_v44 }
 0x480   :  { %3942 = vmatprep.subr.bf16.mxu0 %v6881_v45  ;;  %3983 = vmatprep.subr.bf16.mxu1 %v6887_v46 }
 0x483   :  { %3943 = vmatpush1.bf16.msra.mxu0 %v6893_v47  ;;  %3984 = vmatpush1.bf16.msra.mxu1 %v6899_v2 }
 0x484   :  { %3944 = vmatprep.subr.bf16.mxu0 %v6905_v3  ;;  %3985 = vmatprep.subr.bf16.mxu1 %v6911_v4 }
 0x487   :  { %3945 = vmatpush1.bf16.msra.mxu0 %v6917_v5  ;;  %3986 = vmatpush1.bf16.msra.mxu1 %v6923_v7 }
 0x488   :  { %3946 = vmatprep.subr.bf16.mxu0 %v6929_v8  ;;  %3987 = vmatprep.subr.bf16.mxu1 %v6935_v9 }
 0x48b   :  { %3947 = vmatpush1.bf16.msra.mxu0 %v6941_v10  ;;  %3988 = vmatpush1.bf16.msra.mxu1 %v6947_v11 }
 0x48c   :  { %4044 = vmatprep.subr.bf16.mxu0 %v6953_v57  ;;  %4085 = vmatprep.subr.bf16.mxu1 %v6959_v1 }
 0x48e   :  { %3965 = vmatmul.mubr.bf16.vlgmr.msra.gmra.mxu0 %v3817_v32  ;;  %4006 = vmatmul.mubr.bf16.vlgmr.msra.gmra.mxu1 %v3817_v32  ;;  %v8886_v32 = vld [vmem:[#allocation45_spill] sm:$0xff] }
 0x48f   :  { %4045 = vmatpush1.bf16.msra.mxu0 %v6965_v59  ;;  %4086 = vmatpush1.bf16.msra.mxu1 %v6971_v14 }
 0x490   :  { %4046 = vmatprep.subr.bf16.mxu0 %v6977_v16  ;;  %4087 = vmatprep.subr.bf16.mxu1 %v6983_v17 }
 0x493   :  { %4047 = vmatpush1.bf16.msra.mxu0 %v6989_v12  ;;  %4088 = vmatpush1.bf16.msra.mxu1 %v6995_v19 }
 0x494   :  { %4048 = vmatprep.subr.bf16.mxu0 %v7001_v20  ;;  %4089 = vmatprep.subr.bf16.mxu1 %v7007_v21 }
 0x497   :  { %4049 = vmatpush1.bf16.msra.mxu0 %v8853_v51  ;;  %4090 = vmatpush1.bf16.msra.mxu1 %v8854_v0 }
 0x498   :  { %4050 = vmatprep.subr.bf16.mxu0 %v8855_v60  ;;  %4091 = vmatprep.subr.bf16.mxu1 %v8856_v55 }
 0x49b   :  { %4051 = vmatpush1.bf16.msra.mxu0 %v8857_v53  ;;  %4092 = vmatpush1.bf16.msra.mxu1 %v8858_v56 }
 0x49c   :  { %4052 = vmatprep.subr.bf16.mxu0 %v8859_v54  ;;  %4093 = vmatprep.subr.bf16.mxu1 %v8860_v61 }
 0x49f   :  { %4053 = vmatpush1.bf16.msra.mxu0 %v8861_v62  ;;  %4094 = vmatpush1.bf16.msra.mxu1 %v8862_v13 }
 0x4a0   :  { %4054 = vmatprep.subr.bf16.mxu0 %v8863_v6  ;;  %4095 = vmatprep.subr.bf16.mxu1 %v8864_v50 }
 0x4a3   :  { %4055 = vmatpush1.bf16.msra.mxu0 %v8865_v52  ;;  %4096 = vmatpush1.bf16.msra.mxu1 %v8866_v35 }
 0x4a4   :  { %4056 = vmatprep.subr.bf16.mxu0 %v8867_v33  ;;  %4097 = vmatprep.subr.bf16.mxu1 %v8868_v58  ;;  %v8912_v58 = vld [vmem:[#allocation11_spill] sm:$0xff] }
 0x4a7   :  { %4057 = vmatpush1.bf16.msra.mxu0 %v8869_v15  ;;  %4098 = vmatpush1.bf16.msra.mxu1 %v8870_v37 }
 0x4a8   :  { %4058 = vmatprep.subr.bf16.mxu0 %v8871_v49  ;;  %4099 = vmatprep.subr.bf16.mxu1 %v8872_v39 }
 0x4ab   :  { %4059 = vmatpush1.bf16.msra.mxu0 %v8873_v22  ;;  %4100 = vmatpush1.bf16.msra.mxu1 %v8874_v18 }
 0x4ac   :  { %4060 = vmatprep.subr.bf16.mxu0 %v8875_v25  ;;  %4101 = vmatprep.subr.bf16.mxu1 %v8876_v29  ;;  %v8887_v29 = vld [vmem:[#allocation46_spill] sm:$0xff]  ;;  %v8909_v25 = vld [vmem:[#allocation8_spill] sm:$0xff] }
 0x4af   :  { %4061 = vmatpush2.bf16.msra.mxu0 %v8877_v40  ;;  %4102 = vmatpush2.bf16.msra.mxu1 %v8878_v36  ;;  %v8888_v40 = vld [vmem:[#allocation47_spill] sm:$0xff]  ;;  %v8889_v36 = vld [vmem:[#allocation48_spill] sm:$0xff] }
 0x4b0   :  { %4062 = vmatprep.subr.bf16.mxu0 %v8879_v23  ;;  %4103 = vmatprep.subr.bf16.mxu1 %v8880_v34  ;;  %v8890_v23 = vld [vmem:[#allocation49_spill] sm:$0xff]  ;;  %v8891_v34 = vld [vmem:[#allocation50_spill] sm:$0xff] }
 0x4b3   :  { %4063 = vmatpush2.bf16.msra.mxu0 %v8881_v28  ;;  %4104 = vmatpush2.bf16.msra.mxu1 %v8882_v30  ;;  %v8892_v28 = vld [vmem:[#allocation51_spill] sm:$0xff]  ;;  %v8893_v30 = vld [vmem:[#allocation52_spill] sm:$0xff] }
 0x4b4   :  { %4064 = vmatprep.subr.bf16.mxu0 %v8883_v24  ;;  %4105 = vmatprep.subr.bf16.mxu1 %v8884_v31  ;;  %v8894_v24 = vld [vmem:[#allocation53_spill] sm:$0xff]  ;;  %v8895_v31 = vld [vmem:[#allocation54_spill] sm:$0xff] }
 0x4b7   :  { %4065 = vmatpush2.bf16.msra.mxu0 %v8885_v63  ;;  %4106 = vmatpush2.bf16.msra.mxu1 %v8886_v32  ;;  %v8896_v63 = vld [vmem:[#allocation55_spill] sm:$0xff]  ;;  %v8897_v32 = vld [vmem:[#allocation56_spill] sm:$0xff] }
 0x4b8   :  { %4066 = vmatprep.subr.bf16.mxu0 %v8887_v29  ;;  %4107 = vmatprep.subr.bf16.mxu1 %v8888_v40  ;;  %v8898_v29 = vld [vmem:[#allocation57_spill] sm:$0xff]  ;;  %v8899_v40 = vld [vmem:[#allocation58_spill] sm:$0xff] }
 0x4bb   :  { %4067 = vmatpush2.bf16.msra.mxu0 %v8889_v36  ;;  %4108 = vmatpush2.bf16.msra.mxu1 %v8890_v23  ;;  %v8900_v36 = vld [vmem:[#allocation59_spill] sm:$0xff]  ;;  %v8901_v23 = vld [vmem:[#allocation60_spill] sm:$0xff] }
 0x4bc   :  { %4068 = vmatprep.subr.bf16.mxu0 %v8891_v34  ;;  %4109 = vmatprep.subr.bf16.mxu1 %v8892_v28  ;;  %v8902_v34 = vld [vmem:[#allocation61_spill] sm:$0xff]  ;;  %v8903_v28 = vld [vmem:[#allocation62_spill] sm:$0xff] }
 0x4bf   :  { %4069 = vmatpush2.bf16.msra.mxu0 %v8893_v30  ;;  %4110 = vmatpush2.bf16.msra.mxu1 %v8894_v24  ;;  %v8904_v30 = vld [vmem:[#allocation63_spill] sm:$0xff]  ;;  %v8905_v24 = vld [vmem:[#allocation64_spill] sm:$0xff] }
 0x4c0   :  { %4070 = vmatprep.subr.bf16.mxu0 %v8895_v31  ;;  %4111 = vmatprep.subr.bf16.mxu1 %v8896_v63  ;;  %v8906_v31 = vld [vmem:[#allocation65_spill] sm:$0xff]  ;;  %v8907_v63 = vld [vmem:[#allocation12_spill] sm:$0xff] }
 0x4c3   :  { %4071 = vmatpush2.bf16.msra.mxu0 %v8897_v32  ;;  %4112 = vmatpush2.bf16.msra.mxu1 %v8898_v29  ;;  %v8908_v32 = vld [vmem:[#allocation13_spill] sm:$0xff] }
 0x4c4   :  { %4072 = vmatprep.subr.bf16.mxu0 %v8899_v40  ;;  %4113 = vmatprep.subr.bf16.mxu1 %v8900_v36 }
 0x4c7   :  { %4073 = vmatpush2.bf16.msra.mxu0 %v8901_v23  ;;  %4114 = vmatpush2.bf16.msra.mxu1 %v8902_v34  ;;  %v8910_v34 = vld [vmem:[#allocation9_spill] sm:$0xff] }
 0x4c8   :  { %4074 = vmatprep.subr.bf16.mxu0 %v8903_v28  ;;  %4115 = vmatprep.subr.bf16.mxu1 %v8904_v30 }
 0x4cb   :  { %4075 = vmatpush2.bf16.msra.mxu0 %v8905_v24  ;;  %4116 = vmatpush2.bf16.msra.mxu1 %v8906_v31  ;;  %v8911_v31 = vld [vmem:[#allocation10_spill] sm:$0xff] }
 0x4cc   :  { %4157 = vmatprep.subr.bf16.mxu0 %v8907_v63  ;;  %4198 = vmatprep.subr.bf16.mxu1 %v8908_v32 }
 0x52e   :  { %v3853_v29 = vpop.f32.mrf.mxu0  ;;  %v3894_v40 = vpop.f32.mrf.mxu1 }
 0x52f   :  { %v3854_v36 = vadd.f32 %v3853_v29, %v8909_v25  ;;  %v3895_v33 = vadd.f32 %v3894_v40, %v8912_v58 }
 0x530   :  { %v3855_v18 = vpop.f32.mrf.mxu0  ;;  %v3896_v23 = vpop.f32.mrf.mxu1 }
 0x531   :  { %v5204_v22 = vmul.f32 -1.442695, %v3854_v36  ;;  %v3856_v39 = vadd.f32 %v3855_v18, %v8910_v34  ;;  %v3897_v63 = vadd.f32 %v3896_v23, %v8911_v31 }
 0x532   :  { %v3857_v28 = vpop.f32.mrf.mxu0  ;;  %v3898_v49 = vpop.f32.mrf.mxu1 }
 0x533   :  { %5552 = vpow2.f32 %v5204_v22  ;;  %v5205_v30 = vmul.f32 -1.442695, %v3856_v39  ;;  %v5206_v15 = vmul.f32 -1.442695, %v3897_v63  ;;  %v5207_v49 = vld [vmem:[%s8354_s0 + $0x40] sm:$0xff] }
 0x534   :  { %v3858_v24 = vpop.f32.mrf.mxu0  ;;  %v3899_v37 = vpop.f32.mrf.mxu1  ;;  %v3928_v39 = vunpack.c.l.bf16 %v5207_v49 }
 0x535   :  { %5554 = vpow2.f32 %v5205_v30  ;;  %v3929_v37 = vunpack.c.h.bf16 %v5207_v49 }
 0x536   :  { %5556 = vpow2.f32 %v5206_v15 }
 0x540   :  { %v5553_v32 = vpop.eup %5552 }
 0x541   :  { %v3904_v35 = vadd.f32 1.0, %v5553_v32 }
 0x542   :  { %v5555_v29 = vpop.eup %5554 }
 0x543   :  { %5558 = vrcp.f32 %v3904_v35  ;;  %v3910_v36 = vadd.f32 1.0, %v5555_v29  ;;  %v5557_v23 = vpop.eup %5556 }
 0x544   :  { %5560 = vtanh.f32 %v3895_v33  ;;  %v3917_v29 = vadd.f32 1.0, %v5557_v23 }
 0x545   :  { %5562 = vrcp.f32 %v3910_v36 }
 0x54e   :  { %v3966_v22 = vpop.f32.mrf.mxu0  ;;  %v4007_v18 = vpop.f32.mrf.mxu1 }
 0x54f   :  { %v4014_v28 = vadd.f32 %v3966_v22, %v3928_v39  ;;  %v5208_v39 = vld [vmem:[%s8354_s0 + $0x48] sm:$0xff] }
 0x550   :  { %v5559_v30 = vpop.eup %5558  ;;  %v3968_v24 = vpop.f32.mrf.mxu0 }
 0x551   :  { %v4009_v40 = vpop.f32.mrf.mxu1  ;;  %v5561_v63 = vpop.eup %5560  ;;  %v5209_v32 = vmul.f32 -1.442695, %v4014_v28  ;;  %v4015_v15 = vadd.f32 %v3968_v24, %v3929_v37  ;;  %v3931_v37 = vunpack.c.h.bf16 %v5208_v39  ;;  %v3930_v28 = vunpack.c.l.bf16 %v5208_v39 }
 0x552   :  { %v5563_v35 = vpop.eup %5562  ;;  %v3970_v33 = vpop.f32.mrf.mxu0  ;;  %v3921_v58 = vmul.f32 %v5561_v63, %v5559_v30 }
 0x553   :  { %v4011_v36 = vpop.f32.mrf.mxu1  ;;  %v3920_v31 = vmul.f32 %v5563_v35, %v7347_v27  ;;  %5564 = vpow2.f32 %v5209_v32  ;;  %v5210_v34 = vmul.f32 -1.442695, %v4015_v15  ;;  %v4017_v23 = vadd.f32 %v4009_v40, %v3931_v37 }
 0x554   :  { %v3971_v49 = vpop.f32.mrf.mxu0  ;;  %v4016_v27 = vadd.f32 %v4007_v18, %v3930_v28 }
 0x555   :  { %v4012_v25 = vpop.f32.mrf.mxu1  ;;  %5566 = vpow2.f32 %v5210_v34  ;;  %v7463_v22 = vadd.f32 %v3921_v58, %v3920_v31  ;;  %v5211_v30 = vmul.f32 -1.442695, %v4017_v23 }
 0x556   :  { %5568 = vrcp.f32 %v3917_v29 }
 0x557   :  { %5570 = vtanh.f32 %v7463_v22 }
 0x558   :  { %5572 = vpow2.f32 %v5211_v30 }
 0x560   :  { %v5565_v24 = vpop.eup %5564 }
 0x561   :  { %v4021_v63 = vadd.f32 1.0, %v5565_v24  ;;  %v7473_v24 = vld [vmem:[%s8352_s1 + $0xe0] ss:$16 sps:$4 sm:$0xff]  }
 0x562   :  { %v5567_v32 = vpop.eup %5566 }
 0x563   :  { %v5569_v25 = vpop.eup %5568  ;;  %5574 = vrcp.f32 %v4021_v63  ;;  %v4027_v15 = vadd.f32 1.0, %v5567_v32  ;;  %v7491_v63 = vld [vmem:[%s8352_s1 + $0xcc] ss:$16 sps:$4 sm:$0xff]   ;;  %v7499_v32 = vld [vmem:[%s8352_s1 + $0xc0] ss:$16 sps:$4 sm:$0xff]  }
 0x564   :  { %v5571_v35 = vpop.eup %5570  ;;  %5576 = vtanh.f32 %v4016_v27  ;;  %v7485_v27 = vld [vmem:[%s8352_s1 + $0xc4] ss:$16 sps:$4 sm:$0xff]  }
 0x565   :  { %5578 = vrcp.f32 %v4027_v15  ;;  %v3924_v58 = vmul.f32 %v5571_v35, %v5569_v25  ;;  %v5573_v31 = vpop.eup %5572  ;;  %v7505_v25 = vld [vmem:[%s8352_s1 + $0xc8] ss:$16 sps:$4 sm:$0xff]   ;;  %v7511_v15 = vld [vmem:[%s8352_s1 + $0xa4] ss:$16 sps:$4 sm:$0xff]   ;;  %v7517_v35 = vld [vmem:[%s8352_s1 + $0xac] ss:$16 sps:$4 sm:$0xff]  }
 0x566   :  { %v4034_v36 = vadd.f32 1.0, %v5573_v31  ;;  %v7535_v31 = vld [vmem:[%s8352_s1 + $0x84] ss:$16 sps:$4 sm:$0xff]  }
 0x567   :  { %v4043_v34 = vpack.c.bf16 %v3924_v58, %v3924_v58  ;;  %v7523_v58 = vld [vmem:[%s8352_s1 + $0xa0] ss:$16 sps:$4 sm:$0xff]  }
 0x568   :  { %5580 = vrcp.f32 %v4034_v36  ;;  %v7634_v36 = vld [vmem:[%s8352_s1 + $0xe4] ss:$16 sps:$4 sm:$0xff]  }
 0x569   :  { %4076 = vmatprep.mubr.bf16.mxu0 %v4043_v34  ;;  %4117 = vmatprep.mubr.bf16.mxu1 %v4043_v34  ;;  %v7529_v34 = vld [vmem:[%s8352_s1 + $0xa8] ss:$16 sps:$4 sm:$0xff]  }
 0x570   :  { %v5575_v29 = vpop.eup %5574 }
 0x571   :  { %v5577_v40 = vpop.eup %5576 }
 0x572   :  { %v5579_v33 = vpop.eup %5578  ;;  %v4038_v49 = vmul.f32 %v5577_v40, %v5575_v29  ;;  %v7542_v29 = vld [vmem:[%s8352_s1 + $0x80] ss:$16 sps:$4 sm:$0xff]   ;;  %v7549_v40 = vld [vmem:[%s8352_s1 + $0x64] ss:$16 sps:$4 sm:$0xff]  }
 0x573   :  { %v4037_v18 = vmul.f32 %v5579_v33, %v7351_v26  ;;  %v7479_v26 = vld [vmem:[%s8352_s1 + $0xe8] ss:$16 sps:$4 sm:$0xff]  }
 0x574   :  { %v8953_v33 = vld [vmem:[#allocation65_spill] sm:$0xff] }
 0x575   :  { %v7467_v39 = vadd.f32 %v4038_v49, %v4037_v18  ;;  %v5581_v37 = vpop.eup %5580  ;;  %v7640_v49 = vld [vmem:[%s8352_s1 + $0xec] ss:$16 sps:$4 sm:$0xff]  }
 0x577   :  { %5582 = vtanh.f32 %v7467_v39 }
 0x584   :  { %v5583_v23 = vpop.eup %5582 }
 0x585   :  { %v4041_v28 = vmul.f32 %v5583_v23, %v5581_v37  ;;  %v8954_v23 = vld [vmem:[#allocation8_spill] sm:$0xff] }
 0x587   :  { %v4042_v30 = vpack.c.bf16 %v4041_v28, %v4041_v28 }
 0x589   :  { %4077 = vmatmul.mubr.bf16.vlgmr.msra.gmra.mxu0 %v4042_v30  ;;  %4118 = vmatmul.mubr.bf16.vlgmr.msra.gmra.mxu1 %v4042_v30 }
 0x58a   :  { %4158 = vmatpush1.bf16.msra.mxu0 %v7473_v24  ;;  %4199 = vmatpush1.bf16.msra.mxu1 %v7479_v26 }
 0x58b   :  { %4159 = vmatprep.subr.bf16.mxu0 %v7485_v27  ;;  %4200 = vmatprep.subr.bf16.mxu1 %v7491_v63 }
 0x58c   :  { %4189 = vmatprep.mubr.bf16.mxu0 %v8695_v38  ;;  %4230 = vmatprep.mubr.bf16.mxu1 %v8695_v38 }
 0x58e   :  { %4160 = vmatpush1.bf16.msra.mxu0 %v7499_v32  ;;  %4201 = vmatpush1.bf16.msra.mxu1 %v7505_v25 }
 0x58f   :  { %4161 = vmatprep.subr.bf16.mxu0 %v7511_v15  ;;  %4202 = vmatprep.subr.bf16.mxu1 %v7517_v35 }
 0x592   :  { %4162 = vmatpush1.bf16.msra.mxu0 %v7523_v58  ;;  %4203 = vmatpush1.bf16.msra.mxu1 %v7529_v34 }
 0x593   :  { %4163 = vmatprep.subr.bf16.mxu0 %v7535_v31  ;;  %4204 = vmatprep.subr.bf16.mxu1 %v6849_v48  ;;  %v8913_v48 = vld [vmem:[#allocation25_spill] sm:$0xff] }
 0x596   :  { %4164 = vmatpush1.bf16.msra.mxu0 %v7542_v29  ;;  %4205 = vmatpush1.bf16.msra.mxu1 %v6856_v41  ;;  %v8914_v41 = vld [vmem:[#allocation26_spill] sm:$0xff] }
 0x597   :  { %4165 = vmatprep.subr.bf16.mxu0 %v7549_v40  ;;  %4206 = vmatprep.subr.bf16.mxu1 %v6863_v42  ;;  %v8915_v42 = vld [vmem:[#allocation27_spill] sm:$0xff] }
 0x59a   :  { %4166 = vmatpush1.bf16.msra.mxu0 %v6869_v43  ;;  %4207 = vmatpush1.bf16.msra.mxu1 %v6875_v44  ;;  %v8916_v43 = vld [vmem:[#allocation28_spill] sm:$0xff]  ;;  %v8917_v44 = vld [vmem:[#allocation29_spill] sm:$0xff] }
 0x59b   :  { %4167 = vmatprep.subr.bf16.mxu0 %v6881_v45  ;;  %4208 = vmatprep.subr.bf16.mxu1 %v6887_v46  ;;  %v8918_v45 = vld [vmem:[#allocation30_spill] sm:$0xff]  ;;  %v8919_v46 = vld [vmem:[#allocation31_spill] sm:$0xff] }
 0x59e   :  { %4168 = vmatpush1.bf16.msra.mxu0 %v6893_v47  ;;  %4209 = vmatpush1.bf16.msra.mxu1 %v6899_v2  ;;  %v8920_v47 = vld [vmem:[#allocation32_spill] sm:$0xff]  ;;  %v8921_v2 = vld [vmem:[#allocation33_spill] sm:$0xff] }
 0x59f   :  { %4169 = vmatprep.subr.bf16.mxu0 %v6905_v3  ;;  %4210 = vmatprep.subr.bf16.mxu1 %v6911_v4  ;;  %v8922_v3 = vld [vmem:[#allocation34_spill] sm:$0xff]  ;;  %v8923_v4 = vld [vmem:[#allocation35_spill] sm:$0xff] }
 0x5a2   :  { %4170 = vmatpush1.bf16.msra.mxu0 %v6917_v5  ;;  %4211 = vmatpush1.bf16.msra.mxu1 %v6923_v7  ;;  %v8924_v5 = vld [vmem:[#allocation36_spill] sm:$0xff]  ;;  %v8925_v7 = vld [vmem:[#allocation37_spill] sm:$0xff] }
 0x5a3   :  { %4171 = vmatprep.subr.bf16.mxu0 %v6929_v8  ;;  %4212 = vmatprep.subr.bf16.mxu1 %v6935_v9  ;;  %v8926_v8 = vld [vmem:[#allocation38_spill] sm:$0xff]  ;;  %v8927_v9 = vld [vmem:[#allocation39_spill] sm:$0xff] }
 0x5a6   :  { %4172 = vmatpush1.bf16.msra.mxu0 %v6941_v10  ;;  %4213 = vmatpush1.bf16.msra.mxu1 %v6947_v11  ;;  %v8928_v10 = vld [vmem:[#allocation40_spill] sm:$0xff]  ;;  %v8929_v11 = vld [vmem:[#allocation41_spill] sm:$0xff] }
 0x5a7   :  { %4269 = vmatprep.subr.bf16.mxu0 %v6953_v57  ;;  %4310 = vmatprep.subr.bf16.mxu1 %v6959_v1  ;;  %v8930_v57 = vld [vmem:[#allocation42_spill] sm:$0xff]  ;;  %v8931_v1 = vld [vmem:[#allocation43_spill] sm:$0xff] }
 0x5a9   :  { %4190 = vmatmul.mubr.bf16.vlgmr.msra.gmra.mxu0 %v4042_v30  ;;  %4231 = vmatmul.mubr.bf16.vlgmr.msra.gmra.mxu1 %v4042_v30 }
 0x5aa   :  { %4270 = vmatpush1.bf16.msra.mxu0 %v6965_v59  ;;  %4311 = vmatpush1.bf16.msra.mxu1 %v6971_v14  ;;  %v8932_v59 = vld [vmem:[#allocation44_spill] sm:$0xff]  ;;  %v8933_v14 = vld [vmem:[#allocation45_spill] sm:$0xff] }
 0x5ab   :  { %4271 = vmatprep.subr.bf16.mxu0 %v6977_v16  ;;  %4312 = vmatprep.subr.bf16.mxu1 %v6983_v17  ;;  %v8934_v16 = vld [vmem:[#allocation46_spill] sm:$0xff]  ;;  %v8935_v17 = vld [vmem:[#allocation47_spill] sm:$0xff] }
 0x5ae   :  { %4272 = vmatpush1.bf16.msra.mxu0 %v6989_v12  ;;  %4313 = vmatpush1.bf16.msra.mxu1 %v6995_v19  ;;  %v8936_v12 = vld [vmem:[#allocation48_spill] sm:$0xff]  ;;  %v8937_v19 = vld [vmem:[#allocation49_spill] sm:$0xff] }
 0x5af   :  { %4273 = vmatprep.subr.bf16.mxu0 %v7001_v20  ;;  %4314 = vmatprep.subr.bf16.mxu1 %v7007_v21  ;;  %v8938_v20 = vld [vmem:[#allocation50_spill] sm:$0xff]  ;;  %v8939_v21 = vld [vmem:[#allocation51_spill] sm:$0xff] }
 0x5b2   :  { %4274 = vmatpush1.bf16.msra.mxu0 %v8853_v51  ;;  %4315 = vmatpush1.bf16.msra.mxu1 %v8854_v0  ;;  %v8940_v51 = vld [vmem:[#allocation52_spill] sm:$0xff]  ;;  %v8941_v0 = vld [vmem:[#allocation53_spill] sm:$0xff] }
 0x5b3   :  { %4275 = vmatprep.subr.bf16.mxu0 %v8855_v60  ;;  %4316 = vmatprep.subr.bf16.mxu1 %v8856_v55  ;;  %v8942_v60 = vld [vmem:[#allocation54_spill] sm:$0xff]  ;;  %v8943_v55 = vld [vmem:[#allocation55_spill] sm:$0xff] }
 0x5b6   :  { %4276 = vmatpush1.bf16.msra.mxu0 %v8857_v53  ;;  %4317 = vmatpush1.bf16.msra.mxu1 %v8858_v56  ;;  %v8944_v53 = vld [vmem:[#allocation56_spill] sm:$0xff]  ;;  %v8945_v56 = vld [vmem:[#allocation57_spill] sm:$0xff] }
 0x5b7   :  { %4277 = vmatprep.subr.bf16.mxu0 %v8859_v54  ;;  %4318 = vmatprep.subr.bf16.mxu1 %v8860_v61  ;;  %v8946_v54 = vld [vmem:[#allocation58_spill] sm:$0xff]  ;;  %v8947_v61 = vld [vmem:[#allocation59_spill] sm:$0xff] }
 0x5ba   :  { %4278 = vmatpush1.bf16.msra.mxu0 %v8861_v62  ;;  %4319 = vmatpush1.bf16.msra.mxu1 %v8862_v13  ;;  %v8948_v62 = vld [vmem:[#allocation60_spill] sm:$0xff]  ;;  %v8949_v13 = vld [vmem:[#allocation61_spill] sm:$0xff] }
 0x5bb   :  { %4279 = vmatprep.subr.bf16.mxu0 %v8863_v6  ;;  %4320 = vmatprep.subr.bf16.mxu1 %v8864_v50  ;;  %v8950_v6 = vld [vmem:[#allocation62_spill] sm:$0xff]  ;;  %v8951_v50 = vld [vmem:[#allocation63_spill] sm:$0xff] }
 0x5be   :  { %4280 = vmatpush1.bf16.msra.mxu0 %v8865_v52  ;;  %4321 = vmatpush1.bf16.msra.mxu1 %v8913_v48  ;;  %v8952_v52 = vld [vmem:[#allocation64_spill] sm:$0xff] }
 0x5bf   :  { %4281 = vmatprep.subr.bf16.mxu0 %v8914_v41  ;;  %4322 = vmatprep.subr.bf16.mxu1 %v8915_v42  ;;  %v8955_v42 = vld [vmem:[#allocation9_spill] sm:$0xff] }
 0x5c2   :  { %4282 = vmatpush1.bf16.msra.mxu0 %v8916_v43  ;;  %4323 = vmatpush1.bf16.msra.mxu1 %v8917_v44 }
 0x5c3   :  { %4283 = vmatprep.subr.bf16.mxu0 %v8918_v45  ;;  %4324 = vmatprep.subr.bf16.mxu1 %v8919_v46 }
 0x5c6   :  { %4284 = vmatpush1.bf16.msra.mxu0 %v8920_v47  ;;  %4325 = vmatpush1.bf16.msra.mxu1 %v8921_v2 }
 0x5c7   :  { %4285 = vmatprep.subr.bf16.mxu0 %v8922_v3  ;;  %4326 = vmatprep.subr.bf16.mxu1 %v8923_v4  ;;  %v8956_v3 = vld [vmem:[#allocation10_spill] sm:$0xff] }
 0x5ca   :  { %4286 = vmatpush2.bf16.msra.mxu0 %v8924_v5  ;;  %4327 = vmatpush2.bf16.msra.mxu1 %v8925_v7 }
 0x5cb   :  { %4287 = vmatprep.subr.bf16.mxu0 %v8926_v8  ;;  %4328 = vmatprep.subr.bf16.mxu1 %v8927_v9  ;;  %v8957_v8 = vld [vmem:[#allocation11_spill] sm:$0xff] }
 0x5ce   :  { %4288 = vmatpush2.bf16.msra.mxu0 %v8928_v10  ;;  %4329 = vmatpush2.bf16.msra.mxu1 %v8929_v11 }
 0x5cf   :  { %4289 = vmatprep.subr.bf16.mxu0 %v8930_v57  ;;  %4330 = vmatprep.subr.bf16.mxu1 %v8931_v1  ;;  %v5215_v1 = vld [vmem:[%s8354_s0 + $0x50] sm:$0xff] }
 0x5d2   :  { %4290 = vmatpush2.bf16.msra.mxu0 %v8932_v59  ;;  %4331 = vmatpush2.bf16.msra.mxu1 %v8933_v14  ;;  %v4153_v59 = vunpack.c.l.bf16 %v5215_v1  ;;  %v4154_v14 = vunpack.c.h.bf16 %v5215_v1 }
 0x5d3   :  { %4291 = vmatprep.subr.bf16.mxu0 %v8934_v16  ;;  %4332 = vmatprep.subr.bf16.mxu1 %v8935_v17 }
 0x5d6   :  { %4292 = vmatpush2.bf16.msra.mxu0 %v8936_v12  ;;  %4333 = vmatpush2.bf16.msra.mxu1 %v8937_v19 }
 0x5d7   :  { %4293 = vmatprep.subr.bf16.mxu0 %v8938_v20  ;;  %4334 = vmatprep.subr.bf16.mxu1 %v8939_v21 }
 0x5da   :  { %4294 = vmatpush2.bf16.msra.mxu0 %v8940_v51  ;;  %4335 = vmatpush2.bf16.msra.mxu1 %v8941_v0 }
 0x5db   :  { %4295 = vmatprep.subr.bf16.mxu0 %v8942_v60  ;;  %4336 = vmatprep.subr.bf16.mxu1 %v8943_v55 }
 0x5de   :  { %4296 = vmatpush2.bf16.msra.mxu0 %v8944_v53  ;;  %4337 = vmatpush2.bf16.msra.mxu1 %v8945_v56 }
 0x5df   :  { %4297 = vmatprep.subr.bf16.mxu0 %v8946_v54  ;;  %4338 = vmatprep.subr.bf16.mxu1 %v8947_v61 }
 0x5e2   :  { %4298 = vmatpush2.bf16.msra.mxu0 %v8948_v62  ;;  %4339 = vmatpush2.bf16.msra.mxu1 %v8949_v13 }
 0x5e3   :  { %4299 = vmatprep.subr.bf16.mxu0 %v8950_v6  ;;  %4340 = vmatprep.subr.bf16.mxu1 %v8951_v50 }
 0x5e6   :  { %4300 = vmatpush2.bf16.msra.mxu0 %v8952_v52  ;;  %4341 = vmatpush2.bf16.msra.mxu1 %v8953_v33  ;;  %v5216_v33 = vld [vmem:[%s8354_s0 + $0x58] sm:$0xff] }
 0x5e7   :  { %4382 = vmatprep.subr.bf16.mxu0 %v7634_v36  ;;  %4423 = vmatprep.subr.bf16.mxu1 %v7640_v49 }
 0x649   :  { %v4078_v18 = vpop.f32.mrf.mxu0  ;;  %v4119_v37 = vpop.f32.mrf.mxu1 }
 0x64a   :  { %v4079_v28 = vadd.f32 %v4078_v18, %v8954_v23  ;;  %v4120_v9 = vadd.f32 %v4119_v37, %v8957_v8  ;;  %v4156_v37 = vunpack.c.h.bf16 %v5216_v33 }
 0x64b   :  { %v4080_v30 = vpop.f32.mrf.mxu0  ;;  %v4121_v48 = vpop.f32.mrf.mxu1 }
 0x64c   :  { %v5212_v41 = vmul.f32 -1.442695, %v4079_v28  ;;  %v4081_v43 = vadd.f32 %v4080_v30, %v8955_v42  ;;  %v4122_v4 = vadd.f32 %v4121_v48, %v8956_v3  ;;  %v4155_v30 = vunpack.c.l.bf16 %v5216_v33  ;;  %v7781_v33 = vld [vmem:[%s8353_s2 + $0xe4] ss:$16 sps:$4 sm:$0xff]  }
 0x64d   :  { %v4082_v44 = vpop.f32.mrf.mxu0  ;;  %v4123_v45 = vpop.f32.mrf.mxu1 }
 0x64e   :  { %5584 = vpow2.f32 %v5212_v41  ;;  %v5213_v46 = vmul.f32 -1.442695, %v4081_v43  ;;  %v5214_v5 = vmul.f32 -1.442695, %v4122_v4 }
 0x64f   :  { %v4083_v47 = vpop.f32.mrf.mxu0  ;;  %v4124_v2 = vpop.f32.mrf.mxu1 }
 0x650   :  { %5586 = vpow2.f32 %v5213_v46 }
 0x651   :  { %5588 = vpow2.f32 %v5214_v5 }
 0x65b   :  { %v5585_v7 = vpop.eup %5584 }
 0x65c   :  { %v4129_v10 = vadd.f32 1.0, %v5585_v7 }
 0x65d   :  { %v5587_v11 = vpop.eup %5586 }
 0x65e   :  { %5590 = vrcp.f32 %v4129_v10  ;;  %v4135_v57 = vadd.f32 1.0, %v5587_v11  ;;  %v5589_v12 = vpop.eup %5588 }
 0x65f   :  { %5592 = vtanh.f32 %v4120_v9  ;;  %v4142_v56 = vadd.f32 1.0, %v5589_v12 }
 0x660   :  { %5594 = vrcp.f32 %v4135_v57 }
 0x669   :  { %v4191_v16 = vpop.f32.mrf.mxu0  ;;  %v4232_v17 = vpop.f32.mrf.mxu1 }
 0x66a   :  { %v4239_v19 = vadd.f32 %v4191_v16, %v4153_v59 }
 0x66b   :  { %v5591_v20 = vpop.eup %5590  ;;  %v4193_v21 = vpop.f32.mrf.mxu0 }
 0x66c   :  { %v4234_v51 = vpop.f32.mrf.mxu1  ;;  %v5593_v0 = vpop.eup %5592  ;;  %v5217_v60 = vmul.f32 -1.442695, %v4239_v19  ;;  %v4240_v55 = vadd.f32 %v4193_v21, %v4154_v14  ;;  %v7684_v19 = vld [vmem:[%s8352_s1 + $0x88] ss:$16 sps:$4 sm:$0xff]   ;;  %v7697_v21 = vld [vmem:[%s8352_s1 + $0x60] ss:$16 sps:$4 sm:$0xff]  }
 0x66d   :  { %v5595_v53 = vpop.eup %5594  ;;  %v4195_v54 = vpop.f32.mrf.mxu0  ;;  %v4146_v62 = vmul.f32 %v5593_v0, %v5591_v20  ;;  %v4242_v28 = vadd.f32 %v4234_v51, %v4156_v37  ;;  %v7691_v20 = vld [vmem:[%s8352_s1 + $0x6c] ss:$16 sps:$4 sm:$0xff]   ;;  %v7703_v51 = vld [vmem:[%s8352_s1 + $0x68] ss:$16 sps:$4 sm:$0xff]   ;;  %v7709_v0 = vld [vmem:[%s8352_s1 + $0x44] ss:$16 sps:$4 sm:$0xff]  }
 0x66e   :  { %v4236_v61 = vpop.f32.mrf.mxu1  ;;  %v4145_v13 = vmul.f32 %v5595_v53, %v7463_v22  ;;  %5596 = vpow2.f32 %v5217_v60  ;;  %v5218_v6 = vmul.f32 -1.442695, %v4240_v55  ;;  %v4241_v22 = vadd.f32 %v4232_v17, %v4155_v30  ;;  %v7715_v60 = vld [vmem:[%s8352_s1 + $0x4c] ss:$16 sps:$4 sm:$0xff]   ;;  %v7721_v55 = vld [vmem:[%s8352_s1 + $0x40] ss:$16 sps:$4 sm:$0xff]  }
 0x66f   :  { %v4196_v50 = vpop.f32.mrf.mxu0  ;;  %v5219_v48 = vmul.f32 -1.442695, %v4242_v28  ;;  %v7727_v53 = vld [vmem:[%s8352_s1 + $0x48] ss:$16 sps:$4 sm:$0xff]   ;;  %v7739_v54 = vld [vmem:[%s8352_s1 + $0x2c] ss:$16 sps:$4 sm:$0xff]  }
 0x670   :  { %v4237_v52 = vpop.f32.mrf.mxu1  ;;  %5598 = vpow2.f32 %v5218_v6  ;;  %v7654_v18 = vadd.f32 %v4146_v62, %v4145_v13  ;;  %v7745_v61 = vld [vmem:[%s8352_s1 + $0x20] ss:$16 sps:$4 sm:$0xff]   ;;  %v7751_v62 = vld [vmem:[%s8352_s1 + $0x28] ss:$16 sps:$4 sm:$0xff]   ;;  %v7757_v13 = vld [vmem:[%s8352_s1 + $0x4] ss:$16 sps:$4 sm:$0xff]  }
 0x671   :  { %5600 = vrcp.f32 %v4142_v56  ;;  %v7733_v56 = vld [vmem:[%s8352_s1 + $0x24] ss:$16 sps:$4 sm:$0xff]   ;;  %v7763_v6 = vld [vmem:[%s8352_s1 + $0xc] ss:$16 sps:$4 sm:$0xff]   ;;  %v7769_v50 = vld [vmem:[%s8352_s1] ss:$16 sps:$4 sm:$0xff]  }
 0x672   :  { %5602 = vtanh.f32 %v7654_v18  ;;  %v7775_v52 = vld [vmem:[%s8352_s1 + $0x8] ss:$16 sps:$4 sm:$0xff]   ;;  %v7787_v37 = vld [vmem:[%s8353_s2 + $0xec] ss:$16 sps:$4 sm:$0xff]   ;;  %v7793_v28 = vld [vmem:[%s8353_s2 + $0xe0] ss:$16 sps:$4 sm:$0xff]  }
 0x673   :  { %5604 = vpow2.f32 %v5219_v48  ;;  %v7799_v30 = vld [vmem:[%s8353_s2 + $0xe8] ss:$16 sps:$4 sm:$0xff]   ;;  %v7805_v48 = vld [vmem:[%s8353_s2 + $0xc4] ss:$16 sps:$4 sm:$0xff]  }
 0x67b   :  { %v5597_v41 = vpop.eup %5596 }
 0x67c   :  { %v4246_v43 = vadd.f32 1.0, %v5597_v41  ;;  %v7811_v41 = vld [vmem:[%s8353_s2 + $0xcc] ss:$16 sps:$4 sm:$0xff]  }
 0x67d   :  { %v5599_v44 = vpop.eup %5598 }
 0x67e   :  { %v5601_v45 = vpop.eup %5600  ;;  %5606 = vrcp.f32 %v4246_v43  ;;  %v4252_v46 = vadd.f32 1.0, %v5599_v44  ;;  %v7823_v43 = vld [vmem:[%s8353_s2 + $0xc8] ss:$16 sps:$4 sm:$0xff]   ;;  %v7829_v44 = vld [vmem:[%s8353_s2 + $0xa4] ss:$16 sps:$4 sm:$0xff]  }
 0x67f   :  { %v5603_v47 = vpop.eup %5602  ;;  %5608 = vtanh.f32 %v4241_v22  ;;  %v7817_v22 = vld [vmem:[%s8353_s2 + $0xc0] ss:$16 sps:$4 sm:$0xff]  }
 0x680   :  { %5610 = vrcp.f32 %v4252_v46  ;;  %v4149_v2 = vmul.f32 %v5603_v47, %v5601_v45  ;;  %v5605_v5 = vpop.eup %5604  ;;  %v7835_v45 = vld [vmem:[%s8353_s2 + $0xac] ss:$16 sps:$4 sm:$0xff]   ;;  %v7841_v46 = vld [vmem:[%s8353_s2 + $0xa0] ss:$16 sps:$4 sm:$0xff]   ;;  %v7847_v47 = vld [vmem:[%s8353_s2 + $0xa8] ss:$16 sps:$4 sm:$0xff]  }
 0x681   :  { %v4259_v11 = vadd.f32 1.0, %v5605_v5  ;;  %8958 = vst [vmem:[#allocation14_spill] sm:$0xff] %v7841_v46  ;;  %8959 = vst [vmem:[#allocation15_spill] sm:$0xff] %v7847_v47  ;;  %v7865_v5 = vld [vmem:[%s8353_s2 + $0x80] ss:$16 sps:$4 sm:$0xff]  }
 0x682   :  { %v4268_v4 = vpack.c.bf16 %v4149_v2, %v4149_v2  ;;  %v7853_v2 = vld [vmem:[%s8353_s2 + $0x84] ss:$16 sps:$4 sm:$0xff]   ;;  %8962 = vst [vmem:[#allocation7_spill] sm:$0xff] %v7865_v5 }
 0x683   :  { %5612 = vrcp.f32 %v4259_v11  ;;  %8960 = vst [vmem:[#allocation16_spill] sm:$0xff] %v7853_v2  ;;  %v7889_v11 = vld [vmem:[%s8353_s2 + $0x60] ss:$16 sps:$4 sm:$0xff]  }
 0x684   :  { %4301 = vmatprep.mubr.bf16.mxu0 %v4268_v4  ;;  %4342 = vmatprep.mubr.bf16.mxu1 %v4268_v4  ;;  %v7859_v4 = vld [vmem:[%s8353_s2 + $0x8c] ss:$16 sps:$4 sm:$0xff]   ;;  %8966 = vst [vmem:[#allocation20_spill] sm:$0xff] %v7889_v11 }
 0x685   :  { %8961 = vst [vmem:[#allocation6_spill] sm:$0xff] %v7859_v4 }
 0x68b   :  { %v5607_v7 = vpop.eup %5606 }
 0x68c   :  { %v5609_v9 = vpop.eup %5608 }
 0x68d   :  { %v5611_v10 = vpop.eup %5610  ;;  %v4263_v57 = vmul.f32 %v5609_v9, %v5607_v7  ;;  %v7871_v7 = vld [vmem:[%s8353_s2 + $0x88] ss:$16 sps:$4 sm:$0xff]   ;;  %v7877_v9 = vld [vmem:[%s8353_s2 + $0x64] ss:$16 sps:$4 sm:$0xff]  }
 0x68e   :  { %v4262_v1 = vmul.f32 %v5611_v10, %v7467_v39  ;;  %v7677_v39 = vld [vmem:[%s8352_s1 + $0x8c] ss:$16 sps:$4 sm:$0xff]   ;;  %8963 = vst [vmem:[#allocation17_spill] sm:$0xff] %v7871_v7  ;;  %8964 = vst [vmem:[#allocation18_spill] sm:$0xff] %v7877_v9 }
 0x68f   :  { %v7883_v10 = vld [vmem:[%s8353_s2 + $0x6c] ss:$16 sps:$4 sm:$0xff]  }
 0x690   :  { %v7658_v59 = vadd.f32 %v4263_v57, %v4262_v1  ;;  %v5613_v14 = vpop.eup %5612  ;;  %8965 = vst [vmem:[#allocation19_spill] sm:$0xff] %v7883_v10  ;;  %v7895_v57 = vld [vmem:[%s8353_s2 + $0x68] ss:$16 sps:$4 sm:$0xff]   ;;  %v7901_v1 = vld [vmem:[%s8353_s2 + $0x44] ss:$16 sps:$4 sm:$0xff]  }
 0x691   :  { %8967 = vst [vmem:[#allocation21_spill] sm:$0xff] %v7895_v57  ;;  %8968 = vst [vmem:[#allocation22_spill] sm:$0xff] %v7901_v1 }
 0x692   :  { %5614 = vtanh.f32 %v7658_v59 }
 0x69f   :  { %v5615_v16 = vpop.eup %5614 }
 0x6a0   :  { %v4266_v17 = vmul.f32 %v5615_v16, %v5613_v14  ;;  %v7907_v14 = vld [vmem:[%s8353_s2 + $0x4c] ss:$16 sps:$4 sm:$0xff]   ;;  %v7913_v16 = vld [vmem:[%s8353_s2 + $0x40] ss:$16 sps:$4 sm:$0xff]  }
 0x6a1   :  { %8969 = vst [vmem:[#allocation23_spill] sm:$0xff] %v7907_v14  ;;  %8970 = vst [vmem:[#allocation24_spill] sm:$0xff] %v7913_v16 }
 0x6a2   :  { %v4267_v12 = vpack.c.bf16 %v4266_v17, %v4266_v17  ;;  %v7919_v17 = vld [vmem:[%s8353_s2 + $0x48] ss:$16 sps:$4 sm:$0xff]  }
 0x6a3   :  { %8971 = vst [vmem:[#allocation12_spill] sm:$0xff] %v7919_v17 }
 0x6a4   :  { %4302 = vmatmul.mubr.bf16.vlgmr.msra.gmra.mxu0 %v4267_v12  ;;  %4343 = vmatmul.mubr.bf16.vlgmr.msra.gmra.mxu1 %v4267_v12 }
 0x6a5   :  { %4383 = vmatpush1.bf16.msra.mxu0 %v7473_v24  ;;  %4424 = vmatpush1.bf16.msra.mxu1 %v7479_v26 }
 0x6a6   :  { %4384 = vmatprep.subr.bf16.mxu0 %v7485_v27  ;;  %4425 = vmatprep.subr.bf16.mxu1 %v7491_v63 }
 0x6a7   :  { %4414 = vmatprep.mubr.bf16.mxu0 %v8695_v38  ;;  %4455 = vmatprep.mubr.bf16.mxu1 %v8695_v38 }
 0x6a9   :  { %4385 = vmatpush1.bf16.msra.mxu0 %v7499_v32  ;;  %4426 = vmatpush1.bf16.msra.mxu1 %v7505_v25 }
 0x6aa   :  { %4386 = vmatprep.subr.bf16.mxu0 %v7511_v15  ;;  %4427 = vmatprep.subr.bf16.mxu1 %v7517_v35 }
 0x6ad   :  { %4387 = vmatpush1.bf16.msra.mxu0 %v7523_v58  ;;  %4428 = vmatpush1.bf16.msra.mxu1 %v7529_v34 }
 0x6ae   :  { %4388 = vmatprep.subr.bf16.mxu0 %v7535_v31  ;;  %4429 = vmatprep.subr.bf16.mxu1 %v7677_v39 }
 0x6b1   :  { %4389 = vmatpush1.bf16.msra.mxu0 %v7542_v29  ;;  %4430 = vmatpush1.bf16.msra.mxu1 %v7684_v19 }
 0x6b2   :  { %4390 = vmatprep.subr.bf16.mxu0 %v7549_v40  ;;  %4431 = vmatprep.subr.bf16.mxu1 %v7691_v20 }
 0x6b5   :  { %4391 = vmatpush1.bf16.msra.mxu0 %v7697_v21  ;;  %4432 = vmatpush1.bf16.msra.mxu1 %v7703_v51 }
 0x6b6   :  { %4392 = vmatprep.subr.bf16.mxu0 %v7709_v0  ;;  %4433 = vmatprep.subr.bf16.mxu1 %v7715_v60 }
 0x6b9   :  { %4393 = vmatpush1.bf16.msra.mxu0 %v7721_v55  ;;  %4434 = vmatpush1.bf16.msra.mxu1 %v7727_v53 }
 0x6ba   :  { %4394 = vmatprep.subr.bf16.mxu0 %v7733_v56  ;;  %4435 = vmatprep.subr.bf16.mxu1 %v7739_v54 }
 0x6bd   :  { %4395 = vmatpush1.bf16.msra.mxu0 %v7745_v61  ;;  %4436 = vmatpush1.bf16.msra.mxu1 %v7751_v62 }
 0x6be   :  { %4396 = vmatprep.subr.bf16.mxu0 %v7757_v13  ;;  %4437 = vmatprep.subr.bf16.mxu1 %v7763_v6 }
 0x6c1   :  { %4397 = vmatpush1.bf16.msra.mxu0 %v7769_v50  ;;  %4438 = vmatpush1.bf16.msra.mxu1 %v7775_v52 }
 0x6c2   :  { %4494 = vmatprep.subr.bf16.mxu0 %v7781_v33  ;;  %4535 = vmatprep.subr.bf16.mxu1 %v7787_v37 }
 0x6c4   :  { %4415 = vmatmul.mubr.bf16.vlgmr.msra.gmra.mxu0 %v4267_v12  ;;  %4456 = vmatmul.mubr.bf16.vlgmr.msra.gmra.mxu1 %v4267_v12  ;;  %v7925_v12 = vld [vmem:[%s8353_s2 + $0x24] ss:$16 sps:$4 sm:$0xff]  }
 0x6c5   :  { %4495 = vmatpush1.bf16.msra.mxu0 %v7793_v28  ;;  %4536 = vmatpush1.bf16.msra.mxu1 %v7799_v30  ;;  %8972 = vst [vmem:[#allocation13_spill] sm:$0xff] %v7925_v12 }
 0x6c6   :  { %4496 = vmatprep.subr.bf16.mxu0 %v7805_v48  ;;  %4537 = vmatprep.subr.bf16.mxu1 %v7811_v41 }
 0x6c9   :  { %4497 = vmatpush1.bf16.msra.mxu0 %v7817_v22  ;;  %4538 = vmatpush1.bf16.msra.mxu1 %v7823_v43 }
 0x6ca   :  { %4498 = vmatprep.subr.bf16.mxu0 %v7829_v44  ;;  %4539 = vmatprep.subr.bf16.mxu1 %v7835_v45 }
 0x6cd   :  { %4499 = vmatpush1.bf16.msra.mxu0 %v7841_v46  ;;  %4540 = vmatpush1.bf16.msra.mxu1 %v7847_v47 }
 0x6ce   :  { %4500 = vmatprep.subr.bf16.mxu0 %v7853_v2  ;;  %4541 = vmatprep.subr.bf16.mxu1 %v7859_v4 }
 0x6d1   :  { %4501 = vmatpush1.bf16.msra.mxu0 %v7865_v5  ;;  %4542 = vmatpush1.bf16.msra.mxu1 %v7871_v7 }
 0x6d2   :  { %4502 = vmatprep.subr.bf16.mxu0 %v7877_v9  ;;  %4543 = vmatprep.subr.bf16.mxu1 %v7883_v10 }
 0x6d5   :  { %4503 = vmatpush1.bf16.msra.mxu0 %v7889_v11  ;;  %4544 = vmatpush1.bf16.msra.mxu1 %v7895_v57 }
 0x6d6   :  { %4504 = vmatprep.subr.bf16.mxu0 %v7901_v1  ;;  %4545 = vmatprep.subr.bf16.mxu1 %v7907_v14  ;;  %v7931_v14 = vld [vmem:[%s8353_s2 + $0x2c] ss:$16 sps:$4 sm:$0xff]  }
 0x6d7   :  { %8973 = vst [vmem:[#allocation25_spill] sm:$0xff] %v7931_v14 }
 0x6d9   :  { %4505 = vmatpush1.bf16.msra.mxu0 %v7913_v16  ;;  %4546 = vmatpush1.bf16.msra.mxu1 %v7919_v17  ;;  %v7937_v16 = vld [vmem:[%s8353_s2 + $0x20] ss:$16 sps:$4 sm:$0xff]   ;;  %v7943_v17 = vld [vmem:[%s8353_s2 + $0x28] ss:$16 sps:$4 sm:$0xff]  }
 0x6da   :  { %4506 = vmatprep.subr.bf16.mxu0 %v7925_v12  ;;  %4547 = vmatprep.subr.bf16.mxu1 %v7931_v14  ;;  %8974 = vst [vmem:[#allocation26_spill] sm:$0xff] %v7937_v16  ;;  %8975 = vst [vmem:[#allocation27_spill] sm:$0xff] %v7943_v17  ;;  %v7949_v12 = vld [vmem:[%s8353_s2 + $0x4] ss:$16 sps:$4 sm:$0xff]   ;;  %v7955_v14 = vld [vmem:[%s8353_s2 + $0xc] ss:$16 sps:$4 sm:$0xff]  }
 0x6db   :  { %8976 = vst [vmem:[#allocation28_spill] sm:$0xff] %v7949_v12  ;;  %8977 = vst [vmem:[#allocation29_spill] sm:$0xff] %v7955_v14 }
 0x6dd   :  { %4507 = vmatpush1.bf16.msra.mxu0 %v7937_v16  ;;  %4548 = vmatpush1.bf16.msra.mxu1 %v7943_v17  ;;  %v7961_v16 = vld [vmem:[%s8353_s2] ss:$16 sps:$4 sm:$0xff]   ;;  %v7967_v17 = vld [vmem:[%s8353_s2 + $0x8] ss:$16 sps:$4 sm:$0xff]  }
 0x6de   :  { %4508 = vmatprep.subr.bf16.mxu0 %v7949_v12  ;;  %4549 = vmatprep.subr.bf16.mxu1 %v7955_v14  ;;  %8978 = vst [vmem:[#allocation30_spill] sm:$0xff] %v7961_v16  ;;  %8979 = vst [vmem:[#allocation31_spill] sm:$0xff] %v7967_v17  ;;  %v7973_v12 = vld [vmem:[%s8353_s2 + $0x1e4] ss:$16 sps:$4 sm:$0xff]   ;;  %v7979_v14 = vld [vmem:[%s8353_s2 + $0x1ec] ss:$16 sps:$4 sm:$0xff]  }
 0x6df   :  { %8980 = vst [vmem:[#allocation32_spill] sm:$0xff] %v7973_v12  ;;  %8981 = vst [vmem:[#allocation33_spill] sm:$0xff] %v7979_v14 }
 0x6e1   :  { %4509 = vmatpush1.bf16.msra.mxu0 %v7961_v16  ;;  %4550 = vmatpush1.bf16.msra.mxu1 %v7967_v17  ;;  %v7985_v16 = vld [vmem:[%s8353_s2 + $0x1e0] ss:$16 sps:$4 sm:$0xff]   ;;  %v7991_v17 = vld [vmem:[%s8353_s2 + $0x1e8] ss:$16 sps:$4 sm:$0xff]  }
 0x6e2   :  { %4510 = vmatprep.subr.bf16.mxu0 %v7973_v12  ;;  %4551 = vmatprep.subr.bf16.mxu1 %v7979_v14  ;;  %8982 = vst [vmem:[#allocation34_spill] sm:$0xff] %v7985_v16  ;;  %8983 = vst [vmem:[#allocation35_spill] sm:$0xff] %v7991_v17  ;;  %v7997_v12 = vld [vmem:[%s8353_s2 + $0x1c4] ss:$16 sps:$4 sm:$0xff]   ;;  %v8003_v14 = vld [vmem:[%s8353_s2 + $0x1cc] ss:$16 sps:$4 sm:$0xff]  }
 0x6e3   :  { %8984 = vst [vmem:[#allocation36_spill] sm:$0xff] %v7997_v12  ;;  %8985 = vst [vmem:[#allocation37_spill] sm:$0xff] %v8003_v14 }
 0x6e5   :  { %4511 = vmatpush2.bf16.msra.mxu0 %v7985_v16  ;;  %4552 = vmatpush2.bf16.msra.mxu1 %v7991_v17  ;;  %v8009_v16 = vld [vmem:[%s8353_s2 + $0x1c0] ss:$16 sps:$4 sm:$0xff]   ;;  %v8015_v17 = vld [vmem:[%s8353_s2 + $0x1c8] ss:$16 sps:$4 sm:$0xff]  }
 0x6e6   :  { %4512 = vmatprep.subr.bf16.mxu0 %v7997_v12  ;;  %4553 = vmatprep.subr.bf16.mxu1 %v8003_v14  ;;  %8986 = vst [vmem:[#allocation38_spill] sm:$0xff] %v8009_v16  ;;  %8987 = vst [vmem:[#allocation39_spill] sm:$0xff] %v8015_v17  ;;  %v8021_v12 = vld [vmem:[%s8353_s2 + $0x1a4] ss:$16 sps:$4 sm:$0xff]   ;;  %v8027_v14 = vld [vmem:[%s8353_s2 + $0x1ac] ss:$16 sps:$4 sm:$0xff]  }
 0x6e7   :  { %8988 = vst [vmem:[#allocation40_spill] sm:$0xff] %v8021_v12  ;;  %8989 = vst [vmem:[#allocation41_spill] sm:$0xff] %v8027_v14 }
 0x6e9   :  { %4513 = vmatpush2.bf16.msra.mxu0 %v8009_v16  ;;  %4554 = vmatpush2.bf16.msra.mxu1 %v8015_v17  ;;  %v8033_v16 = vld [vmem:[%s8353_s2 + $0x1a0] ss:$16 sps:$4 sm:$0xff]   ;;  %v8039_v17 = vld [vmem:[%s8353_s2 + $0x1a8] ss:$16 sps:$4 sm:$0xff]  }
 0x6ea   :  { %4514 = vmatprep.subr.bf16.mxu0 %v8021_v12  ;;  %4555 = vmatprep.subr.bf16.mxu1 %v8027_v14  ;;  %8990 = vst [vmem:[#allocation42_spill] sm:$0xff] %v8033_v16  ;;  %8991 = vst [vmem:[#allocation43_spill] sm:$0xff] %v8039_v17  ;;  %v8045_v12 = vld [vmem:[%s8353_s2 + $0x184] ss:$16 sps:$4 sm:$0xff]   ;;  %v8051_v14 = vld [vmem:[%s8353_s2 + $0x18c] ss:$16 sps:$4 sm:$0xff]  }
 0x6eb   :  { %8992 = vst [vmem:[#allocation44_spill] sm:$0xff] %v8045_v12  ;;  %8993 = vst [vmem:[#allocation45_spill] sm:$0xff] %v8051_v14 }
 0x6ed   :  { %4515 = vmatpush2.bf16.msra.mxu0 %v8033_v16  ;;  %4556 = vmatpush2.bf16.msra.mxu1 %v8039_v17  ;;  %v8057_v16 = vld [vmem:[%s8353_s2 + $0x180] ss:$16 sps:$4 sm:$0xff]   ;;  %v8063_v17 = vld [vmem:[%s8353_s2 + $0x188] ss:$16 sps:$4 sm:$0xff]  }
 0x6ee   :  { %4516 = vmatprep.subr.bf16.mxu0 %v8045_v12  ;;  %4557 = vmatprep.subr.bf16.mxu1 %v8051_v14  ;;  %8994 = vst [vmem:[#allocation46_spill] sm:$0xff] %v8057_v16  ;;  %8995 = vst [vmem:[#allocation47_spill] sm:$0xff] %v8063_v17  ;;  %v8069_v12 = vld [vmem:[%s8353_s2 + $0x164] ss:$16 sps:$4 sm:$0xff]   ;;  %v8075_v14 = vld [vmem:[%s8353_s2 + $0x16c] ss:$16 sps:$4 sm:$0xff]  }
 0x6ef   :  { %8996 = vst [vmem:[#allocation48_spill] sm:$0xff] %v8069_v12  ;;  %8997 = vst [vmem:[#allocation49_spill] sm:$0xff] %v8075_v14 }
 0x6f1   :  { %4517 = vmatpush2.bf16.msra.mxu0 %v8057_v16  ;;  %4558 = vmatpush2.bf16.msra.mxu1 %v8063_v17  ;;  %v8081_v16 = vld [vmem:[%s8353_s2 + $0x160] ss:$16 sps:$4 sm:$0xff]   ;;  %v8087_v17 = vld [vmem:[%s8353_s2 + $0x168] ss:$16 sps:$4 sm:$0xff]  }
 0x6f2   :  { %4518 = vmatprep.subr.bf16.mxu0 %v8069_v12  ;;  %4559 = vmatprep.subr.bf16.mxu1 %v8075_v14  ;;  %8998 = vst [vmem:[#allocation50_spill] sm:$0xff] %v8081_v16  ;;  %8999 = vst [vmem:[#allocation51_spill] sm:$0xff] %v8087_v17  ;;  %v8093_v12 = vld [vmem:[%s8353_s2 + $0x144] ss:$16 sps:$4 sm:$0xff]   ;;  %v8099_v14 = vld [vmem:[%s8353_s2 + $0x14c] ss:$16 sps:$4 sm:$0xff]  }
 0x6f3   :  { %9000 = vst [vmem:[#allocation52_spill] sm:$0xff] %v8093_v12  ;;  %9001 = vst [vmem:[#allocation53_spill] sm:$0xff] %v8099_v14 }
 0x6f5   :  { %4519 = vmatpush2.bf16.msra.mxu0 %v8081_v16  ;;  %4560 = vmatpush2.bf16.msra.mxu1 %v8087_v17  ;;  %v8105_v16 = vld [vmem:[%s8353_s2 + $0x140] ss:$16 sps:$4 sm:$0xff]   ;;  %v8111_v17 = vld [vmem:[%s8353_s2 + $0x148] ss:$16 sps:$4 sm:$0xff]  }
 0x6f6   :  { %4520 = vmatprep.subr.bf16.mxu0 %v8093_v12  ;;  %4561 = vmatprep.subr.bf16.mxu1 %v8099_v14  ;;  %9002 = vst [vmem:[#allocation54_spill] sm:$0xff] %v8105_v16  ;;  %9003 = vst [vmem:[#allocation55_spill] sm:$0xff] %v8111_v17  ;;  %v8117_v12 = vld [vmem:[%s8353_s2 + $0x124] ss:$16 sps:$4 sm:$0xff]   ;;  %v8123_v14 = vld [vmem:[%s8353_s2 + $0x12c] ss:$16 sps:$4 sm:$0xff]  }
 0x6f7   :  { %9004 = vst [vmem:[#allocation56_spill] sm:$0xff] %v8117_v12  ;;  %9005 = vst [vmem:[#allocation57_spill] sm:$0xff] %v8123_v14 }
 0x6f9   :  { %4521 = vmatpush2.bf16.msra.mxu0 %v8105_v16  ;;  %4562 = vmatpush2.bf16.msra.mxu1 %v8111_v17  ;;  %v8129_v16 = vld [vmem:[%s8353_s2 + $0x120] ss:$16 sps:$4 sm:$0xff]   ;;  %v8135_v17 = vld [vmem:[%s8353_s2 + $0x128] ss:$16 sps:$4 sm:$0xff]  }
 0x6fa   :  { %4522 = vmatprep.subr.bf16.mxu0 %v8117_v12  ;;  %4563 = vmatprep.subr.bf16.mxu1 %v8123_v14  ;;  %9006 = vst [vmem:[#allocation58_spill] sm:$0xff] %v8129_v16  ;;  %9007 = vst [vmem:[#allocation59_spill] sm:$0xff] %v8135_v17  ;;  %v8141_v12 = vld [vmem:[%s8353_s2 + $0x104] ss:$16 sps:$4 sm:$0xff]   ;;  %v8147_v14 = vld [vmem:[%s8353_s2 + $0x10c] ss:$16 sps:$4 sm:$0xff]  }
 0x6fb   :  { %9008 = vst [vmem:[#allocation60_spill] sm:$0xff] %v8141_v12  ;;  %9009 = vst [vmem:[#allocation61_spill] sm:$0xff] %v8147_v14 }
 0x6fd   :  { %4523 = vmatpush2.bf16.msra.mxu0 %v8129_v16  ;;  %4564 = vmatpush2.bf16.msra.mxu1 %v8135_v17  ;;  %v8153_v16 = vld [vmem:[%s8353_s2 + $0x100] ss:$16 sps:$4 sm:$0xff]   ;;  %v8159_v17 = vld [vmem:[%s8353_s2 + $0x108] ss:$16 sps:$4 sm:$0xff]  }
 0x6fe   :  { %4524 = vmatprep.subr.bf16.mxu0 %v8141_v12  ;;  %4565 = vmatprep.subr.bf16.mxu1 %v8147_v14  ;;  %9010 = vst [vmem:[#allocation62_spill] sm:$0xff] %v8153_v16  ;;  %9011 = vst [vmem:[#allocation63_spill] sm:$0xff] %v8159_v17 }
 0x701   :  { %4525 = vmatpush2.bf16.msra.mxu0 %v8153_v16  ;;  %4566 = vmatpush2.bf16.msra.mxu1 %v8159_v17 }
 0x702   :  { %4607 = vmatprep.subr.bf16.mxu0 %v7634_v36  ;;  %4648 = vmatprep.subr.bf16.mxu1 %v7640_v49 }
 0x764   :  { %v4303_v12 = vpop.f32.mrf.mxu0  ;;  %v4344_v14 = vpop.f32.mrf.mxu1 }
 0x765   :  { %v4304_v1 = vadd.f32 %v4303_v12, %v8954_v23  ;;  %v4345_v47 = vadd.f32 %v4344_v14, %v8957_v8 }
 0x766   :  { %v4305_v57 = vpop.f32.mrf.mxu0  ;;  %v4346_v11 = vpop.f32.mrf.mxu1 }
 0x767   :  { %v5220_v10 = vmul.f32 -1.442695, %v4304_v1  ;;  %v4306_v16 = vadd.f32 %v4305_v57, %v8955_v42  ;;  %v4347_v36 = vadd.f32 %v4346_v11, %v8956_v3 }
 0x768   :  { %v4307_v9 = vpop.f32.mrf.mxu0  ;;  %v4348_v7 = vpop.f32.mrf.mxu1 }
 0x769   :  { %5616 = vpow2.f32 %v5220_v10  ;;  %v5221_v5 = vmul.f32 -1.442695, %v4306_v16  ;;  %v5222_v17 = vmul.f32 -1.442695, %v4347_v36  ;;  %v5223_v7 = vld [vmem:[%s8354_s0 + $0x60] sm:$0xff] }
 0x76a   :  { %v4308_v4 = vpop.f32.mrf.mxu0  ;;  %v4349_v2 = vpop.f32.mrf.mxu1 }
 0x76b   :  { %5618 = vpow2.f32 %v5221_v5  ;;  %v4378_v4 = vunpack.c.l.bf16 %v5223_v7  ;;  %v4379_v2 = vunpack.c.h.bf16 %v5223_v7 }
 0x76c   :  { %5620 = vpow2.f32 %v5222_v17 }
 0x776   :  { %v5617_v49 = vpop.eup %5616 }
 0x777   :  { %v4354_v46 = vadd.f32 1.0, %v5617_v49 }
 0x778   :  { %v5619_v12 = vpop.eup %5618 }
 0x779   :  { %5622 = vrcp.f32 %v4354_v46  ;;  %v4360_v1 = vadd.f32 1.0, %v5619_v12  ;;  %v5621_v10 = vpop.eup %5620 }
 0x77a   :  { %5624 = vtanh.f32 %v4345_v47  ;;  %v4367_v12 = vadd.f32 1.0, %v5621_v10 }
 0x77b   :  { %5626 = vrcp.f32 %v4360_v1 }
 0x784   :  { %v4416_v5 = vpop.f32.mrf.mxu0  ;;  %v4457_v9 = vpop.f32.mrf.mxu1 }
 0x785   :  { %v4464_v11 = vadd.f32 %v4416_v5, %v4378_v4  ;;  %v5224_v4 = vld [vmem:[%s8354_s0 + $0x68] sm:$0xff] }
 0x786   :  { %v5623_v57 = vpop.eup %5622  ;;  %v4418_v16 = vpop.f32.mrf.mxu0 }
 0x787   :  { %v4459_v14 = vpop.f32.mrf.mxu1  ;;  %v5625_v36 = vpop.eup %5624  ;;  %v5225_v49 = vmul.f32 -1.442695, %v4464_v11  ;;  %v4465_v17 = vadd.f32 %v4418_v16, %v4379_v2  ;;  %v4381_v2 = vunpack.c.h.bf16 %v5224_v4  ;;  %v4380_v11 = vunpack.c.l.bf16 %v5224_v4 }
 0x788   :  { %v5627_v46 = vpop.eup %5626  ;;  %v4420_v47 = vpop.f32.mrf.mxu0  ;;  %v4371_v8 = vmul.f32 %v5625_v36, %v5623_v57 }
 0x789   :  { %v4461_v1 = vpop.f32.mrf.mxu1  ;;  %v4370_v3 = vmul.f32 %v5627_v46, %v7654_v18  ;;  %5628 = vpow2.f32 %v5225_v49  ;;  %v5226_v42 = vmul.f32 -1.442695, %v4465_v17  ;;  %v4467_v10 = vadd.f32 %v4459_v14, %v4381_v2 }
 0x78a   :  { %v4421_v7 = vpop.f32.mrf.mxu0  ;;  %v4466_v18 = vadd.f32 %v4457_v9, %v4380_v11 }
 0x78b   :  { %v4462_v23 = vpop.f32.mrf.mxu1  ;;  %5630 = vpow2.f32 %v5226_v42  ;;  %v8175_v5 = vadd.f32 %v4371_v8, %v4370_v3  ;;  %v5227_v57 = vmul.f32 -1.442695, %v4467_v10 }
 0x78c   :  { %5632 = vrcp.f32 %v4367_v12 }
 0x78d   :  { %5634 = vtanh.f32 %v8175_v5 }
 0x78e   :  { %5636 = vpow2.f32 %v5227_v57 }
 0x796   :  { %v5629_v16 = vpop.eup %5628 }
 0x797   :  { %v4471_v36 = vadd.f32 1.0, %v5629_v16  ;;  %v9054_v16 = vld [vmem:[#allocation52_spill] sm:$0xff] }
 0x798   :  { %v5631_v49 = vpop.eup %5630 }
 0x799   :  { %v5633_v23 = vpop.eup %5632  ;;  %5638 = vrcp.f32 %v4471_v36  ;;  %v4477_v17 = vadd.f32 1.0, %v5631_v49  ;;  %v9056_v36 = vld [vmem:[#allocation54_spill] sm:$0xff]  ;;  %v9057_v49 = vld [vmem:[#allocation55_spill] sm:$0xff] }
 0x79a   :  { %v5635_v46 = vpop.eup %5634  ;;  %5640 = vtanh.f32 %v4466_v18  ;;  %v9055_v18 = vld [vmem:[#allocation53_spill] sm:$0xff] }
 0x79b   :  { %5642 = vrcp.f32 %v4477_v17  ;;  %v4374_v42 = vmul.f32 %v5635_v46, %v5633_v23  ;;  %v5637_v8 = vpop.eup %5636  ;;  %v9058_v23 = vld [vmem:[#allocation56_spill] sm:$0xff]  ;;  %v9059_v17 = vld [vmem:[#allocation57_spill] sm:$0xff]  ;;  %v9060_v46 = vld [vmem:[#allocation58_spill] sm:$0xff] }
 0x79c   :  { %v4484_v1 = vadd.f32 1.0, %v5637_v8  ;;  %v9063_v8 = vld [vmem:[#allocation61_spill] sm:$0xff] }
 0x79d   :  { %v4493_v3 = vpack.c.bf16 %v4374_v42, %v4374_v42  ;;  %v9061_v42 = vld [vmem:[#allocation59_spill] sm:$0xff] }
 0x79e   :  { %5644 = vrcp.f32 %v4484_v1 }
 0x79f   :  { %4526 = vmatprep.mubr.bf16.mxu0 %v4493_v3  ;;  %4567 = vmatprep.mubr.bf16.mxu1 %v4493_v3  ;;  %v9062_v3 = vld [vmem:[#allocation60_spill] sm:$0xff] }
 0x7a6   :  { %v5639_v12 = vpop.eup %5638 }
 0x7a7   :  { %v5641_v14 = vpop.eup %5640 }
 0x7a8   :  { %v5643_v47 = vpop.eup %5642  ;;  %v4488_v7 = vmul.f32 %v5641_v14, %v5639_v12  ;;  %v9064_v12 = vld [vmem:[#allocation62_spill] sm:$0xff]  ;;  %v9065_v14 = vld [vmem:[#allocation63_spill] sm:$0xff] }
 0x7a9   :  { %v4487_v9 = vmul.f32 %v5643_v47, %v7658_v59  ;;  %v9026_v59 = vld [vmem:[#allocation13_spill] sm:$0xff] }
 0x7ab   :  { %v8179_v4 = vadd.f32 %v4488_v7, %v4487_v9  ;;  %v5645_v2 = vpop.eup %5644  ;;  %v9066_v7 = vld [vmem:[#allocation8_spill] sm:$0xff] }
 0x7ad   :  { %5646 = vtanh.f32 %v8179_v4 }
 0x7ba   :  { %v5647_v10 = vpop.eup %5646 }
 0x7bb   :  { %v4491_v11 = vmul.f32 %v5647_v10, %v5645_v2 }
 0x7bd   :  { %v4492_v57 = vpack.c.bf16 %v4491_v11, %v4491_v11 }
 0x7bf   :  { %4527 = vmatmul.mubr.bf16.vlgmr.msra.gmra.mxu0 %v4492_v57  ;;  %4568 = vmatmul.mubr.bf16.vlgmr.msra.gmra.mxu1 %v4492_v57 }
 0x7c0   :  { %4608 = vmatpush1.bf16.msra.mxu0 %v7473_v24  ;;  %4649 = vmatpush1.bf16.msra.mxu1 %v7479_v26  ;;  %v9013_v24 = vld [vmem:[#allocation15_spill] sm:$0xff]  ;;  %v9014_v26 = vld [vmem:[#allocation16_spill] sm:$0xff] }
 0x7c1   :  { %4609 = vmatprep.subr.bf16.mxu0 %v7485_v27  ;;  %4650 = vmatprep.subr.bf16.mxu1 %v7491_v63  ;;  %v9015_v27 = vld [vmem:[#allocation6_spill] sm:$0xff]  ;;  %v9016_v63 = vld [vmem:[#allocation7_spill] sm:$0xff] }
 0x7c2   :  { %4639 = vmatprep.mubr.bf16.mxu0 %v8695_v38  ;;  %4680 = vmatprep.mubr.bf16.mxu1 %v8695_v38  ;;  %v9012_v38 = vld [vmem:[#allocation14_spill] sm:$0xff] }
 0x7c4   :  { %4610 = vmatpush1.bf16.msra.mxu0 %v7499_v32  ;;  %4651 = vmatpush1.bf16.msra.mxu1 %v7505_v25  ;;  %v9017_v32 = vld [vmem:[#allocation17_spill] sm:$0xff]  ;;  %v9018_v25 = vld [vmem:[#allocation18_spill] sm:$0xff] }
 0x7c5   :  { %4611 = vmatprep.subr.bf16.mxu0 %v7511_v15  ;;  %4652 = vmatprep.subr.bf16.mxu1 %v7517_v35  ;;  %v9019_v15 = vld [vmem:[#allocation19_spill] sm:$0xff]  ;;  %v9020_v35 = vld [vmem:[#allocation20_spill] sm:$0xff] }
 0x7c8   :  { %4612 = vmatpush1.bf16.msra.mxu0 %v7523_v58  ;;  %4653 = vmatpush1.bf16.msra.mxu1 %v7529_v34  ;;  %v9021_v58 = vld [vmem:[#allocation21_spill] sm:$0xff]  ;;  %v9022_v34 = vld [vmem:[#allocation22_spill] sm:$0xff] }
 0x7c9   :  { %4613 = vmatprep.subr.bf16.mxu0 %v7535_v31  ;;  %4654 = vmatprep.subr.bf16.mxu1 %v7677_v39  ;;  %v9023_v31 = vld [vmem:[#allocation23_spill] sm:$0xff]  ;;  %v9027_v39 = vld [vmem:[#allocation25_spill] sm:$0xff] }
 0x7cc   :  { %4614 = vmatpush1.bf16.msra.mxu0 %v7542_v29  ;;  %4655 = vmatpush1.bf16.msra.mxu1 %v7684_v19  ;;  %v9024_v29 = vld [vmem:[#allocation24_spill] sm:$0xff]  ;;  %v9028_v19 = vld [vmem:[#allocation26_spill] sm:$0xff] }
 0x7cd   :  { %4615 = vmatprep.subr.bf16.mxu0 %v7549_v40  ;;  %4656 = vmatprep.subr.bf16.mxu1 %v7691_v20  ;;  %v9025_v40 = vld [vmem:[#allocation12_spill] sm:$0xff]  ;;  %v9029_v20 = vld [vmem:[#allocation27_spill] sm:$0xff] }
 0x7d0   :  { %4616 = vmatpush1.bf16.msra.mxu0 %v7697_v21  ;;  %4657 = vmatpush1.bf16.msra.mxu1 %v7703_v51  ;;  %v9030_v21 = vld [vmem:[#allocation28_spill] sm:$0xff]  ;;  %v9031_v51 = vld [vmem:[#allocation29_spill] sm:$0xff] }
 0x7d1   :  { %4617 = vmatprep.subr.bf16.mxu0 %v7709_v0  ;;  %4658 = vmatprep.subr.bf16.mxu1 %v7715_v60  ;;  %v9032_v0 = vld [vmem:[#allocation30_spill] sm:$0xff]  ;;  %v9033_v60 = vld [vmem:[#allocation31_spill] sm:$0xff] }
 0x7d4   :  { %4618 = vmatpush1.bf16.msra.mxu0 %v7721_v55  ;;  %4659 = vmatpush1.bf16.msra.mxu1 %v7727_v53  ;;  %v9034_v55 = vld [vmem:[#allocation32_spill] sm:$0xff]  ;;  %v9035_v53 = vld [vmem:[#allocation33_spill] sm:$0xff] }
 0x7d5   :  { %4619 = vmatprep.subr.bf16.mxu0 %v7733_v56  ;;  %4660 = vmatprep.subr.bf16.mxu1 %v7739_v54  ;;  %v9036_v56 = vld [vmem:[#allocation34_spill] sm:$0xff]  ;;  %v9037_v54 = vld [vmem:[#allocation35_spill] sm:$0xff] }
 0x7d8   :  { %4620 = vmatpush1.bf16.msra.mxu0 %v7745_v61  ;;  %4661 = vmatpush1.bf16.msra.mxu1 %v7751_v62  ;;  %v9038_v61 = vld [vmem:[#allocation36_spill] sm:$0xff]  ;;  %v9039_v62 = vld [vmem:[#allocation37_spill] sm:$0xff] }
 0x7d9   :  { %4621 = vmatprep.subr.bf16.mxu0 %v7757_v13  ;;  %4662 = vmatprep.subr.bf16.mxu1 %v7763_v6  ;;  %v9040_v13 = vld [vmem:[#allocation38_spill] sm:$0xff]  ;;  %v9041_v6 = vld [vmem:[#allocation39_spill] sm:$0xff] }
 0x7dc   :  { %4622 = vmatpush1.bf16.msra.mxu0 %v7769_v50  ;;  %4663 = vmatpush1.bf16.msra.mxu1 %v7775_v52  ;;  %v9042_v50 = vld [vmem:[#allocation40_spill] sm:$0xff]  ;;  %v9043_v52 = vld [vmem:[#allocation41_spill] sm:$0xff] }
 0x7dd   :  { %4719 = vmatprep.subr.bf16.mxu0 %v7781_v33  ;;  %4760 = vmatprep.subr.bf16.mxu1 %v7787_v37  ;;  %v9044_v33 = vld [vmem:[#allocation42_spill] sm:$0xff]  ;;  %v9045_v37 = vld [vmem:[#allocation43_spill] sm:$0xff] }
 0x7df   :  { %4640 = vmatmul.mubr.bf16.vlgmr.msra.gmra.mxu0 %v4492_v57  ;;  %4681 = vmatmul.mubr.bf16.vlgmr.msra.gmra.mxu1 %v4492_v57  ;;  %v9067_v57 = vld [vmem:[#allocation9_spill] sm:$0xff] }
 0x7e0   :  { %4720 = vmatpush1.bf16.msra.mxu0 %v7793_v28  ;;  %4761 = vmatpush1.bf16.msra.mxu1 %v7799_v30  ;;  %v9046_v28 = vld [vmem:[#allocation44_spill] sm:$0xff]  ;;  %v9047_v30 = vld [vmem:[#allocation45_spill] sm:$0xff] }
 0x7e1   :  { %4721 = vmatprep.subr.bf16.mxu0 %v7805_v48  ;;  %4762 = vmatprep.subr.bf16.mxu1 %v7811_v41  ;;  %v9048_v48 = vld [vmem:[#allocation46_spill] sm:$0xff]  ;;  %v9049_v41 = vld [vmem:[#allocation47_spill] sm:$0xff] }
 0x7e4   :  { %4722 = vmatpush1.bf16.msra.mxu0 %v7817_v22  ;;  %4763 = vmatpush1.bf16.msra.mxu1 %v7823_v43  ;;  %v9050_v22 = vld [vmem:[#allocation48_spill] sm:$0xff]  ;;  %v9051_v43 = vld [vmem:[#allocation49_spill] sm:$0xff] }
 0x7e5   :  { %4723 = vmatprep.subr.bf16.mxu0 %v7829_v44  ;;  %4764 = vmatprep.subr.bf16.mxu1 %v7835_v45  ;;  %v9052_v44 = vld [vmem:[#allocation50_spill] sm:$0xff]  ;;  %v9053_v45 = vld [vmem:[#allocation51_spill] sm:$0xff] }
 0x7e8   :  { %4724 = vmatpush1.bf16.msra.mxu0 %v9012_v38  ;;  %4765 = vmatpush1.bf16.msra.mxu1 %v9013_v24 }
 0x7e9   :  { %4725 = vmatprep.subr.bf16.mxu0 %v9014_v26  ;;  %4766 = vmatprep.subr.bf16.mxu1 %v9015_v27 }
 0x7ec   :  { %4726 = vmatpush1.bf16.msra.mxu0 %v9016_v63  ;;  %4767 = vmatpush1.bf16.msra.mxu1 %v9017_v32 }
 0x7ed   :  { %4727 = vmatprep.subr.bf16.mxu0 %v9018_v25  ;;  %4768 = vmatprep.subr.bf16.mxu1 %v9019_v15  ;;  %v9068_v25 = vld [vmem:[#allocation10_spill] sm:$0xff] }
 0x7f0   :  { %4728 = vmatpush1.bf16.msra.mxu0 %v9020_v35  ;;  %4769 = vmatpush1.bf16.msra.mxu1 %v9021_v58 }
 0x7f1   :  { %4729 = vmatprep.subr.bf16.mxu0 %v9022_v34  ;;  %4770 = vmatprep.subr.bf16.mxu1 %v9023_v31  ;;  %v9069_v34 = vld [vmem:[#allocation11_spill] sm:$0xff] }
 0x7f4   :  { %4730 = vmatpush1.bf16.msra.mxu0 %v9024_v29  ;;  %4771 = vmatpush1.bf16.msra.mxu1 %v9025_v40 }
 0x7f5   :  { %4731 = vmatprep.subr.bf16.mxu0 %v9026_v59  ;;  %4772 = vmatprep.subr.bf16.mxu1 %v9027_v39  ;;  %v5231_v39 = vld [vmem:[%s8354_s0 + $0x70] sm:$0xff] }
 0x7f8   :  { %4732 = vmatpush1.bf16.msra.mxu0 %v9028_v19  ;;  %4773 = vmatpush1.bf16.msra.mxu1 %v9029_v20  ;;  %v4603_v19 = vunpack.c.l.bf16 %v5231_v39  ;;  %v4604_v20 = vunpack.c.h.bf16 %v5231_v39  ;;  %v4830_v39 = vld [vmem:[%s8356_s4 + $0x28] sm:$0xff] }
 0x7f9   :  { %4733 = vmatprep.subr.bf16.mxu0 %v9030_v21  ;;  %4774 = vmatprep.subr.bf16.mxu1 %v9031_v51 }
 0x7fc   :  { %4734 = vmatpush1.bf16.msra.mxu0 %v9032_v0  ;;  %4775 = vmatpush1.bf16.msra.mxu1 %v9033_v60 }
 0x7fd   :  { %4735 = vmatprep.subr.bf16.mxu0 %v9034_v55  ;;  %4776 = vmatprep.subr.bf16.mxu1 %v9035_v53 }
 0x800   :  { %4736 = vmatpush2.bf16.msra.mxu0 %v9036_v56  ;;  %4777 = vmatpush2.bf16.msra.mxu1 %v9037_v54 }
 0x801   :  { %4737 = vmatprep.subr.bf16.mxu0 %v9038_v61  ;;  %4778 = vmatprep.subr.bf16.mxu1 %v9039_v62 }
 0x804   :  { %4738 = vmatpush2.bf16.msra.mxu0 %v9040_v13  ;;  %4779 = vmatpush2.bf16.msra.mxu1 %v9041_v6 }
 0x805   :  { %4739 = vmatprep.subr.bf16.mxu0 %v9042_v50  ;;  %4780 = vmatprep.subr.bf16.mxu1 %v9043_v52 }
 0x808   :  { %4740 = vmatpush2.bf16.msra.mxu0 %v9044_v33  ;;  %4781 = vmatpush2.bf16.msra.mxu1 %v9045_v37 }
 0x809   :  { %4741 = vmatprep.subr.bf16.mxu0 %v9046_v28  ;;  %4782 = vmatprep.subr.bf16.mxu1 %v9047_v30 }
 0x80c   :  { %4742 = vmatpush2.bf16.msra.mxu0 %v9048_v48  ;;  %4783 = vmatpush2.bf16.msra.mxu1 %v9049_v41  ;;  %v5232_v41 = vld [vmem:[%s8354_s0 + $0x78] sm:$0xff] }
 0x80d   :  { %4743 = vmatprep.subr.bf16.mxu0 %v9050_v22  ;;  %4784 = vmatprep.subr.bf16.mxu1 %v9051_v43  ;;  %v4606_v43 = vunpack.c.h.bf16 %v5232_v41 }
 0x810   :  { %4744 = vmatpush2.bf16.msra.mxu0 %v9052_v44  ;;  %4785 = vmatpush2.bf16.msra.mxu1 %v9053_v45  ;;  %v4605_v45 = vunpack.c.l.bf16 %v5232_v41 }
 0x811   :  { %4745 = vmatprep.subr.bf16.mxu0 %v9054_v16  ;;  %4786 = vmatprep.subr.bf16.mxu1 %v9055_v18 }
 0x814   :  { %4746 = vmatpush2.bf16.msra.mxu0 %v9056_v36  ;;  %4787 = vmatpush2.bf16.msra.mxu1 %v9057_v49 }
 0x815   :  { %4747 = vmatprep.subr.bf16.mxu0 %v9058_v23  ;;  %4788 = vmatprep.subr.bf16.mxu1 %v9059_v17 }
 0x818   :  { %4748 = vmatpush2.bf16.msra.mxu0 %v9060_v46  ;;  %4789 = vmatpush2.bf16.msra.mxu1 %v9061_v42 }
 0x819   :  { %4749 = vmatprep.subr.bf16.mxu0 %v9062_v3  ;;  %4790 = vmatprep.subr.bf16.mxu1 %v9063_v8 }
 0x81c   :  { %4750 = vmatpush2.bf16.msra.mxu0 %v9064_v12  ;;  %4791 = vmatpush2.bf16.msra.mxu1 %v9065_v14 }
 0x87f   :  { %v4528_v47 = vpop.f32.mrf.mxu0  ;;  %v4569_v1 = vpop.f32.mrf.mxu1 }
 0x880   :  { %v4529_v9 = vadd.f32 %v4528_v47, %v9066_v7  ;;  %v4570_v31 = vadd.f32 %v4569_v1, %v9069_v34 }
 0x881   :  { %v4530_v2 = vpop.f32.mrf.mxu0  ;;  %v4571_v10 = vpop.f32.mrf.mxu1 }
 0x882   :  { %v5228_v11 = vmul.f32 -1.442695, %v4529_v9  ;;  %v4531_v38 = vadd.f32 %v4530_v2, %v9067_v57  ;;  %v4572_v15 = vadd.f32 %v4571_v10, %v9068_v25 }
 0x883   :  { %v4532_v24 = vpop.f32.mrf.mxu0  ;;  %v4573_v26 = vpop.f32.mrf.mxu1 }
 0x884   :  { %5648 = vpow2.f32 %v5228_v11  ;;  %v5229_v27 = vmul.f32 -1.442695, %v4531_v38  ;;  %v5230_v35 = vmul.f32 -1.442695, %v4572_v15  ;;  %v4837_v15 = vld [vmem:[%s8356_s4 + $0x60] sm:$0xff] }
 0x885   :  { %v4533_v63 = vpop.f32.mrf.mxu0  ;;  %v4574_v32 = vpop.f32.mrf.mxu1 }
 0x886   :  { %5650 = vpow2.f32 %v5229_v27  ;;  %v5890_v27 = vmov 0.0   ;;  %v4840_v63 = vld [vmem:[%s8356_s4 + $0x78] sm:$0xff]  ;;  %v4838_v32 = vld [vmem:[%s8356_s4 + $0x68] sm:$0xff] }
 0x887   :  { %5652 = vpow2.f32 %v5230_v35  ;;  %5257 = vmatprep.subr.mxu0 %v5890_v27  ;;  %v4836_v35 = vld [vmem:[%s8356_s4 + $0x58] sm:$0xff] }
 0x891   :  { %v5649_v58 = vpop.eup %5648 }
 0x892   :  { %v4579_v29 = vadd.f32 1.0, %v5649_v58  ;;  %v4835_v58 = vld [vmem:[%s8356_s4 + $0x50] sm:$0xff] }
 0x893   :  { %v5651_v40 = vpop.eup %5650 }
 0x894   :  { %5654 = vrcp.f32 %v4579_v29  ;;  %v4585_v59 = vadd.f32 1.0, %v5651_v40  ;;  %v5653_v0 = vpop.eup %5652  ;;  %v4833_v29 = vld [vmem:[%s8356_s4 + $0x40] sm:$0xff]  ;;  %v4832_v40 = vld [vmem:[%s8356_s4 + $0x38] sm:$0xff] }
 0x895   :  { %5656 = vtanh.f32 %v4570_v31  ;;  %v4592_v6 = vadd.f32 1.0, %v5653_v0  ;;  %v4834_v31 = vld [vmem:[%s8356_s4 + $0x48] sm:$0xff]  ;;  %v4825_v0 = vld [vmem:[%s8356_s4] sm:$0xff] }
 0x896   :  { %5658 = vrcp.f32 %v4585_v59  ;;  %v4831_v59 = vld [vmem:[%s8356_s4 + $0x30] sm:$0xff] }
 0x89f   :  { %v4641_v21 = vpop.f32.mrf.mxu0  ;;  %v4682_v51 = vpop.f32.mrf.mxu1 }
 0x8a0   :  { %v4689_v60 = vadd.f32 %v4641_v21, %v4603_v19  ;;  %v4829_v19 = vld [vmem:[%s8356_s4 + $0x20] sm:$0xff]  ;;  %v4827_v21 = vld [vmem:[%s8356_s4 + $0x10] sm:$0xff] }
 0x8a1   :  { %v5655_v55 = vpop.eup %5654  ;;  %v4643_v53 = vpop.f32.mrf.mxu0 }
 0x8a2   :  { %v4684_v56 = vpop.f32.mrf.mxu1  ;;  %v5657_v54 = vpop.eup %5656  ;;  %v5233_v61 = vmul.f32 -1.442695, %v4689_v60  ;;  %v4690_v62 = vadd.f32 %v4643_v53, %v4604_v20  ;;  %v4828_v20 = vld [vmem:[%s8356_s4 + $0x18] sm:$0xff] }
 0x8a3   :  { %v5659_v13 = vpop.eup %5658  ;;  %v4645_v50 = vpop.f32.mrf.mxu0  ;;  %v4596_v33 = vmul.f32 %v5657_v54, %v5655_v55  ;;  %v4692_v44 = vadd.f32 %v4684_v56, %v4606_v43 }
 0x8a4   :  { %v4686_v52 = vpop.f32.mrf.mxu1  ;;  %v4595_v37 = vmul.f32 %v5659_v13, %v8175_v5  ;;  %5660 = vpow2.f32 %v5233_v61  ;;  %v5234_v28 = vmul.f32 -1.442695, %v4690_v62  ;;  %v4691_v5 = vadd.f32 %v4682_v51, %v4605_v45  ;;  %v4826_v51 = vld [vmem:[%s8356_s4 + $0x8] sm:$0xff] }
 0x8a5   :  { %v4646_v30 = vpop.f32.mrf.mxu0  ;;  %v5235_v16 = vmul.f32 -1.442695, %v4692_v44 }
 0x8a6   :  { %v4687_v48 = vpop.f32.mrf.mxu1  ;;  %5662 = vpow2.f32 %v5234_v28  ;;  %v8289_v22 = vadd.f32 %v4596_v33, %v4595_v37 }
 0x8a7   :  { %5664 = vrcp.f32 %v4592_v6 }
 0x8a8   :  { %5666 = vtanh.f32 %v8289_v22 }
 0x8a9   :  { %5668 = vpow2.f32 %v5235_v16 }
 0x8b1   :  { %v5661_v18 = vpop.eup %5660 }
 0x8b2   :  { %v4696_v36 = vadd.f32 1.0, %v5661_v18 }
 0x8b3   :  { %v5663_v49 = vpop.eup %5662 }
 0x8b4   :  { %v5665_v23 = vpop.eup %5664  ;;  %5670 = vrcp.f32 %v4696_v36  ;;  %v4702_v17 = vadd.f32 1.0, %v5663_v49 }
 0x8b5   :  { %v5667_v46 = vpop.eup %5666  ;;  %5672 = vtanh.f32 %v4691_v5 }
 0x8b6   :  { %5674 = vrcp.f32 %v4702_v17  ;;  %v4599_v42 = vmul.f32 %v5667_v46, %v5665_v23  ;;  %v5669_v8 = vpop.eup %5668  ;;  %v5239_v17 = vld [vmem:[%s8357_s5] ss:$0 sm:$0xff] }
 0x8b7   :  { %v4709_v1 = vadd.f32 1.0, %v5669_v8 }
 0x8b8   :  { %v4718_v3 = vpack.c.bf16 %v4599_v42, %v4599_v42 }
 0x8b9   :  { %5676 = vrcp.f32 %v4709_v1 }
 0x8ba   :  { %4751 = vmatprep.mubr.bf16.mxu0 %v4718_v3  ;;  %4792 = vmatprep.mubr.bf16.mxu1 %v4718_v3 }
 0x8c1   :  { %v5671_v12 = vpop.eup %5670 }
 0x8c2   :  { %v5673_v14 = vpop.eup %5672 }
 0x8c3   :  { %v5675_v47 = vpop.eup %5674  ;;  %v4713_v9 = vmul.f32 %v5673_v14, %v5671_v12 }
 0x8c4   :  { %v4712_v2 = vmul.f32 %v5675_v47, %v8179_v4  ;;  %v4839_v4 = vld [vmem:[%s8356_s4 + $0x70] sm:$0xff] }
 0x8c6   :  { %v4714_v10 = vadd.f32 %v4713_v9, %v4712_v2  ;;  %v5677_v11 = vpop.eup %5676 }
 0x8c8   :  { %5678 = vtanh.f32 %v4714_v10 }
 0x8d5   :  { %v5679_v38 = vpop.eup %5678 }
 0x8d6   :  { %v4716_v24 = vmul.f32 %v5679_v38, %v5677_v11 }
 0x8d8   :  { %v4717_v26 = vpack.c.bf16 %v4716_v24, %v4716_v24 }
 0x8da   :  { %4752 = vmatmul.mubr.bf16.vlgmr.msra.gmra.mxu0 %v4717_v26  ;;  %4793 = vmatmul.mubr.bf16.vlgmr.msra.gmra.mxu1 %v4717_v26 }
 0x8db   :  { %5258 = vmatpush3.msra.mxu0 %v4840_v63  ;;  %5289 = vmatprep.mubr.msk.f32.mxu0 %vm5891_vm0, %v5890_v27 }
 0x8dc   :  { %5259 = vmatprep.subr.mxu0 %v5890_v27 }
 0x8dd   :  { %5260 = vmatpush3.msra.mxu0 %v4839_v4 }
 0x8de   :  { %5261 = vmatprep.subr.mxu0 %v5890_v27 }
 0x8df   :  { %5262 = vmatpush3.msra.mxu0 %v4838_v32 }
 0x8e0   :  { %5263 = vmatprep.subr.mxu0 %v5890_v27 }
 0x8e1   :  { %5264 = vmatpush3.msra.mxu0 %v4837_v15 }
 0x8e2   :  { %5265 = vmatprep.subr.mxu0 %v5890_v27 }
 0x8e3   :  { %5266 = vmatpush3.msra.mxu0 %v4836_v35 }
 0x8e4   :  { %5267 = vmatprep.subr.mxu0 %v5890_v27 }
 0x8e5   :  { %5268 = vmatpush3.msra.mxu0 %v4835_v58 }
 0x8e6   :  { %5269 = vmatprep.subr.mxu0 %v5890_v27 }
 0x8e7   :  { %5270 = vmatpush3.msra.mxu0 %v4834_v31 }
 0x8e8   :  { %5271 = vmatprep.subr.mxu0 %v5890_v27 }
 0x8e9   :  { %5272 = vmatpush3.msra.mxu0 %v4833_v29 }
 0x8ea   :  { %5273 = vmatprep.subr.mxu0 %v5890_v27 }
 0x8eb   :  { %5274 = vmatpush3.msra.mxu0 %v4832_v40 }
 0x8ec   :  { %5275 = vmatprep.subr.mxu0 %v5890_v27 }
 0x8ed   :  { %5276 = vmatpush3.msra.mxu0 %v4831_v59 }
 0x8ee   :  { %5277 = vmatprep.subr.mxu0 %v5890_v27 }
 0x8ef   :  { %5278 = vmatpush3.msra.mxu0 %v4830_v39 }
 0x8f0   :  { %5279 = vmatprep.subr.mxu0 %v5890_v27 }
 0x8f1   :  { %5280 = vmatpush3.msra.mxu0 %v4829_v19 }
 0x8f2   :  { %5281 = vmatprep.subr.mxu0 %v5890_v27 }
 0x8f3   :  { %5282 = vmatpush3.msra.mxu0 %v4828_v20 }
 0x8f4   :  { %5283 = vmatprep.subr.mxu0 %v5890_v27 }
 0x8f5   :  { %5284 = vmatpush3.msra.mxu0 %v4827_v21 }
 0x8f6   :  { %5285 = vmatprep.subr.mxu0 %v5890_v27 }
 0x8f7   :  { %5286 = vmatpush3.msra.mxu0 %v4826_v51 }
 0x8f8   :  { %5287 = vmatprep.subr.mxu0 %v5890_v27 }
 0x8f9   :  { %5288 = vmatpush3.msra.mxu0 %v4825_v0 }
 0x99a   :  { %v4753_v60 = vpop.f32.mrf.mxu0  ;;  %v4794_v55 = vpop.f32.mrf.mxu1 }
 0x99b   :  { %v4754_v53 = vadd.f32 %v4753_v60, %v9066_v7  ;;  %v4795_v48 = vadd.f32 %v4794_v55, %v9069_v34 }
 0x99c   :  { %v4755_v56 = vpop.f32.mrf.mxu0  ;;  %v4796_v54 = vpop.f32.mrf.mxu1 }
 0x99d   :  { %v5236_v61 = vmul.f32 -1.442695, %v4754_v53  ;;  %v4756_v62 = vadd.f32 %v4755_v56, %v9067_v57  ;;  %v4797_v37 = vadd.f32 %v4796_v54, %v9068_v25 }
 0x99e   :  { %v4757_v13 = vpop.f32.mrf.mxu0  ;;  %v4798_v6 = vpop.f32.mrf.mxu1 }
 0x99f   :  { %5680 = vpow2.f32 %v5236_v61  ;;  %v5237_v50 = vmul.f32 -1.442695, %v4756_v62  ;;  %v5238_v28 = vmul.f32 -1.442695, %v4797_v37 }
 0x9a0   :  { %v4758_v52 = vpop.f32.mrf.mxu0  ;;  %v4799_v33 = vpop.f32.mrf.mxu1 }
 0x9a1   :  { %5682 = vpow2.f32 %v5237_v50 }
 0x9a2   :  { %5684 = vpow2.f32 %v5238_v28 }
 0x9ac   :  { %v5681_v30 = vpop.eup %5680 }
 0x9ad   :  { %v4804_v41 = vadd.f32 1.0, %v5681_v30 }
 0x9ae   :  { %v5683_v7 = vpop.eup %5682 }
 0x9af   :  { %5686 = vrcp.f32 %v4804_v41  ;;  %v4810_v43 = vadd.f32 1.0, %v5683_v7  ;;  %v5685_v57 = vpop.eup %5684 }
 0x9b0   :  { %5688 = vtanh.f32 %v4795_v48  ;;  %v4817_v18 = vadd.f32 1.0, %v5685_v57 }
 0x9b1   :  { %5690 = vrcp.f32 %v4810_v43 }
 0x9b2   :  { %5692 = vrcp.f32 %v4817_v18 }
 0x9bc   :  { %v5687_v44 = vpop.eup %5686 }
 0x9bd   :  { %v5689_v45 = vpop.eup %5688 }
 0x9be   :  { %v5691_v16 = vpop.eup %5690  ;;  %v4821_v5 = vmul.f32 %v5689_v45, %v5687_v44 }
 0x9bf   :  { %v4820_v36 = vmul.f32 %v5691_v16, %v8289_v22  ;;  %v5693_v49 = vpop.eup %5692 }
 0x9c1   :  { %v4822_v25 = vadd.f32 %v4821_v5, %v4820_v36 }
 0x9c3   :  { %5694 = vtanh.f32 %v4822_v25 }
 0x9d0   :  { %v5695_v34 = vpop.eup %5694 }
 0x9d1   :  { %v4824_v23 = vmul.f32 %v5695_v34, %v5693_v49 }
 0x9d3   :  { %5290 = vmatmul.mubr.f32.vlgmr.msra.gmra.mxu0 %v4824_v23 }
 0xa93   :  { %v4914_v46 = vpop.f32.mrf.mxu0 }
 0xa94   :  { %v4915_v42 = vadd.f32 %v5239_v17, %v4914_v46 }
 0xa95   :  { %v5291_v3 = vpop.f32.mrf.mxu0 }
 0xa96   :  { %4918 = vst [vmem:[%s8358_s6] sm:$0xff] %v4915_v42 }

</bundles_post_ra>
